<compile_context>
chip_gen: v7x
topology: tpu7x:2x2x1
jax: 0.10.0
libtpu: 0.0.40
codegen_flags: <defaults>
</compile_context>

<pallas_src>
import functools

import jax
import jax.numpy as jnp
from jax import lax
from jax.experimental import pallas as pl
from jax.experimental.pallas import tpu as pltpu


# ---------------------------------------------------------------------------
# Kernel: one bidirectional LSTM layer, full sequence, time-major.
#   x_ref     : (T, B, I)   layer input
#   wih_f_ref : (I, 4H)     W_ih^T  (forward)
#   whh_f_ref : (H, 4H)     W_hh^T  (forward)
#   b_f_ref   : (1, 4H)     b_ih + b_hh (forward)
#   wih_r_ref / whh_r_ref / b_r_ref : same, reverse direction
#   yf_ref    : (T, B, H)   forward-direction hidden states
#   yr_ref    : (T, B, H)   reverse-direction hidden states (original time order)
# ---------------------------------------------------------------------------
def _bilstm_layer_kernel(x_ref, wih_f_ref, whh_f_ref, b_f_ref,
                         wih_r_ref, whh_r_ref, b_r_ref,
                         yf_ref, yr_ref, *, T, B, H):
    G = 4 * H

    # Hoist loop-invariant weight/bias loads out of the serial loop.
    wih_f = wih_f_ref[...]
    whh_f = whh_f_ref[...]
    b_f = b_f_ref[...]
    wih_r = wih_r_ref[...]
    whh_r = whh_r_ref[...]
    b_r = b_r_ref[...]

    def cell(gates, c):
        # PyTorch gate order: i, f, g, o
        i = jax.nn.sigmoid(gates[:, 0:H])
        f = jax.nn.sigmoid(gates[:, H:2 * H])
        g = jnp.tanh(gates[:, 2 * H:3 * H])
        o = jax.nn.sigmoid(gates[:, 3 * H:G])
        c_new = f * c + i * g
        h_new = o * jnp.tanh(c_new)
        return h_new, c_new

    def step(t, carry):
        h_f, c_f, h_r, c_r = carry
        tr = T - 1 - t

        x_f = x_ref[t]    # (B, I)
        x_r = x_ref[tr]   # (B, I)

        # Four independent matmuls per step (fwd/rev input + recurrent
        # projections) issued back-to-back so the MXU pipeline stays busy.
        proj_f = jnp.dot(x_f, wih_f, preferred_element_type=jnp.float32)
        proj_r = jnp.dot(x_r, wih_r, preferred_element_type=jnp.float32)
        rec_f = jnp.dot(h_f, whh_f, preferred_element_type=jnp.float32)
        rec_r = jnp.dot(h_r, whh_r, preferred_element_type=jnp.float32)

        gates_f = proj_f + rec_f + b_f
        gates_r = proj_r + rec_r + b_r

        h_f, c_f = cell(gates_f, c_f)
        h_r, c_r = cell(gates_r, c_r)

        yf_ref[t] = h_f
        yr_ref[tr] = h_r
        return h_f, c_f, h_r, c_r

    zeros = jnp.zeros((B, H), jnp.float32)
    # unroll=True: fully unroll the short time loop so MXU / EUP / store work
    # overlaps across iterations (use a partial unroll factor for long T).
    lax.fori_loop(0, T, step, (zeros, zeros, zeros, zeros), unroll=True)


def bilstm_layer(x_tm, fwd, rev):
    """x_tm: (T, B, I) time-major. Returns (T, B, 2H)."""
    T, B, I = x_tm.shape
    w_ih_f, w_hh_f, b_ih_f, b_hh_f = fwd
    w_ih_r, w_hh_r, b_ih_r, b_hh_r = rev
    H = w_hh_f.shape[1]
    G = 4 * H

    # Weight transposes and bias folding happen once here (HBM/XLA side),
    # never inside the serial recurrence.
    wih_f_t = w_ih_f.T                       # (I, 4H)
    whh_f_t = w_hh_f.T                       # (H, 4H)
    bf = (b_ih_f + b_hh_f).reshape(1, G)
    wih_r_t = w_ih_r.T
    whh_r_t = w_hh_r.T
    br = (b_ih_r + b_hh_r).reshape(1, G)

    kernel = functools.partial(_bilstm_layer_kernel, T=T, B=B, H=H)

    yf, yr = pl.pallas_call(
        kernel,
        out_shape=(jax.ShapeDtypeStruct((T, B, H), jnp.float32),
                   jax.ShapeDtypeStruct((T, B, H), jnp.float32)),
        grid=(1,),
        in_specs=[
            pl.BlockSpec((T, B, I), lambda i: (0, 0, 0)),
            pl.BlockSpec((I, G), lambda i: (0, 0)),
            pl.BlockSpec((H, G), lambda i: (0, 0)),
            pl.BlockSpec((1, G), lambda i: (0, 0)),
            pl.BlockSpec((I, G), lambda i: (0, 0)),
            pl.BlockSpec((H, G), lambda i: (0, 0)),
            pl.BlockSpec((1, G), lambda i: (0, 0)),
        ],
        out_specs=(pl.BlockSpec((T, B, H), lambda i: (0, 0, 0)),
                   pl.BlockSpec((T, B, H), lambda i: (0, 0, 0))),
        compiler_params=pltpu.CompilerParams(
            dimension_semantics=("arbitrary",),
            vmem_limit_bytes=32 * 1024 * 1024,   # safe on v5e / v6e / v7x
        ),
    )(x_tm, wih_f_t, whh_f_t, bf, wih_r_t, whh_r_t, br)

    return jnp.concatenate([yf, yr], axis=-1)    # (T, B, 2H)


# ---------------------------------------------------------------------------
# Multi-layer bidirectional LSTM, batch_first like PyTorch.
# ---------------------------------------------------------------------------
@jax.jit
def bilstm_forward(x, params):
    """x: (B, T, I). params: list of (fwd, rev) tuples per layer."""
    x_tm = jnp.transpose(x, (1, 0, 2))           # (T, B, I)
    for fwd, rev in params:
        x_tm = bilstm_layer(x_tm, fwd, rev)
    out = jnp.transpose(x_tm, (1, 0, 2))         # (B, T, 2H)
    # nn.Dropout in eval/inference mode is the identity.
    return out


# ---------------------------------------------------------------------------
# PyTorch-style param init: uniform(-1/sqrt(H), 1/sqrt(H)), gate order i,f,g,o.
# ---------------------------------------------------------------------------
def init_bilstm_params(key, input_size, hidden_size, num_layers):
    params = []
    scale = 1.0 / float(hidden_size) ** 0.5
    G = 4 * hidden_size
    for layer in range(num_layers):
        in_sz = input_size if layer == 0 else 2 * hidden_size
        dirs = []
        for _ in range(2):   # forward, reverse
            key, k1, k2, k3, k4 = jax.random.split(key, 5)
            w_ih = jax.random.uniform(k1, (G, in_sz), jnp.float32, -scale, scale)
            w_hh = jax.random.uniform(k2, (G, hidden_size), jnp.float32, -scale, scale)
            b_ih = jax.random.uniform(k3, (G,), jnp.float32, -scale, scale)
            b_hh = jax.random.uniform(k4, (G,), jnp.float32, -scale, scale)
            dirs.append((w_ih, w_hh, b_ih, b_hh))
        params.append(tuple(dirs))
    return key, params


# ---------------------------------------------------------------------------
# Pure-JAX reference (mirrors torch.nn.LSTM bidirectional=True, batch_first).
# ---------------------------------------------------------------------------
def _lstm_cell_ref(x_t, h, c, w_ih, w_hh, b_ih, b_hh):
    H = h.shape[-1]
    gates = x_t @ w_ih.T + b_ih + h @ w_hh.T + b_hh
    i = jax.nn.sigmoid(gates[:, 0:H])
    f = jax.nn.sigmoid(gates[:, H:2 * H])
    g = jnp.tanh(gates[:, 2 * H:3 * H])
    o = jax.nn.sigmoid(gates[:, 3 * H:4 * H])
    c = f * c + i * g
    h = o * jnp.tanh(c)
    return h, c


def bilstm_ref(x, params):
    B, T, _ = x.shape
    inp = x
    for fwd, rev in params:
        H = fwd[1].shape[1]
        # forward direction
        h = jnp.zeros((B, H), jnp.float32)
        c = jnp.zeros((B, H), jnp.float32)
        outs_f = []
        for t in range(T):
            h, c = _lstm_cell_ref(inp[:, t], h, c, *fwd)
            outs_f.append(h)
        # reverse direction
        h = jnp.zeros((B, H), jnp.float32)
        c = jnp.zeros((B, H), jnp.float32)
        outs_r = [None] * T
        for t in range(T - 1, -1, -1):
            h, c = _lstm_cell_ref(inp[:, t], h, c, *rev)
            outs_r[t] = h
        inp = jnp.concatenate(
            [jnp.stack(outs_f, axis=1), jnp.stack(outs_r, axis=1)], axis=-1)
    return inp


if __name__ == "__main__":
    B, T = 2, 8
    input_size, hidden_size, num_layers = 16, 32, 2

    key = jax.random.PRNGKey(0)
    key, kx = jax.random.split(key)
    x = jax.random.normal(kx, (B, T, input_size), jnp.float32)
    key, params = init_bilstm_params(key, input_size, hidden_size, num_layers)

    out = bilstm_forward(x, params)
    out = jax.block_until_ready(out)

    expected = bilstm_ref(x, params)
    assert out.shape == (B, T, 2 * hidden_size), out.shape
    assert jnp.allclose(out, expected, atol=1e-4, rtol=1e-4), (
        float(jnp.max(jnp.abs(out - expected)))
    )

    print("KERNEL_OK")
</pallas_src>

<mosaic_0001>
module attributes {stable_mosaic.version = 11 : i64} {
  func.func @_bilstm_layer_kernel(%arg0: i32, %arg1: memref<8x2x16xf32, #tpu.memory_space<vmem>>, %arg2: memref<16x128xf32, #tpu.memory_space<vmem>>, %arg3: memref<32x128xf32, #tpu.memory_space<vmem>>, %arg4: memref<1x128xf32, #tpu.memory_space<vmem>>, %arg5: memref<16x128xf32, #tpu.memory_space<vmem>>, %arg6: memref<32x128xf32, #tpu.memory_space<vmem>>, %arg7: memref<1x128xf32, #tpu.memory_space<vmem>>, %arg8: memref<8x2x32xf32, #tpu.memory_space<vmem>>, %arg9: memref<8x2x32xf32, #tpu.memory_space<vmem>>) attributes {dimension_semantics = [#tpu.dimension_semantics<arbitrary>], iteration_bounds = array<i64: 1>, scalar_prefetch = 0 : i64, scratch_operands = 0 : i64, tpu.core_type = #tpu.core_type<tc>, window_params = [{pipeline_mode = #tpu.pipeline_mode<synchronous>, transform_indices = @transform_0, window_bounds = array<i64: 8, 2, 16>}, {pipeline_mode = #tpu.pipeline_mode<synchronous>, transform_indices = @transform_1, window_bounds = array<i64: 16, 128>}, {pipeline_mode = #tpu.pipeline_mode<synchronous>, transform_indices = @transform_2, window_bounds = array<i64: 32, 128>}, {pipeline_mode = #tpu.pipeline_mode<synchronous>, transform_indices = @transform_3, window_bounds = array<i64: 1, 128>}, {pipeline_mode = #tpu.pipeline_mode<synchronous>, transform_indices = @transform_4, window_bounds = array<i64: 16, 128>}, {pipeline_mode = #tpu.pipeline_mode<synchronous>, transform_indices = @transform_5, window_bounds = array<i64: 32, 128>}, {pipeline_mode = #tpu.pipeline_mode<synchronous>, transform_indices = @transform_6, window_bounds = array<i64: 1, 128>}, {pipeline_mode = #tpu.pipeline_mode<synchronous>, transform_indices = @transform_7, window_bounds = array<i64: 8, 2, 32>}, {pipeline_mode = #tpu.pipeline_mode<synchronous>, transform_indices = @transform_8, window_bounds = array<i64: 8, 2, 32>}]} {
    %c0 = arith.constant 0 : index
    %c0_0 = arith.constant 0 : index
    %0 = vector.load %arg2[%c0, %c0_0] : memref<16x128xf32, #tpu.memory_space<vmem>>, vector<16x128xf32>
    %c0_1 = arith.constant 0 : index
    %c0_2 = arith.constant 0 : index
    %1 = vector.load %arg3[%c0_1, %c0_2] : memref<32x128xf32, #tpu.memory_space<vmem>>, vector<32x128xf32>
    %c0_3 = arith.constant 0 : index
    %c0_4 = arith.constant 0 : index
    %2 = vector.load %arg4[%c0_3, %c0_4] : memref<1x128xf32, #tpu.memory_space<vmem>>, vector<1x128xf32>
    %c0_5 = arith.constant 0 : index
    %c0_6 = arith.constant 0 : index
    %3 = vector.load %arg5[%c0_5, %c0_6] : memref<16x128xf32, #tpu.memory_space<vmem>>, vector<16x128xf32>
    %c0_7 = arith.constant 0 : index
    %c0_8 = arith.constant 0 : index
    %4 = vector.load %arg6[%c0_7, %c0_8] : memref<32x128xf32, #tpu.memory_space<vmem>>, vector<32x128xf32>
    %c0_9 = arith.constant 0 : index
    %c0_10 = arith.constant 0 : index
    %5 = vector.load %arg7[%c0_9, %c0_10] : memref<1x128xf32, #tpu.memory_space<vmem>>, vector<1x128xf32>
    %cst = arith.constant 0.000000e+00 : f32
    %6 = vector.broadcast %cst : f32 to vector<2x32xf32>
    %c0_i32 = arith.constant 0 : i32
    %c7_i32 = arith.constant 7 : i32
    %7 = arith.subi %c7_i32, %c0_i32 : i32
    %8 = arith.index_cast %c0_i32 : i32 to index
    %c0_11 = arith.constant 0 : index
    %c0_12 = arith.constant 0 : index
    %9 = vector.load %arg1[%8, %c0_11, %c0_12] : memref<8x2x16xf32, #tpu.memory_space<vmem>>, vector<1x2x16xf32>
    %10 = vector.shape_cast %9 : vector<1x2x16xf32> to vector<2x16xf32>
    %11 = arith.index_cast %7 : i32 to index
    %c0_13 = arith.constant 0 : index
    %c0_14 = arith.constant 0 : index
    %12 = vector.load %arg1[%11, %c0_13, %c0_14] : memref<8x2x16xf32, #tpu.memory_space<vmem>>, vector<1x2x16xf32>
    %13 = vector.shape_cast %12 : vector<1x2x16xf32> to vector<2x16xf32>
    %cst_15 = arith.constant dense<0.000000e+00> : vector<2x128xf32>
    %14 = tpu.matmul %10, %0, %cst_15 {dimension_numbers = #tpu.dot_dimension_numbers<[1], [0], [0], [1], [0, 0, 1, 1], [], []>} : vector<2x16xf32>, vector<16x128xf32>, vector<2x128xf32> -> vector<2x128xf32>
    %cst_16 = arith.constant dense<0.000000e+00> : vector<2x128xf32>
    %15 = tpu.matmul %13, %3, %cst_16 {dimension_numbers = #tpu.dot_dimension_numbers<[1], [0], [0], [1], [0, 0, 1, 1], [], []>} : vector<2x16xf32>, vector<16x128xf32>, vector<2x128xf32> -> vector<2x128xf32>
    %cst_17 = arith.constant dense<0.000000e+00> : vector<2x128xf32>
    %16 = tpu.matmul %6, %1, %cst_17 {dimension_numbers = #tpu.dot_dimension_numbers<[1], [0], [0], [1], [0, 0, 1, 1], [], []>} : vector<2x32xf32>, vector<32x128xf32>, vector<2x128xf32> -> vector<2x128xf32>
    %cst_18 = arith.constant dense<0.000000e+00> : vector<2x128xf32>
    %17 = tpu.matmul %6, %4, %cst_18 {dimension_numbers = #tpu.dot_dimension_numbers<[1], [0], [0], [1], [0, 0, 1, 1], [], []>} : vector<2x32xf32>, vector<32x128xf32>, vector<2x128xf32> -> vector<2x128xf32>
    %18 = arith.addf %14, %16 : vector<2x128xf32>
    %19 = vector.broadcast %2 : vector<1x128xf32> to vector<2x128xf32>
    %20 = arith.addf %18, %19 : vector<2x128xf32>
    %21 = arith.addf %15, %17 : vector<2x128xf32>
    %22 = vector.broadcast %5 : vector<1x128xf32> to vector<2x128xf32>
    %23 = arith.addf %21, %22 : vector<2x128xf32>
    %24 = vector.extract_strided_slice %20 {offsets = [0, 0], sizes = [2, 32], strides = [1, 1]} : vector<2x128xf32> to vector<2x32xf32>
    %25 = arith.negf %24 : vector<2x32xf32>
    %26 = math.exp %25 : vector<2x32xf32>
    %cst_19 = arith.constant 1.000000e+00 : f32
    %27 = vector.broadcast %cst_19 : f32 to vector<2x32xf32>
    %28 = arith.addf %27, %26 : vector<2x32xf32>
    %29 = arith.divf %27, %28 : vector<2x32xf32>
    %30 = vector.extract_strided_slice %20 {offsets = [0, 32], sizes = [2, 32], strides = [1, 1]} : vector<2x128xf32> to vector<2x32xf32>
    %31 = arith.negf %30 : vector<2x32xf32>
    %32 = math.exp %31 : vector<2x32xf32>
    %cst_20 = arith.constant 1.000000e+00 : f32
    %33 = vector.broadcast %cst_20 : f32 to vector<2x32xf32>
    %34 = arith.addf %33, %32 : vector<2x32xf32>
    %35 = arith.divf %33, %34 : vector<2x32xf32>
    %36 = vector.extract_strided_slice %20 {offsets = [0, 64], sizes = [2, 32], strides = [1, 1]} : vector<2x128xf32> to vector<2x32xf32>
    %37 = math.tanh %36 : vector<2x32xf32>
    %38 = vector.extract_strided_slice %20 {offsets = [0, 96], sizes = [2, 32], strides = [1, 1]} : vector<2x128xf32> to vector<2x32xf32>
    %39 = arith.negf %38 : vector<2x32xf32>
    %40 = math.exp %39 : vector<2x32xf32>
    %cst_21 = arith.constant 1.000000e+00 : f32
    %41 = vector.broadcast %cst_21 : f32 to vector<2x32xf32>
    %42 = arith.addf %41, %40 : vector<2x32xf32>
    %43 = arith.divf %41, %42 : vector<2x32xf32>
    %44 = arith.mulf %35, %6 : vector<2x32xf32>
    %45 = arith.mulf %29, %37 : vector<2x32xf32>
    %46 = arith.addf %44, %45 : vector<2x32xf32>
    %47 = math.tanh %46 : vector<2x32xf32>
    %48 = arith.mulf %43, %47 : vector<2x32xf32>
    %49 = vector.extract_strided_slice %23 {offsets = [0, 0], sizes = [2, 32], strides = [1, 1]} : vector<2x128xf32> to vector<2x32xf32>
    %50 = arith.negf %49 : vector<2x32xf32>
    %51 = math.exp %50 : vector<2x32xf32>
    %cst_22 = arith.constant 1.000000e+00 : f32
    %52 = vector.broadcast %cst_22 : f32 to vector<2x32xf32>
    %53 = arith.addf %52, %51 : vector<2x32xf32>
    %54 = arith.divf %52, %53 : vector<2x32xf32>
    %55 = vector.extract_strided_slice %23 {offsets = [0, 32], sizes = [2, 32], strides = [1, 1]} : vector<2x128xf32> to vector<2x32xf32>
    %56 = arith.negf %55 : vector<2x32xf32>
    %57 = math.exp %56 : vector<2x32xf32>
    %cst_23 = arith.constant 1.000000e+00 : f32
    %58 = vector.broadcast %cst_23 : f32 to vector<2x32xf32>
    %59 = arith.addf %58, %57 : vector<2x32xf32>
    %60 = arith.divf %58, %59 : vector<2x32xf32>
    %61 = vector.extract_strided_slice %23 {offsets = [0, 64], sizes = [2, 32], strides = [1, 1]} : vector<2x128xf32> to vector<2x32xf32>
    %62 = math.tanh %61 : vector<2x32xf32>
    %63 = vector.extract_strided_slice %23 {offsets = [0, 96], sizes = [2, 32], strides = [1, 1]} : vector<2x128xf32> to vector<2x32xf32>
    %64 = arith.negf %63 : vector<2x32xf32>
    %65 = math.exp %64 : vector<2x32xf32>
    %cst_24 = arith.constant 1.000000e+00 : f32
    %66 = vector.broadcast %cst_24 : f32 to vector<2x32xf32>
    %67 = arith.addf %66, %65 : vector<2x32xf32>
    %68 = arith.divf %66, %67 : vector<2x32xf32>
    %69 = arith.mulf %60, %6 : vector<2x32xf32>
    %70 = arith.mulf %54, %62 : vector<2x32xf32>
    %71 = arith.addf %69, %70 : vector<2x32xf32>
    %72 = math.tanh %71 : vector<2x32xf32>
    %73 = arith.mulf %68, %72 : vector<2x32xf32>
    %74 = arith.index_cast %c0_i32 : i32 to index
    %c0_25 = arith.constant 0 : index
    %c0_26 = arith.constant 0 : index
    %75 = vector.load %arg8[%74, %c0_25, %c0_26] : memref<8x2x32xf32, #tpu.memory_space<vmem>>, vector<1x2x32xf32>
    %76 = vector.shape_cast %75 : vector<1x2x32xf32> to vector<2x32xf32>
    %77 = vector.shape_cast %48 : vector<2x32xf32> to vector<1x2x32xf32>
    tpu.vector_store %arg8[%74, %c0_25, %c0_26], %77 {strides = array<i32>} : memref<8x2x32xf32, #tpu.memory_space<vmem>>, vector<1x2x32xf32>,
    %78 = arith.index_cast %7 : i32 to index
    %c0_27 = arith.constant 0 : index
    %c0_28 = arith.constant 0 : index
    %79 = vector.load %arg9[%78, %c0_27, %c0_28] : memref<8x2x32xf32, #tpu.memory_space<vmem>>, vector<1x2x32xf32>
    %80 = vector.shape_cast %79 : vector<1x2x32xf32> to vector<2x32xf32>
    %81 = vector.shape_cast %73 : vector<2x32xf32> to vector<1x2x32xf32>
    tpu.vector_store %arg9[%78, %c0_27, %c0_28], %81 {strides = array<i32>} : memref<8x2x32xf32, #tpu.memory_space<vmem>>, vector<1x2x32xf32>,
    %c1_i32 = arith.constant 1 : i32
    %c7_i32_29 = arith.constant 7 : i32
    %82 = arith.subi %c7_i32_29, %c1_i32 : i32
    %83 = arith.index_cast %c1_i32 : i32 to index
    %c0_30 = arith.constant 0 : index
    %c0_31 = arith.constant 0 : index
    %84 = vector.load %arg1[%83, %c0_30, %c0_31] : memref<8x2x16xf32, #tpu.memory_space<vmem>>, vector<1x2x16xf32>
    %85 = vector.shape_cast %84 : vector<1x2x16xf32> to vector<2x16xf32>
    %86 = arith.index_cast %82 : i32 to index
    %c0_32 = arith.constant 0 : index
    %c0_33 = arith.constant 0 : index
    %87 = vector.load %arg1[%86, %c0_32, %c0_33] : memref<8x2x16xf32, #tpu.memory_space<vmem>>, vector<1x2x16xf32>
    %88 = vector.shape_cast %87 : vector<1x2x16xf32> to vector<2x16xf32>
    %cst_34 = arith.constant dense<0.000000e+00> : vector<2x128xf32>
    %89 = tpu.matmul %85, %0, %cst_34 {dimension_numbers = #tpu.dot_dimension_numbers<[1], [0], [0], [1], [0, 0, 1, 1], [], []>} : vector<2x16xf32>, vector<16x128xf32>, vector<2x128xf32> -> vector<2x128xf32>
    %cst_35 = arith.constant dense<0.000000e+00> : vector<2x128xf32>
    %90 = tpu.matmul %88, %3, %cst_35 {dimension_numbers = #tpu.dot_dimension_numbers<[1], [0], [0], [1], [0, 0, 1, 1], [], []>} : vector<2x16xf32>, vector<16x128xf32>, vector<2x128xf32> -> vector<2x128xf32>
    %cst_36 = arith.constant dense<0.000000e+00> : vector<2x128xf32>
    %91 = tpu.matmul %48, %1, %cst_36 {dimension_numbers = #tpu.dot_dimension_numbers<[1], [0], [0], [1], [0, 0, 1, 1], [], []>} : vector<2x32xf32>, vector<32x128xf32>, vector<2x128xf32> -> vector<2x128xf32>
    %cst_37 = arith.constant dense<0.000000e+00> : vector<2x128xf32>
    %92 = tpu.matmul %73, %4, %cst_37 {dimension_numbers = #tpu.dot_dimension_numbers<[1], [0], [0], [1], [0, 0, 1, 1], [], []>} : vector<2x32xf32>, vector<32x128xf32>, vector<2x128xf32> -> vector<2x128xf32>
    %93 = arith.addf %89, %91 : vector<2x128xf32>
    %94 = vector.broadcast %2 : vector<1x128xf32> to vector<2x128xf32>
    %95 = arith.addf %93, %94 : vector<2x128xf32>
    %96 = arith.addf %90, %92 : vector<2x128xf32>
    %97 = vector.broadcast %5 : vector<1x128xf32> to vector<2x128xf32>
    %98 = arith.addf %96, %97 : vector<2x128xf32>
    %99 = vector.extract_strided_slice %95 {offsets = [0, 0], sizes = [2, 32], strides = [1, 1]} : vector<2x128xf32> to vector<2x32xf32>
    %100 = arith.negf %99 : vector<2x32xf32>
    %101 = math.exp %100 : vector<2x32xf32>
    %cst_38 = arith.constant 1.000000e+00 : f32
    %102 = vector.broadcast %cst_38 : f32 to vector<2x32xf32>
    %103 = arith.addf %102, %101 : vector<2x32xf32>
    %104 = arith.divf %102, %103 : vector<2x32xf32>
    %105 = vector.extract_strided_slice %95 {offsets = [0, 32], sizes = [2, 32], strides = [1, 1]} : vector<2x128xf32> to vector<2x32xf32>
    %106 = arith.negf %105 : vector<2x32xf32>
    %107 = math.exp %106 : vector<2x32xf32>
    %cst_39 = arith.constant 1.000000e+00 : f32
    %108 = vector.broadcast %cst_39 : f32 to vector<2x32xf32>
    %109 = arith.addf %108, %107 : vector<2x32xf32>
    %110 = arith.divf %108, %109 : vector<2x32xf32>
    %111 = vector.extract_strided_slice %95 {offsets = [0, 64], sizes = [2, 32], strides = [1, 1]} : vector<2x128xf32> to vector<2x32xf32>
    %112 = math.tanh %111 : vector<2x32xf32>
    %113 = vector.extract_strided_slice %95 {offsets = [0, 96], sizes = [2, 32], strides = [1, 1]} : vector<2x128xf32> to vector<2x32xf32>
    %114 = arith.negf %113 : vector<2x32xf32>
    %115 = math.exp %114 : vector<2x32xf32>
    %cst_40 = arith.constant 1.000000e+00 : f32
    %116 = vector.broadcast %cst_40 : f32 to vector<2x32xf32>
    %117 = arith.addf %116, %115 : vector<2x32xf32>
    %118 = arith.divf %116, %117 : vector<2x32xf32>
    %119 = arith.mulf %110, %46 : vector<2x32xf32>
    %120 = arith.mulf %104, %112 : vector<2x32xf32>
    %121 = arith.addf %119, %120 : vector<2x32xf32>
    %122 = math.tanh %121 : vector<2x32xf32>
    %123 = arith.mulf %118, %122 : vector<2x32xf32>
    %124 = vector.extract_strided_slice %98 {offsets = [0, 0], sizes = [2, 32], strides = [1, 1]} : vector<2x128xf32> to vector<2x32xf32>
    %125 = arith.negf %124 : vector<2x32xf32>
    %126 = math.exp %125 : vector<2x32xf32>
    %cst_41 = arith.constant 1.000000e+00 : f32
    %127 = vector.broadcast %cst_41 : f32 to vector<2x32xf32>
    %128 = arith.addf %127, %126 : vector<2x32xf32>
    %129 = arith.divf %127, %128 : vector<2x32xf32>
    %130 = vector.extract_strided_slice %98 {offsets = [0, 32], sizes = [2, 32], strides = [1, 1]} : vector<2x128xf32> to vector<2x32xf32>
    %131 = arith.negf %130 : vector<2x32xf32>
    %132 = math.exp %131 : vector<2x32xf32>
    %cst_42 = arith.constant 1.000000e+00 : f32
    %133 = vector.broadcast %cst_42 : f32 to vector<2x32xf32>
    %134 = arith.addf %133, %132 : vector<2x32xf32>
    %135 = arith.divf %133, %134 : vector<2x32xf32>
    %136 = vector.extract_strided_slice %98 {offsets = [0, 64], sizes = [2, 32], strides = [1, 1]} : vector<2x128xf32> to vector<2x32xf32>
    %137 = math.tanh %136 : vector<2x32xf32>
    %138 = vector.extract_strided_slice %98 {offsets = [0, 96], sizes = [2, 32], strides = [1, 1]} : vector<2x128xf32> to vector<2x32xf32>
    %139 = arith.negf %138 : vector<2x32xf32>
    %140 = math.exp %139 : vector<2x32xf32>
    %cst_43 = arith.constant 1.000000e+00 : f32
    %141 = vector.broadcast %cst_43 : f32 to vector<2x32xf32>
    %142 = arith.addf %141, %140 : vector<2x32xf32>
    %143 = arith.divf %141, %142 : vector<2x32xf32>
    %144 = arith.mulf %135, %71 : vector<2x32xf32>
    %145 = arith.mulf %129, %137 : vector<2x32xf32>
    %146 = arith.addf %144, %145 : vector<2x32xf32>
    %147 = math.tanh %146 : vector<2x32xf32>
    %148 = arith.mulf %143, %147 : vector<2x32xf32>
    %149 = arith.index_cast %c1_i32 : i32 to index
    %c0_44 = arith.constant 0 : index
    %c0_45 = arith.constant 0 : index
    %150 = vector.load %arg8[%149, %c0_44, %c0_45] : memref<8x2x32xf32, #tpu.memory_space<vmem>>, vector<1x2x32xf32>
    %151 = vector.shape_cast %150 : vector<1x2x32xf32> to vector<2x32xf32>
    %152 = vector.shape_cast %123 : vector<2x32xf32> to vector<1x2x32xf32>
    tpu.vector_store %arg8[%149, %c0_44, %c0_45], %152 {strides = array<i32>} : memref<8x2x32xf32, #tpu.memory_space<vmem>>, vector<1x2x32xf32>,
    %153 = arith.index_cast %82 : i32 to index
    %c0_46 = arith.constant 0 : index
    %c0_47 = arith.constant 0 : index
    %154 = vector.load %arg9[%153, %c0_46, %c0_47] : memref<8x2x32xf32, #tpu.memory_space<vmem>>, vector<1x2x32xf32>
    %155 = vector.shape_cast %154 : vector<1x2x32xf32> to vector<2x32xf32>
    %156 = vector.shape_cast %148 : vector<2x32xf32> to vector<1x2x32xf32>
    tpu.vector_store %arg9[%153, %c0_46, %c0_47], %156 {strides = array<i32>} : memref<8x2x32xf32, #tpu.memory_space<vmem>>, vector<1x2x32xf32>,
    %c2_i32 = arith.constant 2 : i32
    %c7_i32_48 = arith.constant 7 : i32
    %157 = arith.subi %c7_i32_48, %c2_i32 : i32
    %158 = arith.index_cast %c2_i32 : i32 to index
    %c0_49 = arith.constant 0 : index
    %c0_50 = arith.constant 0 : index
    %159 = vector.load %arg1[%158, %c0_49, %c0_50] : memref<8x2x16xf32, #tpu.memory_space<vmem>>, vector<1x2x16xf32>
    %160 = vector.shape_cast %159 : vector<1x2x16xf32> to vector<2x16xf32>
    %161 = arith.index_cast %157 : i32 to index
    %c0_51 = arith.constant 0 : index
    %c0_52 = arith.constant 0 : index
    %162 = vector.load %arg1[%161, %c0_51, %c0_52] : memref<8x2x16xf32, #tpu.memory_space<vmem>>, vector<1x2x16xf32>
    %163 = vector.shape_cast %162 : vector<1x2x16xf32> to vector<2x16xf32>
    %cst_53 = arith.constant dense<0.000000e+00> : vector<2x128xf32>
    %164 = tpu.matmul %160, %0, %cst_53 {dimension_numbers = #tpu.dot_dimension_numbers<[1], [0], [0], [1], [0, 0, 1, 1], [], []>} : vector<2x16xf32>, vector<16x128xf32>, vector<2x128xf32> -> vector<2x128xf32>
    %cst_54 = arith.constant dense<0.000000e+00> : vector<2x128xf32>
    %165 = tpu.matmul %163, %3, %cst_54 {dimension_numbers = #tpu.dot_dimension_numbers<[1], [0], [0], [1], [0, 0, 1, 1], [], []>} : vector<2x16xf32>, vector<16x128xf32>, vector<2x128xf32> -> vector<2x128xf32>
    %cst_55 = arith.constant dense<0.000000e+00> : vector<2x128xf32>
    %166 = tpu.matmul %123, %1, %cst_55 {dimension_numbers = #tpu.dot_dimension_numbers<[1], [0], [0], [1], [0, 0, 1, 1], [], []>} : vector<2x32xf32>, vector<32x128xf32>, vector<2x128xf32> -> vector<2x128xf32>
    %cst_56 = arith.constant dense<0.000000e+00> : vector<2x128xf32>
    %167 = tpu.matmul %148, %4, %cst_56 {dimension_numbers = #tpu.dot_dimension_numbers<[1], [0], [0], [1], [0, 0, 1, 1], [], []>} : vector<2x32xf32>, vector<32x128xf32>, vector<2x128xf32> -> vector<2x128xf32>
    %168 = arith.addf %164, %166 : vector<2x128xf32>
    %169 = vector.broadcast %2 : vector<1x128xf32> to vector<2x128xf32>
    %170 = arith.addf %168, %169 : vector<2x128xf32>
    %171 = arith.addf %165, %167 : vector<2x128xf32>
    %172 = vector.broadcast %5 : vector<1x128xf32> to vector<2x128xf32>
    %173 = arith.addf %171, %172 : vector<2x128xf32>
    %174 = vector.extract_strided_slice %170 {offsets = [0, 0], sizes = [2, 32], strides = [1, 1]} : vector<2x128xf32> to vector<2x32xf32>
    %175 = arith.negf %174 : vector<2x32xf32>
    %176 = math.exp %175 : vector<2x32xf32>
    %cst_57 = arith.constant 1.000000e+00 : f32
    %177 = vector.broadcast %cst_57 : f32 to vector<2x32xf32>
    %178 = arith.addf %177, %176 : vector<2x32xf32>
    %179 = arith.divf %177, %178 : vector<2x32xf32>
    %180 = vector.extract_strided_slice %170 {offsets = [0, 32], sizes = [2, 32], strides = [1, 1]} : vector<2x128xf32> to vector<2x32xf32>
    %181 = arith.negf %180 : vector<2x32xf32>
    %182 = math.exp %181 : vector<2x32xf32>
    %cst_58 = arith.constant 1.000000e+00 : f32
    %183 = vector.broadcast %cst_58 : f32 to vector<2x32xf32>
    %184 = arith.addf %183, %182 : vector<2x32xf32>
    %185 = arith.divf %183, %184 : vector<2x32xf32>
    %186 = vector.extract_strided_slice %170 {offsets = [0, 64], sizes = [2, 32], strides = [1, 1]} : vector<2x128xf32> to vector<2x32xf32>
    %187 = math.tanh %186 : vector<2x32xf32>
    %188 = vector.extract_strided_slice %170 {offsets = [0, 96], sizes = [2, 32], strides = [1, 1]} : vector<2x128xf32> to vector<2x32xf32>
    %189 = arith.negf %188 : vector<2x32xf32>
    %190 = math.exp %189 : vector<2x32xf32>
    %cst_59 = arith.constant 1.000000e+00 : f32
    %191 = vector.broadcast %cst_59 : f32 to vector<2x32xf32>
    %192 = arith.addf %191, %190 : vector<2x32xf32>
    %193 = arith.divf %191, %192 : vector<2x32xf32>
    %194 = arith.mulf %185, %121 : vector<2x32xf32>
    %195 = arith.mulf %179, %187 : vector<2x32xf32>
    %196 = arith.addf %194, %195 : vector<2x32xf32>
    %197 = math.tanh %196 : vector<2x32xf32>
    %198 = arith.mulf %193, %197 : vector<2x32xf32>
    %199 = vector.extract_strided_slice %173 {offsets = [0, 0], sizes = [2, 32], strides = [1, 1]} : vector<2x128xf32> to vector<2x32xf32>
    %200 = arith.negf %199 : vector<2x32xf32>
    %201 = math.exp %200 : vector<2x32xf32>
    %cst_60 = arith.constant 1.000000e+00 : f32
    %202 = vector.broadcast %cst_60 : f32 to vector<2x32xf32>
    %203 = arith.addf %202, %201 : vector<2x32xf32>
    %204 = arith.divf %202, %203 : vector<2x32xf32>
    %205 = vector.extract_strided_slice %173 {offsets = [0, 32], sizes = [2, 32], strides = [1, 1]} : vector<2x128xf32> to vector<2x32xf32>
    %206 = arith.negf %205 : vector<2x32xf32>
    %207 = math.exp %206 : vector<2x32xf32>
    %cst_61 = arith.constant 1.000000e+00 : f32
    %208 = vector.broadcast %cst_61 : f32 to vector<2x32xf32>
    %209 = arith.addf %208, %207 : vector<2x32xf32>
    %210 = arith.divf %208, %209 : vector<2x32xf32>
    %211 = vector.extract_strided_slice %173 {offsets = [0, 64], sizes = [2, 32], strides = [1, 1]} : vector<2x128xf32> to vector<2x32xf32>
    %212 = math.tanh %211 : vector<2x32xf32>
    %213 = vector.extract_strided_slice %173 {offsets = [0, 96], sizes = [2, 32], strides = [1, 1]} : vector<2x128xf32> to vector<2x32xf32>
    %214 = arith.negf %213 : vector<2x32xf32>
    %215 = math.exp %214 : vector<2x32xf32>
    %cst_62 = arith.constant 1.000000e+00 : f32
    %216 = vector.broadcast %cst_62 : f32 to vector<2x32xf32>
    %217 = arith.addf %216, %215 : vector<2x32xf32>
    %218 = arith.divf %216, %217 : vector<2x32xf32>
    %219 = arith.mulf %210, %146 : vector<2x32xf32>
    %220 = arith.mulf %204, %212 : vector<2x32xf32>
    %221 = arith.addf %219, %220 : vector<2x32xf32>
    %222 = math.tanh %221 : vector<2x32xf32>
    %223 = arith.mulf %218, %222 : vector<2x32xf32>
    %224 = arith.index_cast %c2_i32 : i32 to index
    %c0_63 = arith.constant 0 : index
    %c0_64 = arith.constant 0 : index
    %225 = vector.load %arg8[%224, %c0_63, %c0_64] : memref<8x2x32xf32, #tpu.memory_space<vmem>>, vector<1x2x32xf32>
    %226 = vector.shape_cast %225 : vector<1x2x32xf32> to vector<2x32xf32>
    %227 = vector.shape_cast %198 : vector<2x32xf32> to vector<1x2x32xf32>
    tpu.vector_store %arg8[%224, %c0_63, %c0_64], %227 {strides = array<i32>} : memref<8x2x32xf32, #tpu.memory_space<vmem>>, vector<1x2x32xf32>,
    %228 = arith.index_cast %157 : i32 to index
    %c0_65 = arith.constant 0 : index
    %c0_66 = arith.constant 0 : index
    %229 = vector.load %arg9[%228, %c0_65, %c0_66] : memref<8x2x32xf32, #tpu.memory_space<vmem>>, vector<1x2x32xf32>
    %230 = vector.shape_cast %229 : vector<1x2x32xf32> to vector<2x32xf32>
    %231 = vector.shape_cast %223 : vector<2x32xf32> to vector<1x2x32xf32>
    tpu.vector_store %arg9[%228, %c0_65, %c0_66], %231 {strides = array<i32>} : memref<8x2x32xf32, #tpu.memory_space<vmem>>, vector<1x2x32xf32>,
    %c3_i32 = arith.constant 3 : i32
    %c7_i32_67 = arith.constant 7 : i32
    %232 = arith.subi %c7_i32_67, %c3_i32 : i32
    %233 = arith.index_cast %c3_i32 : i32 to index
    %c0_68 = arith.constant 0 : index
    %c0_69 = arith.constant 0 : index
    %234 = vector.load %arg1[%233, %c0_68, %c0_69] : memref<8x2x16xf32, #tpu.memory_space<vmem>>, vector<1x2x16xf32>
    %235 = vector.shape_cast %234 : vector<1x2x16xf32> to vector<2x16xf32>
    %236 = arith.index_cast %232 : i32 to index
    %c0_70 = arith.constant 0 : index
    %c0_71 = arith.constant 0 : index
    %237 = vector.load %arg1[%236, %c0_70, %c0_71] : memref<8x2x16xf32, #tpu.memory_space<vmem>>, vector<1x2x16xf32>
    %238 = vector.shape_cast %237 : vector<1x2x16xf32> to vector<2x16xf32>
    %cst_72 = arith.constant dense<0.000000e+00> : vector<2x128xf32>
    %239 = tpu.matmul %235, %0, %cst_72 {dimension_numbers = #tpu.dot_dimension_numbers<[1], [0], [0], [1], [0, 0, 1, 1], [], []>} : vector<2x16xf32>, vector<16x128xf32>, vector<2x128xf32> -> vector<2x128xf32>
    %cst_73 = arith.constant dense<0.000000e+00> : vector<2x128xf32>
    %240 = tpu.matmul %238, %3, %cst_73 {dimension_numbers = #tpu.dot_dimension_numbers<[1], [0], [0], [1], [0, 0, 1, 1], [], []>} : vector<2x16xf32>, vector<16x128xf32>, vector<2x128xf32> -> vector<2x128xf32>
    %cst_74 = arith.constant dense<0.000000e+00> : vector<2x128xf32>
    %241 = tpu.matmul %198, %1, %cst_74 {dimension_numbers = #tpu.dot_dimension_numbers<[1], [0], [0], [1], [0, 0, 1, 1], [], []>} : vector<2x32xf32>, vector<32x128xf32>, vector<2x128xf32> -> vector<2x128xf32>
    %cst_75 = arith.constant dense<0.000000e+00> : vector<2x128xf32>
    %242 = tpu.matmul %223, %4, %cst_75 {dimension_numbers = #tpu.dot_dimension_numbers<[1], [0], [0], [1], [0, 0, 1, 1], [], []>} : vector<2x32xf32>, vector<32x128xf32>, vector<2x128xf32> -> vector<2x128xf32>
    %243 = arith.addf %239, %241 : vector<2x128xf32>
    %244 = vector.broadcast %2 : vector<1x128xf32> to vector<2x128xf32>
    %245 = arith.addf %243, %244 : vector<2x128xf32>
    %246 = arith.addf %240, %242 : vector<2x128xf32>
    %247 = vector.broadcast %5 : vector<1x128xf32> to vector<2x128xf32>
    %248 = arith.addf %246, %247 : vector<2x128xf32>
    %249 = vector.extract_strided_slice %245 {offsets = [0, 0], sizes = [2, 32], strides = [1, 1]} : vector<2x128xf32> to vector<2x32xf32>
    %250 = arith.negf %249 : vector<2x32xf32>
    %251 = math.exp %250 : vector<2x32xf32>
    %cst_76 = arith.constant 1.000000e+00 : f32
    %252 = vector.broadcast %cst_76 : f32 to vector<2x32xf32>
    %253 = arith.addf %252, %251 : vector<2x32xf32>
    %254 = arith.divf %252, %253 : vector<2x32xf32>
    %255 = vector.extract_strided_slice %245 {offsets = [0, 32], sizes = [2, 32], strides = [1, 1]} : vector<2x128xf32> to vector<2x32xf32>
    %256 = arith.negf %255 : vector<2x32xf32>
    %257 = math.exp %256 : vector<2x32xf32>
    %cst_77 = arith.constant 1.000000e+00 : f32
    %258 = vector.broadcast %cst_77 : f32 to vector<2x32xf32>
    %259 = arith.addf %258, %257 : vector<2x32xf32>
    %260 = arith.divf %258, %259 : vector<2x32xf32>
    %261 = vector.extract_strided_slice %245 {offsets = [0, 64], sizes = [2, 32], strides = [1, 1]} : vector<2x128xf32> to vector<2x32xf32>
    %262 = math.tanh %261 : vector<2x32xf32>
    %263 = vector.extract_strided_slice %245 {offsets = [0, 96], sizes = [2, 32], strides = [1, 1]} : vector<2x128xf32> to vector<2x32xf32>
    %264 = arith.negf %263 : vector<2x32xf32>
    %265 = math.exp %264 : vector<2x32xf32>
    %cst_78 = arith.constant 1.000000e+00 : f32
    %266 = vector.broadcast %cst_78 : f32 to vector<2x32xf32>
    %267 = arith.addf %266, %265 : vector<2x32xf32>
    %268 = arith.divf %266, %267 : vector<2x32xf32>
    %269 = arith.mulf %260, %196 : vector<2x32xf32>
    %270 = arith.mulf %254, %262 : vector<2x32xf32>
    %271 = arith.addf %269, %270 : vector<2x32xf32>
    %272 = math.tanh %271 : vector<2x32xf32>
    %273 = arith.mulf %268, %272 : vector<2x32xf32>
    %274 = vector.extract_strided_slice %248 {offsets = [0, 0], sizes = [2, 32], strides = [1, 1]} : vector<2x128xf32> to vector<2x32xf32>
    %275 = arith.negf %274 : vector<2x32xf32>
    %276 = math.exp %275 : vector<2x32xf32>
    %cst_79 = arith.constant 1.000000e+00 : f32
    %277 = vector.broadcast %cst_79 : f32 to vector<2x32xf32>
    %278 = arith.addf %277, %276 : vector<2x32xf32>
    %279 = arith.divf %277, %278 : vector<2x32xf32>
    %280 = vector.extract_strided_slice %248 {offsets = [0, 32], sizes = [2, 32], strides = [1, 1]} : vector<2x128xf32> to vector<2x32xf32>
    %281 = arith.negf %280 : vector<2x32xf32>
    %282 = math.exp %281 : vector<2x32xf32>
    %cst_80 = arith.constant 1.000000e+00 : f32
    %283 = vector.broadcast %cst_80 : f32 to vector<2x32xf32>
    %284 = arith.addf %283, %282 : vector<2x32xf32>
    %285 = arith.divf %283, %284 : vector<2x32xf32>
    %286 = vector.extract_strided_slice %248 {offsets = [0, 64], sizes = [2, 32], strides = [1, 1]} : vector<2x128xf32> to vector<2x32xf32>
    %287 = math.tanh %286 : vector<2x32xf32>
    %288 = vector.extract_strided_slice %248 {offsets = [0, 96], sizes = [2, 32], strides = [1, 1]} : vector<2x128xf32> to vector<2x32xf32>
    %289 = arith.negf %288 : vector<2x32xf32>
    %290 = math.exp %289 : vector<2x32xf32>
    %cst_81 = arith.constant 1.000000e+00 : f32
    %291 = vector.broadcast %cst_81 : f32 to vector<2x32xf32>
    %292 = arith.addf %291, %290 : vector<2x32xf32>
    %293 = arith.divf %291, %292 : vector<2x32xf32>
    %294 = arith.mulf %285, %221 : vector<2x32xf32>
    %295 = arith.mulf %279, %287 : vector<2x32xf32>
    %296 = arith.addf %294, %295 : vector<2x32xf32>
    %297 = math.tanh %296 : vector<2x32xf32>
    %298 = arith.mulf %293, %297 : vector<2x32xf32>
    %299 = arith.index_cast %c3_i32 : i32 to index
    %c0_82 = arith.constant 0 : index
    %c0_83 = arith.constant 0 : index
    %300 = vector.load %arg8[%299, %c0_82, %c0_83] : memref<8x2x32xf32, #tpu.memory_space<vmem>>, vector<1x2x32xf32>
    %301 = vector.shape_cast %300 : vector<1x2x32xf32> to vector<2x32xf32>
    %302 = vector.shape_cast %273 : vector<2x32xf32> to vector<1x2x32xf32>
    tpu.vector_store %arg8[%299, %c0_82, %c0_83], %302 {strides = array<i32>} : memref<8x2x32xf32, #tpu.memory_space<vmem>>, vector<1x2x32xf32>,
    %303 = arith.index_cast %232 : i32 to index
    %c0_84 = arith.constant 0 : index
    %c0_85 = arith.constant 0 : index
    %304 = vector.load %arg9[%303, %c0_84, %c0_85] : memref<8x2x32xf32, #tpu.memory_space<vmem>>, vector<1x2x32xf32>
    %305 = vector.shape_cast %304 : vector<1x2x32xf32> to vector<2x32xf32>
    %306 = vector.shape_cast %298 : vector<2x32xf32> to vector<1x2x32xf32>
    tpu.vector_store %arg9[%303, %c0_84, %c0_85], %306 {strides = array<i32>} : memref<8x2x32xf32, #tpu.memory_space<vmem>>, vector<1x2x32xf32>,
    %c4_i32 = arith.constant 4 : i32
    %c7_i32_86 = arith.constant 7 : i32
    %307 = arith.subi %c7_i32_86, %c4_i32 : i32
    %308 = arith.index_cast %c4_i32 : i32 to index
    %c0_87 = arith.constant 0 : index
    %c0_88 = arith.constant 0 : index
    %309 = vector.load %arg1[%308, %c0_87, %c0_88] : memref<8x2x16xf32, #tpu.memory_space<vmem>>, vector<1x2x16xf32>
    %310 = vector.shape_cast %309 : vector<1x2x16xf32> to vector<2x16xf32>
    %311 = arith.index_cast %307 : i32 to index
    %c0_89 = arith.constant 0 : index
    %c0_90 = arith.constant 0 : index
    %312 = vector.load %arg1[%311, %c0_89, %c0_90] : memref<8x2x16xf32, #tpu.memory_space<vmem>>, vector<1x2x16xf32>
    %313 = vector.shape_cast %312 : vector<1x2x16xf32> to vector<2x16xf32>
    %cst_91 = arith.constant dense<0.000000e+00> : vector<2x128xf32>
    %314 = tpu.matmul %310, %0, %cst_91 {dimension_numbers = #tpu.dot_dimension_numbers<[1], [0], [0], [1], [0, 0, 1, 1], [], []>} : vector<2x16xf32>, vector<16x128xf32>, vector<2x128xf32> -> vector<2x128xf32>
    %cst_92 = arith.constant dense<0.000000e+00> : vector<2x128xf32>
    %315 = tpu.matmul %313, %3, %cst_92 {dimension_numbers = #tpu.dot_dimension_numbers<[1], [0], [0], [1], [0, 0, 1, 1], [], []>} : vector<2x16xf32>, vector<16x128xf32>, vector<2x128xf32> -> vector<2x128xf32>
    %cst_93 = arith.constant dense<0.000000e+00> : vector<2x128xf32>
    %316 = tpu.matmul %273, %1, %cst_93 {dimension_numbers = #tpu.dot_dimension_numbers<[1], [0], [0], [1], [0, 0, 1, 1], [], []>} : vector<2x32xf32>, vector<32x128xf32>, vector<2x128xf32> -> vector<2x128xf32>
    %cst_94 = arith.constant dense<0.000000e+00> : vector<2x128xf32>
    %317 = tpu.matmul %298, %4, %cst_94 {dimension_numbers = #tpu.dot_dimension_numbers<[1], [0], [0], [1], [0, 0, 1, 1], [], []>} : vector<2x32xf32>, vector<32x128xf32>, vector<2x128xf32> -> vector<2x128xf32>
    %318 = arith.addf %314, %316 : vector<2x128xf32>
    %319 = vector.broadcast %2 : vector<1x128xf32> to vector<2x128xf32>
    %320 = arith.addf %318, %319 : vector<2x128xf32>
    %321 = arith.addf %315, %317 : vector<2x128xf32>
    %322 = vector.broadcast %5 : vector<1x128xf32> to vector<2x128xf32>
    %323 = arith.addf %321, %322 : vector<2x128xf32>
    %324 = vector.extract_strided_slice %320 {offsets = [0, 0], sizes = [2, 32], strides = [1, 1]} : vector<2x128xf32> to vector<2x32xf32>
    %325 = arith.negf %324 : vector<2x32xf32>
    %326 = math.exp %325 : vector<2x32xf32>
    %cst_95 = arith.constant 1.000000e+00 : f32
    %327 = vector.broadcast %cst_95 : f32 to vector<2x32xf32>
    %328 = arith.addf %327, %326 : vector<2x32xf32>
    %329 = arith.divf %327, %328 : vector<2x32xf32>
    %330 = vector.extract_strided_slice %320 {offsets = [0, 32], sizes = [2, 32], strides = [1, 1]} : vector<2x128xf32> to vector<2x32xf32>
    %331 = arith.negf %330 : vector<2x32xf32>
    %332 = math.exp %331 : vector<2x32xf32>
    %cst_96 = arith.constant 1.000000e+00 : f32
    %333 = vector.broadcast %cst_96 : f32 to vector<2x32xf32>
    %334 = arith.addf %333, %332 : vector<2x32xf32>
    %335 = arith.divf %333, %334 : vector<2x32xf32>
    %336 = vector.extract_strided_slice %320 {offsets = [0, 64], sizes = [2, 32], strides = [1, 1]} : vector<2x128xf32> to vector<2x32xf32>
    %337 = math.tanh %336 : vector<2x32xf32>
    %338 = vector.extract_strided_slice %320 {offsets = [0, 96], sizes = [2, 32], strides = [1, 1]} : vector<2x128xf32> to vector<2x32xf32>
    %339 = arith.negf %338 : vector<2x32xf32>
    %340 = math.exp %339 : vector<2x32xf32>
    %cst_97 = arith.constant 1.000000e+00 : f32
    %341 = vector.broadcast %cst_97 : f32 to vector<2x32xf32>
    %342 = arith.addf %341, %340 : vector<2x32xf32>
    %343 = arith.divf %341, %342 : vector<2x32xf32>
    %344 = arith.mulf %335, %271 : vector<2x32xf32>
    %345 = arith.mulf %329, %337 : vector<2x32xf32>
    %346 = arith.addf %344, %345 : vector<2x32xf32>
    %347 = math.tanh %346 : vector<2x32xf32>
    %348 = arith.mulf %343, %347 : vector<2x32xf32>
    %349 = vector.extract_strided_slice %323 {offsets = [0, 0], sizes = [2, 32], strides = [1, 1]} : vector<2x128xf32> to vector<2x32xf32>
    %350 = arith.negf %349 : vector<2x32xf32>
    %351 = math.exp %350 : vector<2x32xf32>
    %cst_98 = arith.constant 1.000000e+00 : f32
    %352 = vector.broadcast %cst_98 : f32 to vector<2x32xf32>
    %353 = arith.addf %352, %351 : vector<2x32xf32>
    %354 = arith.divf %352, %353 : vector<2x32xf32>
    %355 = vector.extract_strided_slice %323 {offsets = [0, 32], sizes = [2, 32], strides = [1, 1]} : vector<2x128xf32> to vector<2x32xf32>
    %356 = arith.negf %355 : vector<2x32xf32>
    %357 = math.exp %356 : vector<2x32xf32>
    %cst_99 = arith.constant 1.000000e+00 : f32
    %358 = vector.broadcast %cst_99 : f32 to vector<2x32xf32>
    %359 = arith.addf %358, %357 : vector<2x32xf32>
    %360 = arith.divf %358, %359 : vector<2x32xf32>
    %361 = vector.extract_strided_slice %323 {offsets = [0, 64], sizes = [2, 32], strides = [1, 1]} : vector<2x128xf32> to vector<2x32xf32>
    %362 = math.tanh %361 : vector<2x32xf32>
    %363 = vector.extract_strided_slice %323 {offsets = [0, 96], sizes = [2, 32], strides = [1, 1]} : vector<2x128xf32> to vector<2x32xf32>
    %364 = arith.negf %363 : vector<2x32xf32>
    %365 = math.exp %364 : vector<2x32xf32>
    %cst_100 = arith.constant 1.000000e+00 : f32
    %366 = vector.broadcast %cst_100 : f32 to vector<2x32xf32>
    %367 = arith.addf %366, %365 : vector<2x32xf32>
    %368 = arith.divf %366, %367 : vector<2x32xf32>
    %369 = arith.mulf %360, %296 : vector<2x32xf32>
    %370 = arith.mulf %354, %362 : vector<2x32xf32>
    %371 = arith.addf %369, %370 : vector<2x32xf32>
    %372 = math.tanh %371 : vector<2x32xf32>
    %373 = arith.mulf %368, %372 : vector<2x32xf32>
    %374 = arith.index_cast %c4_i32 : i32 to index
    %c0_101 = arith.constant 0 : index
    %c0_102 = arith.constant 0 : index
    %375 = vector.load %arg8[%374, %c0_101, %c0_102] : memref<8x2x32xf32, #tpu.memory_space<vmem>>, vector<1x2x32xf32>
    %376 = vector.shape_cast %375 : vector<1x2x32xf32> to vector<2x32xf32>
    %377 = vector.shape_cast %348 : vector<2x32xf32> to vector<1x2x32xf32>
    tpu.vector_store %arg8[%374, %c0_101, %c0_102], %377 {strides = array<i32>} : memref<8x2x32xf32, #tpu.memory_space<vmem>>, vector<1x2x32xf32>,
    %378 = arith.index_cast %307 : i32 to index
    %c0_103 = arith.constant 0 : index
    %c0_104 = arith.constant 0 : index
    %379 = vector.load %arg9[%378, %c0_103, %c0_104] : memref<8x2x32xf32, #tpu.memory_space<vmem>>, vector<1x2x32xf32>
    %380 = vector.shape_cast %379 : vector<1x2x32xf32> to vector<2x32xf32>
    %381 = vector.shape_cast %373 : vector<2x32xf32> to vector<1x2x32xf32>
    tpu.vector_store %arg9[%378, %c0_103, %c0_104], %381 {strides = array<i32>} : memref<8x2x32xf32, #tpu.memory_space<vmem>>, vector<1x2x32xf32>,
    %c5_i32 = arith.constant 5 : i32
    %c7_i32_105 = arith.constant 7 : i32
    %382 = arith.subi %c7_i32_105, %c5_i32 : i32
    %383 = arith.index_cast %c5_i32 : i32 to index
    %c0_106 = arith.constant 0 : index
    %c0_107 = arith.constant 0 : index
    %384 = vector.load %arg1[%383, %c0_106, %c0_107] : memref<8x2x16xf32, #tpu.memory_space<vmem>>, vector<1x2x16xf32>
    %385 = vector.shape_cast %384 : vector<1x2x16xf32> to vector<2x16xf32>
    %386 = arith.index_cast %382 : i32 to index
    %c0_108 = arith.constant 0 : index
    %c0_109 = arith.constant 0 : index
    %387 = vector.load %arg1[%386, %c0_108, %c0_109] : memref<8x2x16xf32, #tpu.memory_space<vmem>>, vector<1x2x16xf32>
    %388 = vector.shape_cast %387 : vector<1x2x16xf32> to vector<2x16xf32>
    %cst_110 = arith.constant dense<0.000000e+00> : vector<2x128xf32>
    %389 = tpu.matmul %385, %0, %cst_110 {dimension_numbers = #tpu.dot_dimension_numbers<[1], [0], [0], [1], [0, 0, 1, 1], [], []>} : vector<2x16xf32>, vector<16x128xf32>, vector<2x128xf32> -> vector<2x128xf32>
    %cst_111 = arith.constant dense<0.000000e+00> : vector<2x128xf32>
    %390 = tpu.matmul %388, %3, %cst_111 {dimension_numbers = #tpu.dot_dimension_numbers<[1], [0], [0], [1], [0, 0, 1, 1], [], []>} : vector<2x16xf32>, vector<16x128xf32>, vector<2x128xf32> -> vector<2x128xf32>
    %cst_112 = arith.constant dense<0.000000e+00> : vector<2x128xf32>
    %391 = tpu.matmul %348, %1, %cst_112 {dimension_numbers = #tpu.dot_dimension_numbers<[1], [0], [0], [1], [0, 0, 1, 1], [], []>} : vector<2x32xf32>, vector<32x128xf32>, vector<2x128xf32> -> vector<2x128xf32>
    %cst_113 = arith.constant dense<0.000000e+00> : vector<2x128xf32>
    %392 = tpu.matmul %373, %4, %cst_113 {dimension_numbers = #tpu.dot_dimension_numbers<[1], [0], [0], [1], [0, 0, 1, 1], [], []>} : vector<2x32xf32>, vector<32x128xf32>, vector<2x128xf32> -> vector<2x128xf32>
    %393 = arith.addf %389, %391 : vector<2x128xf32>
    %394 = vector.broadcast %2 : vector<1x128xf32> to vector<2x128xf32>
    %395 = arith.addf %393, %394 : vector<2x128xf32>
    %396 = arith.addf %390, %392 : vector<2x128xf32>
    %397 = vector.broadcast %5 : vector<1x128xf32> to vector<2x128xf32>
    %398 = arith.addf %396, %397 : vector<2x128xf32>
    %399 = vector.extract_strided_slice %395 {offsets = [0, 0], sizes = [2, 32], strides = [1, 1]} : vector<2x128xf32> to vector<2x32xf32>
    %400 = arith.negf %399 : vector<2x32xf32>
    %401 = math.exp %400 : vector<2x32xf32>
    %cst_114 = arith.constant 1.000000e+00 : f32
    %402 = vector.broadcast %cst_114 : f32 to vector<2x32xf32>
    %403 = arith.addf %402, %401 : vector<2x32xf32>
    %404 = arith.divf %402, %403 : vector<2x32xf32>
    %405 = vector.extract_strided_slice %395 {offsets = [0, 32], sizes = [2, 32], strides = [1, 1]} : vector<2x128xf32> to vector<2x32xf32>
    %406 = arith.negf %405 : vector<2x32xf32>
    %407 = math.exp %406 : vector<2x32xf32>
    %cst_115 = arith.constant 1.000000e+00 : f32
    %408 = vector.broadcast %cst_115 : f32 to vector<2x32xf32>
    %409 = arith.addf %408, %407 : vector<2x32xf32>
    %410 = arith.divf %408, %409 : vector<2x32xf32>
    %411 = vector.extract_strided_slice %395 {offsets = [0, 64], sizes = [2, 32], strides = [1, 1]} : vector<2x128xf32> to vector<2x32xf32>
    %412 = math.tanh %411 : vector<2x32xf32>
    %413 = vector.extract_strided_slice %395 {offsets = [0, 96], sizes = [2, 32], strides = [1, 1]} : vector<2x128xf32> to vector<2x32xf32>
    %414 = arith.negf %413 : vector<2x32xf32>
    %415 = math.exp %414 : vector<2x32xf32>
    %cst_116 = arith.constant 1.000000e+00 : f32
    %416 = vector.broadcast %cst_116 : f32 to vector<2x32xf32>
    %417 = arith.addf %416, %415 : vector<2x32xf32>
    %418 = arith.divf %416, %417 : vector<2x32xf32>
    %419 = arith.mulf %410, %346 : vector<2x32xf32>
    %420 = arith.mulf %404, %412 : vector<2x32xf32>
    %421 = arith.addf %419, %420 : vector<2x32xf32>
    %422 = math.tanh %421 : vector<2x32xf32>
    %423 = arith.mulf %418, %422 : vector<2x32xf32>
    %424 = vector.extract_strided_slice %398 {offsets = [0, 0], sizes = [2, 32], strides = [1, 1]} : vector<2x128xf32> to vector<2x32xf32>
    %425 = arith.negf %424 : vector<2x32xf32>
    %426 = math.exp %425 : vector<2x32xf32>
    %cst_117 = arith.constant 1.000000e+00 : f32
    %427 = vector.broadcast %cst_117 : f32 to vector<2x32xf32>
    %428 = arith.addf %427, %426 : vector<2x32xf32>
    %429 = arith.divf %427, %428 : vector<2x32xf32>
    %430 = vector.extract_strided_slice %398 {offsets = [0, 32], sizes = [2, 32], strides = [1, 1]} : vector<2x128xf32> to vector<2x32xf32>
    %431 = arith.negf %430 : vector<2x32xf32>
    %432 = math.exp %431 : vector<2x32xf32>
    %cst_118 = arith.constant 1.000000e+00 : f32
    %433 = vector.broadcast %cst_118 : f32 to vector<2x32xf32>
    %434 = arith.addf %433, %432 : vector<2x32xf32>
    %435 = arith.divf %433, %434 : vector<2x32xf32>
    %436 = vector.extract_strided_slice %398 {offsets = [0, 64], sizes = [2, 32], strides = [1, 1]} : vector<2x128xf32> to vector<2x32xf32>
    %437 = math.tanh %436 : vector<2x32xf32>
    %438 = vector.extract_strided_slice %398 {offsets = [0, 96], sizes = [2, 32], strides = [1, 1]} : vector<2x128xf32> to vector<2x32xf32>
    %439 = arith.negf %438 : vector<2x32xf32>
    %440 = math.exp %439 : vector<2x32xf32>
    %cst_119 = arith.constant 1.000000e+00 : f32
    %441 = vector.broadcast %cst_119 : f32 to vector<2x32xf32>
    %442 = arith.addf %441, %440 : vector<2x32xf32>
    %443 = arith.divf %441, %442 : vector<2x32xf32>
    %444 = arith.mulf %435, %371 : vector<2x32xf32>
    %445 = arith.mulf %429, %437 : vector<2x32xf32>
    %446 = arith.addf %444, %445 : vector<2x32xf32>
    %447 = math.tanh %446 : vector<2x32xf32>
    %448 = arith.mulf %443, %447 : vector<2x32xf32>
    %449 = arith.index_cast %c5_i32 : i32 to index
    %c0_120 = arith.constant 0 : index
    %c0_121 = arith.constant 0 : index
    %450 = vector.load %arg8[%449, %c0_120, %c0_121] : memref<8x2x32xf32, #tpu.memory_space<vmem>>, vector<1x2x32xf32>
    %451 = vector.shape_cast %450 : vector<1x2x32xf32> to vector<2x32xf32>
    %452 = vector.shape_cast %423 : vector<2x32xf32> to vector<1x2x32xf32>
    tpu.vector_store %arg8[%449, %c0_120, %c0_121], %452 {strides = array<i32>} : memref<8x2x32xf32, #tpu.memory_space<vmem>>, vector<1x2x32xf32>,
    %453 = arith.index_cast %382 : i32 to index
    %c0_122 = arith.constant 0 : index
    %c0_123 = arith.constant 0 : index
    %454 = vector.load %arg9[%453, %c0_122, %c0_123] : memref<8x2x32xf32, #tpu.memory_space<vmem>>, vector<1x2x32xf32>
    %455 = vector.shape_cast %454 : vector<1x2x32xf32> to vector<2x32xf32>
    %456 = vector.shape_cast %448 : vector<2x32xf32> to vector<1x2x32xf32>
    tpu.vector_store %arg9[%453, %c0_122, %c0_123], %456 {strides = array<i32>} : memref<8x2x32xf32, #tpu.memory_space<vmem>>, vector<1x2x32xf32>,
    %c6_i32 = arith.constant 6 : i32
    %c7_i32_124 = arith.constant 7 : i32
    %457 = arith.subi %c7_i32_124, %c6_i32 : i32
    %458 = arith.index_cast %c6_i32 : i32 to index
    %c0_125 = arith.constant 0 : index
    %c0_126 = arith.constant 0 : index
    %459 = vector.load %arg1[%458, %c0_125, %c0_126] : memref<8x2x16xf32, #tpu.memory_space<vmem>>, vector<1x2x16xf32>
    %460 = vector.shape_cast %459 : vector<1x2x16xf32> to vector<2x16xf32>
    %461 = arith.index_cast %457 : i32 to index
    %c0_127 = arith.constant 0 : index
    %c0_128 = arith.constant 0 : index
    %462 = vector.load %arg1[%461, %c0_127, %c0_128] : memref<8x2x16xf32, #tpu.memory_space<vmem>>, vector<1x2x16xf32>
    %463 = vector.shape_cast %462 : vector<1x2x16xf32> to vector<2x16xf32>
    %cst_129 = arith.constant dense<0.000000e+00> : vector<2x128xf32>
    %464 = tpu.matmul %460, %0, %cst_129 {dimension_numbers = #tpu.dot_dimension_numbers<[1], [0], [0], [1], [0, 0, 1, 1], [], []>} : vector<2x16xf32>, vector<16x128xf32>, vector<2x128xf32> -> vector<2x128xf32>
    %cst_130 = arith.constant dense<0.000000e+00> : vector<2x128xf32>
    %465 = tpu.matmul %463, %3, %cst_130 {dimension_numbers = #tpu.dot_dimension_numbers<[1], [0], [0], [1], [0, 0, 1, 1], [], []>} : vector<2x16xf32>, vector<16x128xf32>, vector<2x128xf32> -> vector<2x128xf32>
    %cst_131 = arith.constant dense<0.000000e+00> : vector<2x128xf32>
    %466 = tpu.matmul %423, %1, %cst_131 {dimension_numbers = #tpu.dot_dimension_numbers<[1], [0], [0], [1], [0, 0, 1, 1], [], []>} : vector<2x32xf32>, vector<32x128xf32>, vector<2x128xf32> -> vector<2x128xf32>
    %cst_132 = arith.constant dense<0.000000e+00> : vector<2x128xf32>
    %467 = tpu.matmul %448, %4, %cst_132 {dimension_numbers = #tpu.dot_dimension_numbers<[1], [0], [0], [1], [0, 0, 1, 1], [], []>} : vector<2x32xf32>, vector<32x128xf32>, vector<2x128xf32> -> vector<2x128xf32>
    %468 = arith.addf %464, %466 : vector<2x128xf32>
    %469 = vector.broadcast %2 : vector<1x128xf32> to vector<2x128xf32>
    %470 = arith.addf %468, %469 : vector<2x128xf32>
    %471 = arith.addf %465, %467 : vector<2x128xf32>
    %472 = vector.broadcast %5 : vector<1x128xf32> to vector<2x128xf32>
    %473 = arith.addf %471, %472 : vector<2x128xf32>
    %474 = vector.extract_strided_slice %470 {offsets = [0, 0], sizes = [2, 32], strides = [1, 1]} : vector<2x128xf32> to vector<2x32xf32>
    %475 = arith.negf %474 : vector<2x32xf32>
    %476 = math.exp %475 : vector<2x32xf32>
    %cst_133 = arith.constant 1.000000e+00 : f32
    %477 = vector.broadcast %cst_133 : f32 to vector<2x32xf32>
    %478 = arith.addf %477, %476 : vector<2x32xf32>
    %479 = arith.divf %477, %478 : vector<2x32xf32>
    %480 = vector.extract_strided_slice %470 {offsets = [0, 32], sizes = [2, 32], strides = [1, 1]} : vector<2x128xf32> to vector<2x32xf32>
    %481 = arith.negf %480 : vector<2x32xf32>
    %482 = math.exp %481 : vector<2x32xf32>
    %cst_134 = arith.constant 1.000000e+00 : f32
    %483 = vector.broadcast %cst_134 : f32 to vector<2x32xf32>
    %484 = arith.addf %483, %482 : vector<2x32xf32>
    %485 = arith.divf %483, %484 : vector<2x32xf32>
    %486 = vector.extract_strided_slice %470 {offsets = [0, 64], sizes = [2, 32], strides = [1, 1]} : vector<2x128xf32> to vector<2x32xf32>
    %487 = math.tanh %486 : vector<2x32xf32>
    %488 = vector.extract_strided_slice %470 {offsets = [0, 96], sizes = [2, 32], strides = [1, 1]} : vector<2x128xf32> to vector<2x32xf32>
    %489 = arith.negf %488 : vector<2x32xf32>
    %490 = math.exp %489 : vector<2x32xf32>
    %cst_135 = arith.constant 1.000000e+00 : f32
    %491 = vector.broadcast %cst_135 : f32 to vector<2x32xf32>
    %492 = arith.addf %491, %490 : vector<2x32xf32>
    %493 = arith.divf %491, %492 : vector<2x32xf32>
    %494 = arith.mulf %485, %421 : vector<2x32xf32>
    %495 = arith.mulf %479, %487 : vector<2x32xf32>
    %496 = arith.addf %494, %495 : vector<2x32xf32>
    %497 = math.tanh %496 : vector<2x32xf32>
    %498 = arith.mulf %493, %497 : vector<2x32xf32>
    %499 = vector.extract_strided_slice %473 {offsets = [0, 0], sizes = [2, 32], strides = [1, 1]} : vector<2x128xf32> to vector<2x32xf32>
    %500 = arith.negf %499 : vector<2x32xf32>
    %501 = math.exp %500 : vector<2x32xf32>
    %cst_136 = arith.constant 1.000000e+00 : f32
    %502 = vector.broadcast %cst_136 : f32 to vector<2x32xf32>
    %503 = arith.addf %502, %501 : vector<2x32xf32>
    %504 = arith.divf %502, %503 : vector<2x32xf32>
    %505 = vector.extract_strided_slice %473 {offsets = [0, 32], sizes = [2, 32], strides = [1, 1]} : vector<2x128xf32> to vector<2x32xf32>
    %506 = arith.negf %505 : vector<2x32xf32>
    %507 = math.exp %506 : vector<2x32xf32>
    %cst_137 = arith.constant 1.000000e+00 : f32
    %508 = vector.broadcast %cst_137 : f32 to vector<2x32xf32>
    %509 = arith.addf %508, %507 : vector<2x32xf32>
    %510 = arith.divf %508, %509 : vector<2x32xf32>
    %511 = vector.extract_strided_slice %473 {offsets = [0, 64], sizes = [2, 32], strides = [1, 1]} : vector<2x128xf32> to vector<2x32xf32>
    %512 = math.tanh %511 : vector<2x32xf32>
    %513 = vector.extract_strided_slice %473 {offsets = [0, 96], sizes = [2, 32], strides = [1, 1]} : vector<2x128xf32> to vector<2x32xf32>
    %514 = arith.negf %513 : vector<2x32xf32>
    %515 = math.exp %514 : vector<2x32xf32>
    %cst_138 = arith.constant 1.000000e+00 : f32
    %516 = vector.broadcast %cst_138 : f32 to vector<2x32xf32>
    %517 = arith.addf %516, %515 : vector<2x32xf32>
    %518 = arith.divf %516, %517 : vector<2x32xf32>
    %519 = arith.mulf %510, %446 : vector<2x32xf32>
    %520 = arith.mulf %504, %512 : vector<2x32xf32>
    %521 = arith.addf %519, %520 : vector<2x32xf32>
    %522 = math.tanh %521 : vector<2x32xf32>
    %523 = arith.mulf %518, %522 : vector<2x32xf32>
    %524 = arith.index_cast %c6_i32 : i32 to index
    %c0_139 = arith.constant 0 : index
    %c0_140 = arith.constant 0 : index
    %525 = vector.load %arg8[%524, %c0_139, %c0_140] : memref<8x2x32xf32, #tpu.memory_space<vmem>>, vector<1x2x32xf32>
    %526 = vector.shape_cast %525 : vector<1x2x32xf32> to vector<2x32xf32>
    %527 = vector.shape_cast %498 : vector<2x32xf32> to vector<1x2x32xf32>
    tpu.vector_store %arg8[%524, %c0_139, %c0_140], %527 {strides = array<i32>} : memref<8x2x32xf32, #tpu.memory_space<vmem>>, vector<1x2x32xf32>,
    %528 = arith.index_cast %457 : i32 to index
    %c0_141 = arith.constant 0 : index
    %c0_142 = arith.constant 0 : index
    %529 = vector.load %arg9[%528, %c0_141, %c0_142] : memref<8x2x32xf32, #tpu.memory_space<vmem>>, vector<1x2x32xf32>
    %530 = vector.shape_cast %529 : vector<1x2x32xf32> to vector<2x32xf32>
    %531 = vector.shape_cast %523 : vector<2x32xf32> to vector<1x2x32xf32>
    tpu.vector_store %arg9[%528, %c0_141, %c0_142], %531 {strides = array<i32>} : memref<8x2x32xf32, #tpu.memory_space<vmem>>, vector<1x2x32xf32>,
    %c7_i32_143 = arith.constant 7 : i32
    %c7_i32_144 = arith.constant 7 : i32
    %532 = arith.subi %c7_i32_144, %c7_i32_143 : i32
    %533 = arith.index_cast %c7_i32_143 : i32 to index
    %c0_145 = arith.constant 0 : index
    %c0_146 = arith.constant 0 : index
    %534 = vector.load %arg1[%533, %c0_145, %c0_146] : memref<8x2x16xf32, #tpu.memory_space<vmem>>, vector<1x2x16xf32>
    %535 = vector.shape_cast %534 : vector<1x2x16xf32> to vector<2x16xf32>
    %536 = arith.index_cast %532 : i32 to index
    %c0_147 = arith.constant 0 : index
    %c0_148 = arith.constant 0 : index
    %537 = vector.load %arg1[%536, %c0_147, %c0_148] : memref<8x2x16xf32, #tpu.memory_space<vmem>>, vector<1x2x16xf32>
    %538 = vector.shape_cast %537 : vector<1x2x16xf32> to vector<2x16xf32>
    %cst_149 = arith.constant dense<0.000000e+00> : vector<2x128xf32>
    %539 = tpu.matmul %535, %0, %cst_149 {dimension_numbers = #tpu.dot_dimension_numbers<[1], [0], [0], [1], [0, 0, 1, 1], [], []>} : vector<2x16xf32>, vector<16x128xf32>, vector<2x128xf32> -> vector<2x128xf32>
    %cst_150 = arith.constant dense<0.000000e+00> : vector<2x128xf32>
    %540 = tpu.matmul %538, %3, %cst_150 {dimension_numbers = #tpu.dot_dimension_numbers<[1], [0], [0], [1], [0, 0, 1, 1], [], []>} : vector<2x16xf32>, vector<16x128xf32>, vector<2x128xf32> -> vector<2x128xf32>
    %cst_151 = arith.constant dense<0.000000e+00> : vector<2x128xf32>
    %541 = tpu.matmul %498, %1, %cst_151 {dimension_numbers = #tpu.dot_dimension_numbers<[1], [0], [0], [1], [0, 0, 1, 1], [], []>} : vector<2x32xf32>, vector<32x128xf32>, vector<2x128xf32> -> vector<2x128xf32>
    %cst_152 = arith.constant dense<0.000000e+00> : vector<2x128xf32>
    %542 = tpu.matmul %523, %4, %cst_152 {dimension_numbers = #tpu.dot_dimension_numbers<[1], [0], [0], [1], [0, 0, 1, 1], [], []>} : vector<2x32xf32>, vector<32x128xf32>, vector<2x128xf32> -> vector<2x128xf32>
    %543 = arith.addf %539, %541 : vector<2x128xf32>
    %544 = vector.broadcast %2 : vector<1x128xf32> to vector<2x128xf32>
    %545 = arith.addf %543, %544 : vector<2x128xf32>
    %546 = arith.addf %540, %542 : vector<2x128xf32>
    %547 = vector.broadcast %5 : vector<1x128xf32> to vector<2x128xf32>
    %548 = arith.addf %546, %547 : vector<2x128xf32>
    %549 = vector.extract_strided_slice %545 {offsets = [0, 0], sizes = [2, 32], strides = [1, 1]} : vector<2x128xf32> to vector<2x32xf32>
    %550 = arith.negf %549 : vector<2x32xf32>
    %551 = math.exp %550 : vector<2x32xf32>
    %cst_153 = arith.constant 1.000000e+00 : f32
    %552 = vector.broadcast %cst_153 : f32 to vector<2x32xf32>
    %553 = arith.addf %552, %551 : vector<2x32xf32>
    %554 = arith.divf %552, %553 : vector<2x32xf32>
    %555 = vector.extract_strided_slice %545 {offsets = [0, 32], sizes = [2, 32], strides = [1, 1]} : vector<2x128xf32> to vector<2x32xf32>
    %556 = arith.negf %555 : vector<2x32xf32>
    %557 = math.exp %556 : vector<2x32xf32>
    %cst_154 = arith.constant 1.000000e+00 : f32
    %558 = vector.broadcast %cst_154 : f32 to vector<2x32xf32>
    %559 = arith.addf %558, %557 : vector<2x32xf32>
    %560 = arith.divf %558, %559 : vector<2x32xf32>
    %561 = vector.extract_strided_slice %545 {offsets = [0, 64], sizes = [2, 32], strides = [1, 1]} : vector<2x128xf32> to vector<2x32xf32>
    %562 = math.tanh %561 : vector<2x32xf32>
    %563 = vector.extract_strided_slice %545 {offsets = [0, 96], sizes = [2, 32], strides = [1, 1]} : vector<2x128xf32> to vector<2x32xf32>
    %564 = arith.negf %563 : vector<2x32xf32>
    %565 = math.exp %564 : vector<2x32xf32>
    %cst_155 = arith.constant 1.000000e+00 : f32
    %566 = vector.broadcast %cst_155 : f32 to vector<2x32xf32>
    %567 = arith.addf %566, %565 : vector<2x32xf32>
    %568 = arith.divf %566, %567 : vector<2x32xf32>
    %569 = arith.mulf %560, %496 : vector<2x32xf32>
    %570 = arith.mulf %554, %562 : vector<2x32xf32>
    %571 = arith.addf %569, %570 : vector<2x32xf32>
    %572 = math.tanh %571 : vector<2x32xf32>
    %573 = arith.mulf %568, %572 : vector<2x32xf32>
    %574 = vector.extract_strided_slice %548 {offsets = [0, 0], sizes = [2, 32], strides = [1, 1]} : vector<2x128xf32> to vector<2x32xf32>
    %575 = arith.negf %574 : vector<2x32xf32>
    %576 = math.exp %575 : vector<2x32xf32>
    %cst_156 = arith.constant 1.000000e+00 : f32
    %577 = vector.broadcast %cst_156 : f32 to vector<2x32xf32>
    %578 = arith.addf %577, %576 : vector<2x32xf32>
    %579 = arith.divf %577, %578 : vector<2x32xf32>
    %580 = vector.extract_strided_slice %548 {offsets = [0, 32], sizes = [2, 32], strides = [1, 1]} : vector<2x128xf32> to vector<2x32xf32>
    %581 = arith.negf %580 : vector<2x32xf32>
    %582 = math.exp %581 : vector<2x32xf32>
    %cst_157 = arith.constant 1.000000e+00 : f32
    %583 = vector.broadcast %cst_157 : f32 to vector<2x32xf32>
    %584 = arith.addf %583, %582 : vector<2x32xf32>
    %585 = arith.divf %583, %584 : vector<2x32xf32>
    %586 = vector.extract_strided_slice %548 {offsets = [0, 64], sizes = [2, 32], strides = [1, 1]} : vector<2x128xf32> to vector<2x32xf32>
    %587 = math.tanh %586 : vector<2x32xf32>
    %588 = vector.extract_strided_slice %548 {offsets = [0, 96], sizes = [2, 32], strides = [1, 1]} : vector<2x128xf32> to vector<2x32xf32>
    %589 = arith.negf %588 : vector<2x32xf32>
    %590 = math.exp %589 : vector<2x32xf32>
    %cst_158 = arith.constant 1.000000e+00 : f32
    %591 = vector.broadcast %cst_158 : f32 to vector<2x32xf32>
    %592 = arith.addf %591, %590 : vector<2x32xf32>
    %593 = arith.divf %591, %592 : vector<2x32xf32>
    %594 = arith.mulf %585, %521 : vector<2x32xf32>
    %595 = arith.mulf %579, %587 : vector<2x32xf32>
    %596 = arith.addf %594, %595 : vector<2x32xf32>
    %597 = math.tanh %596 : vector<2x32xf32>
    %598 = arith.mulf %593, %597 : vector<2x32xf32>
    %599 = arith.index_cast %c7_i32_143 : i32 to index
    %c0_159 = arith.constant 0 : index
    %c0_160 = arith.constant 0 : index
    %600 = vector.load %arg8[%599, %c0_159, %c0_160] : memref<8x2x32xf32, #tpu.memory_space<vmem>>, vector<1x2x32xf32>
    %601 = vector.shape_cast %600 : vector<1x2x32xf32> to vector<2x32xf32>
    %602 = vector.shape_cast %573 : vector<2x32xf32> to vector<1x2x32xf32>
    tpu.vector_store %arg8[%599, %c0_159, %c0_160], %602 {strides = array<i32>} : memref<8x2x32xf32, #tpu.memory_space<vmem>>, vector<1x2x32xf32>,
    %603 = arith.index_cast %532 : i32 to index
    %c0_161 = arith.constant 0 : index
    %c0_162 = arith.constant 0 : index
    %604 = vector.load %arg9[%603, %c0_161, %c0_162] : memref<8x2x32xf32, #tpu.memory_space<vmem>>, vector<1x2x32xf32>
    %605 = vector.shape_cast %604 : vector<1x2x32xf32> to vector<2x32xf32>
    %606 = vector.shape_cast %598 : vector<2x32xf32> to vector<1x2x32xf32>
    tpu.vector_store %arg9[%603, %c0_161, %c0_162], %606 {strides = array<i32>} : memref<8x2x32xf32, #tpu.memory_space<vmem>>, vector<1x2x32xf32>,
    %c8_i32 = arith.constant 8 : i32
    return
  }
  func.func @transform_0(%arg0: i32) -> (i32, i32, i32) {
    %c0_i32 = arith.constant 0 : i32
    %c0_i32_0 = arith.constant 0 : i32
    %c0_i32_1 = arith.constant 0 : i32
    %c0_i32_2 = arith.constant 0 : i32
    return %c0_i32, %c0_i32_0, %c0_i32_1 : i32, i32, i32
  }
  func.func @transform_1(%arg0: i32) -> (i32, i32) {
    %c0_i32 = arith.constant 0 : i32
    %c0_i32_0 = arith.constant 0 : i32
    %c0_i32_1 = arith.constant 0 : i32
    return %c0_i32, %c0_i32_0 : i32, i32
  }
  func.func @transform_2(%arg0: i32) -> (i32, i32) {
    %c0_i32 = arith.constant 0 : i32
    %c0_i32_0 = arith.constant 0 : i32
    %c0_i32_1 = arith.constant 0 : i32
    return %c0_i32, %c0_i32_0 : i32, i32
  }
  func.func @transform_3(%arg0: i32) -> (i32, i32) {
    %c0_i32 = arith.constant 0 : i32
    %c0_i32_0 = arith.constant 0 : i32
    %c0_i32_1 = arith.constant 0 : i32
    return %c0_i32, %c0_i32_0 : i32, i32
  }
  func.func @transform_4(%arg0: i32) -> (i32, i32) {
    %c0_i32 = arith.constant 0 : i32
    %c0_i32_0 = arith.constant 0 : i32
    %c0_i32_1 = arith.constant 0 : i32
    return %c0_i32, %c0_i32_0 : i32, i32
  }
  func.func @transform_5(%arg0: i32) -> (i32, i32) {
    %c0_i32 = arith.constant 0 : i32
    %c0_i32_0 = arith.constant 0 : i32
    %c0_i32_1 = arith.constant 0 : i32
    return %c0_i32, %c0_i32_0 : i32, i32
  }
  func.func @transform_6(%arg0: i32) -> (i32, i32) {
    %c0_i32 = arith.constant 0 : i32
    %c0_i32_0 = arith.constant 0 : i32
    %c0_i32_1 = arith.constant 0 : i32
    return %c0_i32, %c0_i32_0 : i32, i32
  }
  func.func @transform_7(%arg0: i32) -> (i32, i32, i32) {
    %c0_i32 = arith.constant 0 : i32
    %c0_i32_0 = arith.constant 0 : i32
    %c0_i32_1 = arith.constant 0 : i32
    %c0_i32_2 = arith.constant 0 : i32
    return %c0_i32, %c0_i32_0, %c0_i32_1 : i32, i32, i32
  }
  func.func @transform_8(%arg0: i32) -> (i32, i32, i32) {
    %c0_i32 = arith.constant 0 : i32
    %c0_i32_0 = arith.constant 0 : i32
    %c0_i32_1 = arith.constant 0 : i32
    %c0_i32_2 = arith.constant 0 : i32
    return %c0_i32, %c0_i32_0, %c0_i32_1 : i32, i32, i32
  }
}

module attributes {stable_mosaic.version = 11 : i64} {
  func.func @_bilstm_layer_kernel(%arg0: i32, %arg1: memref<8x2x64xf32, #tpu.memory_space<vmem>>, %arg2: memref<64x128xf32, #tpu.memory_space<vmem>>, %arg3: memref<32x128xf32, #tpu.memory_space<vmem>>, %arg4: memref<1x128xf32, #tpu.memory_space<vmem>>, %arg5: memref<64x128xf32, #tpu.memory_space<vmem>>, %arg6: memref<32x128xf32, #tpu.memory_space<vmem>>, %arg7: memref<1x128xf32, #tpu.memory_space<vmem>>, %arg8: memref<8x2x32xf32, #tpu.memory_space<vmem>>, %arg9: memref<8x2x32xf32, #tpu.memory_space<vmem>>) attributes {dimension_semantics = [#tpu.dimension_semantics<arbitrary>], iteration_bounds = array<i64: 1>, scalar_prefetch = 0 : i64, scratch_operands = 0 : i64, tpu.core_type = #tpu.core_type<tc>, window_params = [{pipeline_mode = #tpu.pipeline_mode<synchronous>, transform_indices = @transform_0, window_bounds = array<i64: 8, 2, 64>}, {pipeline_mode = #tpu.pipeline_mode<synchronous>, transform_indices = @transform_1, window_bounds = array<i64: 64, 128>}, {pipeline_mode = #tpu.pipeline_mode<synchronous>, transform_indices = @transform_2, window_bounds = array<i64: 32, 128>}, {pipeline_mode = #tpu.pipeline_mode<synchronous>, transform_indices = @transform_3, window_bounds = array<i64: 1, 128>}, {pipeline_mode = #tpu.pipeline_mode<synchronous>, transform_indices = @transform_4, window_bounds = array<i64: 64, 128>}, {pipeline_mode = #tpu.pipeline_mode<synchronous>, transform_indices = @transform_5, window_bounds = array<i64: 32, 128>}, {pipeline_mode = #tpu.pipeline_mode<synchronous>, transform_indices = @transform_6, window_bounds = array<i64: 1, 128>}, {pipeline_mode = #tpu.pipeline_mode<synchronous>, transform_indices = @transform_7, window_bounds = array<i64: 8, 2, 32>}, {pipeline_mode = #tpu.pipeline_mode<synchronous>, transform_indices = @transform_8, window_bounds = array<i64: 8, 2, 32>}]} {
    %c0 = arith.constant 0 : index
    %c0_0 = arith.constant 0 : index
    %0 = vector.load %arg2[%c0, %c0_0] : memref<64x128xf32, #tpu.memory_space<vmem>>, vector<64x128xf32>
    %c0_1 = arith.constant 0 : index
    %c0_2 = arith.constant 0 : index
    %1 = vector.load %arg3[%c0_1, %c0_2] : memref<32x128xf32, #tpu.memory_space<vmem>>, vector<32x128xf32>
    %c0_3 = arith.constant 0 : index
    %c0_4 = arith.constant 0 : index
    %2 = vector.load %arg4[%c0_3, %c0_4] : memref<1x128xf32, #tpu.memory_space<vmem>>, vector<1x128xf32>
    %c0_5 = arith.constant 0 : index
    %c0_6 = arith.constant 0 : index
    %3 = vector.load %arg5[%c0_5, %c0_6] : memref<64x128xf32, #tpu.memory_space<vmem>>, vector<64x128xf32>
    %c0_7 = arith.constant 0 : index
    %c0_8 = arith.constant 0 : index
    %4 = vector.load %arg6[%c0_7, %c0_8] : memref<32x128xf32, #tpu.memory_space<vmem>>, vector<32x128xf32>
    %c0_9 = arith.constant 0 : index
    %c0_10 = arith.constant 0 : index
    %5 = vector.load %arg7[%c0_9, %c0_10] : memref<1x128xf32, #tpu.memory_space<vmem>>, vector<1x128xf32>
    %cst = arith.constant 0.000000e+00 : f32
    %6 = vector.broadcast %cst : f32 to vector<2x32xf32>
    %c0_i32 = arith.constant 0 : i32
    %c7_i32 = arith.constant 7 : i32
    %7 = arith.subi %c7_i32, %c0_i32 : i32
    %8 = arith.index_cast %c0_i32 : i32 to index
    %c0_11 = arith.constant 0 : index
    %c0_12 = arith.constant 0 : index
    %9 = vector.load %arg1[%8, %c0_11, %c0_12] : memref<8x2x64xf32, #tpu.memory_space<vmem>>, vector<1x2x64xf32>
    %10 = vector.shape_cast %9 : vector<1x2x64xf32> to vector<2x64xf32>
    %11 = arith.index_cast %7 : i32 to index
    %c0_13 = arith.constant 0 : index
    %c0_14 = arith.constant 0 : index
    %12 = vector.load %arg1[%11, %c0_13, %c0_14] : memref<8x2x64xf32, #tpu.memory_space<vmem>>, vector<1x2x64xf32>
    %13 = vector.shape_cast %12 : vector<1x2x64xf32> to vector<2x64xf32>
    %cst_15 = arith.constant dense<0.000000e+00> : vector<2x128xf32>
    %14 = tpu.matmul %10, %0, %cst_15 {dimension_numbers = #tpu.dot_dimension_numbers<[1], [0], [0], [1], [0, 0, 1, 1], [], []>} : vector<2x64xf32>, vector<64x128xf32>, vector<2x128xf32> -> vector<2x128xf32>
    %cst_16 = arith.constant dense<0.000000e+00> : vector<2x128xf32>
    %15 = tpu.matmul %13, %3, %cst_16 {dimension_numbers = #tpu.dot_dimension_numbers<[1], [0], [0], [1], [0, 0, 1, 1], [], []>} : vector<2x64xf32>, vector<64x128xf32>, vector<2x128xf32> -> vector<2x128xf32>
    %cst_17 = arith.constant dense<0.000000e+00> : vector<2x128xf32>
    %16 = tpu.matmul %6, %1, %cst_17 {dimension_numbers = #tpu.dot_dimension_numbers<[1], [0], [0], [1], [0, 0, 1, 1], [], []>} : vector<2x32xf32>, vector<32x128xf32>, vector<2x128xf32> -> vector<2x128xf32>
    %cst_18 = arith.constant dense<0.000000e+00> : vector<2x128xf32>
    %17 = tpu.matmul %6, %4, %cst_18 {dimension_numbers = #tpu.dot_dimension_numbers<[1], [0], [0], [1], [0, 0, 1, 1], [], []>} : vector<2x32xf32>, vector<32x128xf32>, vector<2x128xf32> -> vector<2x128xf32>
    %18 = arith.addf %14, %16 : vector<2x128xf32>
    %19 = vector.broadcast %2 : vector<1x128xf32> to vector<2x128xf32>
    %20 = arith.addf %18, %19 : vector<2x128xf32>
    %21 = arith.addf %15, %17 : vector<2x128xf32>
    %22 = vector.broadcast %5 : vector<1x128xf32> to vector<2x128xf32>
    %23 = arith.addf %21, %22 : vector<2x128xf32>
    %24 = vector.extract_strided_slice %20 {offsets = [0, 0], sizes = [2, 32], strides = [1, 1]} : vector<2x128xf32> to vector<2x32xf32>
    %25 = arith.negf %24 : vector<2x32xf32>
    %26 = math.exp %25 : vector<2x32xf32>
    %cst_19 = arith.constant 1.000000e+00 : f32
    %27 = vector.broadcast %cst_19 : f32 to vector<2x32xf32>
    %28 = arith.addf %27, %26 : vector<2x32xf32>
    %29 = arith.divf %27, %28 : vector<2x32xf32>
    %30 = vector.extract_strided_slice %20 {offsets = [0, 32], sizes = [2, 32], strides = [1, 1]} : vector<2x128xf32> to vector<2x32xf32>
    %31 = arith.negf %30 : vector<2x32xf32>
    %32 = math.exp %31 : vector<2x32xf32>
    %cst_20 = arith.constant 1.000000e+00 : f32
    %33 = vector.broadcast %cst_20 : f32 to vector<2x32xf32>
    %34 = arith.addf %33, %32 : vector<2x32xf32>
    %35 = arith.divf %33, %34 : vector<2x32xf32>
    %36 = vector.extract_strided_slice %20 {offsets = [0, 64], sizes = [2, 32], strides = [1, 1]} : vector<2x128xf32> to vector<2x32xf32>
    %37 = math.tanh %36 : vector<2x32xf32>
    %38 = vector.extract_strided_slice %20 {offsets = [0, 96], sizes = [2, 32], strides = [1, 1]} : vector<2x128xf32> to vector<2x32xf32>
    %39 = arith.negf %38 : vector<2x32xf32>
    %40 = math.exp %39 : vector<2x32xf32>
    %cst_21 = arith.constant 1.000000e+00 : f32
    %41 = vector.broadcast %cst_21 : f32 to vector<2x32xf32>
    %42 = arith.addf %41, %40 : vector<2x32xf32>
    %43 = arith.divf %41, %42 : vector<2x32xf32>
    %44 = arith.mulf %35, %6 : vector<2x32xf32>
    %45 = arith.mulf %29, %37 : vector<2x32xf32>
    %46 = arith.addf %44, %45 : vector<2x32xf32>
    %47 = math.tanh %46 : vector<2x32xf32>
    %48 = arith.mulf %43, %47 : vector<2x32xf32>
    %49 = vector.extract_strided_slice %23 {offsets = [0, 0], sizes = [2, 32], strides = [1, 1]} : vector<2x128xf32> to vector<2x32xf32>
    %50 = arith.negf %49 : vector<2x32xf32>
    %51 = math.exp %50 : vector<2x32xf32>
    %cst_22 = arith.constant 1.000000e+00 : f32
    %52 = vector.broadcast %cst_22 : f32 to vector<2x32xf32>
    %53 = arith.addf %52, %51 : vector<2x32xf32>
    %54 = arith.divf %52, %53 : vector<2x32xf32>
    %55 = vector.extract_strided_slice %23 {offsets = [0, 32], sizes = [2, 32], strides = [1, 1]} : vector<2x128xf32> to vector<2x32xf32>
    %56 = arith.negf %55 : vector<2x32xf32>
    %57 = math.exp %56 : vector<2x32xf32>
    %cst_23 = arith.constant 1.000000e+00 : f32
    %58 = vector.broadcast %cst_23 : f32 to vector<2x32xf32>
    %59 = arith.addf %58, %57 : vector<2x32xf32>
    %60 = arith.divf %58, %59 : vector<2x32xf32>
    %61 = vector.extract_strided_slice %23 {offsets = [0, 64], sizes = [2, 32], strides = [1, 1]} : vector<2x128xf32> to vector<2x32xf32>
    %62 = math.tanh %61 : vector<2x32xf32>
    %63 = vector.extract_strided_slice %23 {offsets = [0, 96], sizes = [2, 32], strides = [1, 1]} : vector<2x128xf32> to vector<2x32xf32>
    %64 = arith.negf %63 : vector<2x32xf32>
    %65 = math.exp %64 : vector<2x32xf32>
    %cst_24 = arith.constant 1.000000e+00 : f32
    %66 = vector.broadcast %cst_24 : f32 to vector<2x32xf32>
    %67 = arith.addf %66, %65 : vector<2x32xf32>
    %68 = arith.divf %66, %67 : vector<2x32xf32>
    %69 = arith.mulf %60, %6 : vector<2x32xf32>
    %70 = arith.mulf %54, %62 : vector<2x32xf32>
    %71 = arith.addf %69, %70 : vector<2x32xf32>
    %72 = math.tanh %71 : vector<2x32xf32>
    %73 = arith.mulf %68, %72 : vector<2x32xf32>
    %74 = arith.index_cast %c0_i32 : i32 to index
    %c0_25 = arith.constant 0 : index
    %c0_26 = arith.constant 0 : index
    %75 = vector.load %arg8[%74, %c0_25, %c0_26] : memref<8x2x32xf32, #tpu.memory_space<vmem>>, vector<1x2x32xf32>
    %76 = vector.shape_cast %75 : vector<1x2x32xf32> to vector<2x32xf32>
    %77 = vector.shape_cast %48 : vector<2x32xf32> to vector<1x2x32xf32>
    tpu.vector_store %arg8[%74, %c0_25, %c0_26], %77 {strides = array<i32>} : memref<8x2x32xf32, #tpu.memory_space<vmem>>, vector<1x2x32xf32>,
    %78 = arith.index_cast %7 : i32 to index
    %c0_27 = arith.constant 0 : index
    %c0_28 = arith.constant 0 : index
    %79 = vector.load %arg9[%78, %c0_27, %c0_28] : memref<8x2x32xf32, #tpu.memory_space<vmem>>, vector<1x2x32xf32>
    %80 = vector.shape_cast %79 : vector<1x2x32xf32> to vector<2x32xf32>
    %81 = vector.shape_cast %73 : vector<2x32xf32> to vector<1x2x32xf32>
    tpu.vector_store %arg9[%78, %c0_27, %c0_28], %81 {strides = array<i32>} : memref<8x2x32xf32, #tpu.memory_space<vmem>>, vector<1x2x32xf32>,
    %c1_i32 = arith.constant 1 : i32
    %c7_i32_29 = arith.constant 7 : i32
    %82 = arith.subi %c7_i32_29, %c1_i32 : i32
    %83 = arith.index_cast %c1_i32 : i32 to index
    %c0_30 = arith.constant 0 : index
    %c0_31 = arith.constant 0 : index
    %84 = vector.load %arg1[%83, %c0_30, %c0_31] : memref<8x2x64xf32, #tpu.memory_space<vmem>>, vector<1x2x64xf32>
    %85 = vector.shape_cast %84 : vector<1x2x64xf32> to vector<2x64xf32>
    %86 = arith.index_cast %82 : i32 to index
    %c0_32 = arith.constant 0 : index
    %c0_33 = arith.constant 0 : index
    %87 = vector.load %arg1[%86, %c0_32, %c0_33] : memref<8x2x64xf32, #tpu.memory_space<vmem>>, vector<1x2x64xf32>
    %88 = vector.shape_cast %87 : vector<1x2x64xf32> to vector<2x64xf32>
    %cst_34 = arith.constant dense<0.000000e+00> : vector<2x128xf32>
    %89 = tpu.matmul %85, %0, %cst_34 {dimension_numbers = #tpu.dot_dimension_numbers<[1], [0], [0], [1], [0, 0, 1, 1], [], []>} : vector<2x64xf32>, vector<64x128xf32>, vector<2x128xf32> -> vector<2x128xf32>
    %cst_35 = arith.constant dense<0.000000e+00> : vector<2x128xf32>
    %90 = tpu.matmul %88, %3, %cst_35 {dimension_numbers = #tpu.dot_dimension_numbers<[1], [0], [0], [1], [0, 0, 1, 1], [], []>} : vector<2x64xf32>, vector<64x128xf32>, vector<2x128xf32> -> vector<2x128xf32>
    %cst_36 = arith.constant dense<0.000000e+00> : vector<2x128xf32>
    %91 = tpu.matmul %48, %1, %cst_36 {dimension_numbers = #tpu.dot_dimension_numbers<[1], [0], [0], [1], [0, 0, 1, 1], [], []>} : vector<2x32xf32>, vector<32x128xf32>, vector<2x128xf32> -> vector<2x128xf32>
    %cst_37 = arith.constant dense<0.000000e+00> : vector<2x128xf32>
    %92 = tpu.matmul %73, %4, %cst_37 {dimension_numbers = #tpu.dot_dimension_numbers<[1], [0], [0], [1], [0, 0, 1, 1], [], []>} : vector<2x32xf32>, vector<32x128xf32>, vector<2x128xf32> -> vector<2x128xf32>
    %93 = arith.addf %89, %91 : vector<2x128xf32>
    %94 = vector.broadcast %2 : vector<1x128xf32> to vector<2x128xf32>
    %95 = arith.addf %93, %94 : vector<2x128xf32>
    %96 = arith.addf %90, %92 : vector<2x128xf32>
    %97 = vector.broadcast %5 : vector<1x128xf32> to vector<2x128xf32>
    %98 = arith.addf %96, %97 : vector<2x128xf32>
    %99 = vector.extract_strided_slice %95 {offsets = [0, 0], sizes = [2, 32], strides = [1, 1]} : vector<2x128xf32> to vector<2x32xf32>
    %100 = arith.negf %99 : vector<2x32xf32>
    %101 = math.exp %100 : vector<2x32xf32>
    %cst_38 = arith.constant 1.000000e+00 : f32
    %102 = vector.broadcast %cst_38 : f32 to vector<2x32xf32>
    %103 = arith.addf %102, %101 : vector<2x32xf32>
    %104 = arith.divf %102, %103 : vector<2x32xf32>
    %105 = vector.extract_strided_slice %95 {offsets = [0, 32], sizes = [2, 32], strides = [1, 1]} : vector<2x128xf32> to vector<2x32xf32>
    %106 = arith.negf %105 : vector<2x32xf32>
    %107 = math.exp %106 : vector<2x32xf32>
    %cst_39 = arith.constant 1.000000e+00 : f32
    %108 = vector.broadcast %cst_39 : f32 to vector<2x32xf32>
    %109 = arith.addf %108, %107 : vector<2x32xf32>
    %110 = arith.divf %108, %109 : vector<2x32xf32>
    %111 = vector.extract_strided_slice %95 {offsets = [0, 64], sizes = [2, 32], strides = [1, 1]} : vector<2x128xf32> to vector<2x32xf32>
    %112 = math.tanh %111 : vector<2x32xf32>
    %113 = vector.extract_strided_slice %95 {offsets = [0, 96], sizes = [2, 32], strides = [1, 1]} : vector<2x128xf32> to vector<2x32xf32>
    %114 = arith.negf %113 : vector<2x32xf32>
    %115 = math.exp %114 : vector<2x32xf32>
    %cst_40 = arith.constant 1.000000e+00 : f32
    %116 = vector.broadcast %cst_40 : f32 to vector<2x32xf32>
    %117 = arith.addf %116, %115 : vector<2x32xf32>
    %118 = arith.divf %116, %117 : vector<2x32xf32>
    %119 = arith.mulf %110, %46 : vector<2x32xf32>
    %120 = arith.mulf %104, %112 : vector<2x32xf32>
    %121 = arith.addf %119, %120 : vector<2x32xf32>
    %122 = math.tanh %121 : vector<2x32xf32>
    %123 = arith.mulf %118, %122 : vector<2x32xf32>
    %124 = vector.extract_strided_slice %98 {offsets = [0, 0], sizes = [2, 32], strides = [1, 1]} : vector<2x128xf32> to vector<2x32xf32>
    %125 = arith.negf %124 : vector<2x32xf32>
    %126 = math.exp %125 : vector<2x32xf32>
    %cst_41 = arith.constant 1.000000e+00 : f32
    %127 = vector.broadcast %cst_41 : f32 to vector<2x32xf32>
    %128 = arith.addf %127, %126 : vector<2x32xf32>
    %129 = arith.divf %127, %128 : vector<2x32xf32>
    %130 = vector.extract_strided_slice %98 {offsets = [0, 32], sizes = [2, 32], strides = [1, 1]} : vector<2x128xf32> to vector<2x32xf32>
    %131 = arith.negf %130 : vector<2x32xf32>
    %132 = math.exp %131 : vector<2x32xf32>
    %cst_42 = arith.constant 1.000000e+00 : f32
    %133 = vector.broadcast %cst_42 : f32 to vector<2x32xf32>
    %134 = arith.addf %133, %132 : vector<2x32xf32>
    %135 = arith.divf %133, %134 : vector<2x32xf32>
    %136 = vector.extract_strided_slice %98 {offsets = [0, 64], sizes = [2, 32], strides = [1, 1]} : vector<2x128xf32> to vector<2x32xf32>
    %137 = math.tanh %136 : vector<2x32xf32>
    %138 = vector.extract_strided_slice %98 {offsets = [0, 96], sizes = [2, 32], strides = [1, 1]} : vector<2x128xf32> to vector<2x32xf32>
    %139 = arith.negf %138 : vector<2x32xf32>
    %140 = math.exp %139 : vector<2x32xf32>
    %cst_43 = arith.constant 1.000000e+00 : f32
    %141 = vector.broadcast %cst_43 : f32 to vector<2x32xf32>
    %142 = arith.addf %141, %140 : vector<2x32xf32>
    %143 = arith.divf %141, %142 : vector<2x32xf32>
    %144 = arith.mulf %135, %71 : vector<2x32xf32>
    %145 = arith.mulf %129, %137 : vector<2x32xf32>
    %146 = arith.addf %144, %145 : vector<2x32xf32>
    %147 = math.tanh %146 : vector<2x32xf32>
    %148 = arith.mulf %143, %147 : vector<2x32xf32>
    %149 = arith.index_cast %c1_i32 : i32 to index
    %c0_44 = arith.constant 0 : index
    %c0_45 = arith.constant 0 : index
    %150 = vector.load %arg8[%149, %c0_44, %c0_45] : memref<8x2x32xf32, #tpu.memory_space<vmem>>, vector<1x2x32xf32>
    %151 = vector.shape_cast %150 : vector<1x2x32xf32> to vector<2x32xf32>
    %152 = vector.shape_cast %123 : vector<2x32xf32> to vector<1x2x32xf32>
    tpu.vector_store %arg8[%149, %c0_44, %c0_45], %152 {strides = array<i32>} : memref<8x2x32xf32, #tpu.memory_space<vmem>>, vector<1x2x32xf32>,
    %153 = arith.index_cast %82 : i32 to index
    %c0_46 = arith.constant 0 : index
    %c0_47 = arith.constant 0 : index
    %154 = vector.load %arg9[%153, %c0_46, %c0_47] : memref<8x2x32xf32, #tpu.memory_space<vmem>>, vector<1x2x32xf32>
    %155 = vector.shape_cast %154 : vector<1x2x32xf32> to vector<2x32xf32>
    %156 = vector.shape_cast %148 : vector<2x32xf32> to vector<1x2x32xf32>
    tpu.vector_store %arg9[%153, %c0_46, %c0_47], %156 {strides = array<i32>} : memref<8x2x32xf32, #tpu.memory_space<vmem>>, vector<1x2x32xf32>,
    %c2_i32 = arith.constant 2 : i32
    %c7_i32_48 = arith.constant 7 : i32
    %157 = arith.subi %c7_i32_48, %c2_i32 : i32
    %158 = arith.index_cast %c2_i32 : i32 to index
    %c0_49 = arith.constant 0 : index
    %c0_50 = arith.constant 0 : index
    %159 = vector.load %arg1[%158, %c0_49, %c0_50] : memref<8x2x64xf32, #tpu.memory_space<vmem>>, vector<1x2x64xf32>
    %160 = vector.shape_cast %159 : vector<1x2x64xf32> to vector<2x64xf32>
    %161 = arith.index_cast %157 : i32 to index
    %c0_51 = arith.constant 0 : index
    %c0_52 = arith.constant 0 : index
    %162 = vector.load %arg1[%161, %c0_51, %c0_52] : memref<8x2x64xf32, #tpu.memory_space<vmem>>, vector<1x2x64xf32>
    %163 = vector.shape_cast %162 : vector<1x2x64xf32> to vector<2x64xf32>
    %cst_53 = arith.constant dense<0.000000e+00> : vector<2x128xf32>
    %164 = tpu.matmul %160, %0, %cst_53 {dimension_numbers = #tpu.dot_dimension_numbers<[1], [0], [0], [1], [0, 0, 1, 1], [], []>} : vector<2x64xf32>, vector<64x128xf32>, vector<2x128xf32> -> vector<2x128xf32>
    %cst_54 = arith.constant dense<0.000000e+00> : vector<2x128xf32>
    %165 = tpu.matmul %163, %3, %cst_54 {dimension_numbers = #tpu.dot_dimension_numbers<[1], [0], [0], [1], [0, 0, 1, 1], [], []>} : vector<2x64xf32>, vector<64x128xf32>, vector<2x128xf32> -> vector<2x128xf32>
    %cst_55 = arith.constant dense<0.000000e+00> : vector<2x128xf32>
    %166 = tpu.matmul %123, %1, %cst_55 {dimension_numbers = #tpu.dot_dimension_numbers<[1], [0], [0], [1], [0, 0, 1, 1], [], []>} : vector<2x32xf32>, vector<32x128xf32>, vector<2x128xf32> -> vector<2x128xf32>
    %cst_56 = arith.constant dense<0.000000e+00> : vector<2x128xf32>
    %167 = tpu.matmul %148, %4, %cst_56 {dimension_numbers = #tpu.dot_dimension_numbers<[1], [0], [0], [1], [0, 0, 1, 1], [], []>} : vector<2x32xf32>, vector<32x128xf32>, vector<2x128xf32> -> vector<2x128xf32>
    %168 = arith.addf %164, %166 : vector<2x128xf32>
    %169 = vector.broadcast %2 : vector<1x128xf32> to vector<2x128xf32>
    %170 = arith.addf %168, %169 : vector<2x128xf32>
    %171 = arith.addf %165, %167 : vector<2x128xf32>
    %172 = vector.broadcast %5 : vector<1x128xf32> to vector<2x128xf32>
    %173 = arith.addf %171, %172 : vector<2x128xf32>
    %174 = vector.extract_strided_slice %170 {offsets = [0, 0], sizes = [2, 32], strides = [1, 1]} : vector<2x128xf32> to vector<2x32xf32>
    %175 = arith.negf %174 : vector<2x32xf32>
    %176 = math.exp %175 : vector<2x32xf32>
    %cst_57 = arith.constant 1.000000e+00 : f32
    %177 = vector.broadcast %cst_57 : f32 to vector<2x32xf32>
    %178 = arith.addf %177, %176 : vector<2x32xf32>
    %179 = arith.divf %177, %178 : vector<2x32xf32>
    %180 = vector.extract_strided_slice %170 {offsets = [0, 32], sizes = [2, 32], strides = [1, 1]} : vector<2x128xf32> to vector<2x32xf32>
    %181 = arith.negf %180 : vector<2x32xf32>
    %182 = math.exp %181 : vector<2x32xf32>
    %cst_58 = arith.constant 1.000000e+00 : f32
    %183 = vector.broadcast %cst_58 : f32 to vector<2x32xf32>
    %184 = arith.addf %183, %182 : vector<2x32xf32>
    %185 = arith.divf %183, %184 : vector<2x32xf32>
    %186 = vector.extract_strided_slice %170 {offsets = [0, 64], sizes = [2, 32], strides = [1, 1]} : vector<2x128xf32> to vector<2x32xf32>
    %187 = math.tanh %186 : vector<2x32xf32>
    %188 = vector.extract_strided_slice %170 {offsets = [0, 96], sizes = [2, 32], strides = [1, 1]} : vector<2x128xf32> to vector<2x32xf32>
    %189 = arith.negf %188 : vector<2x32xf32>
    %190 = math.exp %189 : vector<2x32xf32>
    %cst_59 = arith.constant 1.000000e+00 : f32
    %191 = vector.broadcast %cst_59 : f32 to vector<2x32xf32>
    %192 = arith.addf %191, %190 : vector<2x32xf32>
    %193 = arith.divf %191, %192 : vector<2x32xf32>
    %194 = arith.mulf %185, %121 : vector<2x32xf32>
    %195 = arith.mulf %179, %187 : vector<2x32xf32>
    %196 = arith.addf %194, %195 : vector<2x32xf32>
    %197 = math.tanh %196 : vector<2x32xf32>
    %198 = arith.mulf %193, %197 : vector<2x32xf32>
    %199 = vector.extract_strided_slice %173 {offsets = [0, 0], sizes = [2, 32], strides = [1, 1]} : vector<2x128xf32> to vector<2x32xf32>
    %200 = arith.negf %199 : vector<2x32xf32>
    %201 = math.exp %200 : vector<2x32xf32>
    %cst_60 = arith.constant 1.000000e+00 : f32
    %202 = vector.broadcast %cst_60 : f32 to vector<2x32xf32>
    %203 = arith.addf %202, %201 : vector<2x32xf32>
    %204 = arith.divf %202, %203 : vector<2x32xf32>
    %205 = vector.extract_strided_slice %173 {offsets = [0, 32], sizes = [2, 32], strides = [1, 1]} : vector<2x128xf32> to vector<2x32xf32>
    %206 = arith.negf %205 : vector<2x32xf32>
    %207 = math.exp %206 : vector<2x32xf32>
    %cst_61 = arith.constant 1.000000e+00 : f32
    %208 = vector.broadcast %cst_61 : f32 to vector<2x32xf32>
    %209 = arith.addf %208, %207 : vector<2x32xf32>
    %210 = arith.divf %208, %209 : vector<2x32xf32>
    %211 = vector.extract_strided_slice %173 {offsets = [0, 64], sizes = [2, 32], strides = [1, 1]} : vector<2x128xf32> to vector<2x32xf32>
    %212 = math.tanh %211 : vector<2x32xf32>
    %213 = vector.extract_strided_slice %173 {offsets = [0, 96], sizes = [2, 32], strides = [1, 1]} : vector<2x128xf32> to vector<2x32xf32>
    %214 = arith.negf %213 : vector<2x32xf32>
    %215 = math.exp %214 : vector<2x32xf32>
    %cst_62 = arith.constant 1.000000e+00 : f32
    %216 = vector.broadcast %cst_62 : f32 to vector<2x32xf32>
    %217 = arith.addf %216, %215 : vector<2x32xf32>
    %218 = arith.divf %216, %217 : vector<2x32xf32>
    %219 = arith.mulf %210, %146 : vector<2x32xf32>
    %220 = arith.mulf %204, %212 : vector<2x32xf32>
    %221 = arith.addf %219, %220 : vector<2x32xf32>
    %222 = math.tanh %221 : vector<2x32xf32>
    %223 = arith.mulf %218, %222 : vector<2x32xf32>
    %224 = arith.index_cast %c2_i32 : i32 to index
    %c0_63 = arith.constant 0 : index
    %c0_64 = arith.constant 0 : index
    %225 = vector.load %arg8[%224, %c0_63, %c0_64] : memref<8x2x32xf32, #tpu.memory_space<vmem>>, vector<1x2x32xf32>
    %226 = vector.shape_cast %225 : vector<1x2x32xf32> to vector<2x32xf32>
    %227 = vector.shape_cast %198 : vector<2x32xf32> to vector<1x2x32xf32>
    tpu.vector_store %arg8[%224, %c0_63, %c0_64], %227 {strides = array<i32>} : memref<8x2x32xf32, #tpu.memory_space<vmem>>, vector<1x2x32xf32>,
    %228 = arith.index_cast %157 : i32 to index
    %c0_65 = arith.constant 0 : index
    %c0_66 = arith.constant 0 : index
    %229 = vector.load %arg9[%228, %c0_65, %c0_66] : memref<8x2x32xf32, #tpu.memory_space<vmem>>, vector<1x2x32xf32>
    %230 = vector.shape_cast %229 : vector<1x2x32xf32> to vector<2x32xf32>
    %231 = vector.shape_cast %223 : vector<2x32xf32> to vector<1x2x32xf32>
    tpu.vector_store %arg9[%228, %c0_65, %c0_66], %231 {strides = array<i32>} : memref<8x2x32xf32, #tpu.memory_space<vmem>>, vector<1x2x32xf32>,
    %c3_i32 = arith.constant 3 : i32
    %c7_i32_67 = arith.constant 7 : i32
    %232 = arith.subi %c7_i32_67, %c3_i32 : i32
    %233 = arith.index_cast %c3_i32 : i32 to index
    %c0_68 = arith.constant 0 : index
    %c0_69 = arith.constant 0 : index
    %234 = vector.load %arg1[%233, %c0_68, %c0_69] : memref<8x2x64xf32, #tpu.memory_space<vmem>>, vector<1x2x64xf32>
    %235 = vector.shape_cast %234 : vector<1x2x64xf32> to vector<2x64xf32>
    %236 = arith.index_cast %232 : i32 to index
    %c0_70 = arith.constant 0 : index
    %c0_71 = arith.constant 0 : index
    %237 = vector.load %arg1[%236, %c0_70, %c0_71] : memref<8x2x64xf32, #tpu.memory_space<vmem>>, vector<1x2x64xf32>
    %238 = vector.shape_cast %237 : vector<1x2x64xf32> to vector<2x64xf32>
    %cst_72 = arith.constant dense<0.000000e+00> : vector<2x128xf32>
    %239 = tpu.matmul %235, %0, %cst_72 {dimension_numbers = #tpu.dot_dimension_numbers<[1], [0], [0], [1], [0, 0, 1, 1], [], []>} : vector<2x64xf32>, vector<64x128xf32>, vector<2x128xf32> -> vector<2x128xf32>
    %cst_73 = arith.constant dense<0.000000e+00> : vector<2x128xf32>
    %240 = tpu.matmul %238, %3, %cst_73 {dimension_numbers = #tpu.dot_dimension_numbers<[1], [0], [0], [1], [0, 0, 1, 1], [], []>} : vector<2x64xf32>, vector<64x128xf32>, vector<2x128xf32> -> vector<2x128xf32>
    %cst_74 = arith.constant dense<0.000000e+00> : vector<2x128xf32>
    %241 = tpu.matmul %198, %1, %cst_74 {dimension_numbers = #tpu.dot_dimension_numbers<[1], [0], [0], [1], [0, 0, 1, 1], [], []>} : vector<2x32xf32>, vector<32x128xf32>, vector<2x128xf32> -> vector<2x128xf32>
    %cst_75 = arith.constant dense<0.000000e+00> : vector<2x128xf32>
    %242 = tpu.matmul %223, %4, %cst_75 {dimension_numbers = #tpu.dot_dimension_numbers<[1], [0], [0], [1], [0, 0, 1, 1], [], []>} : vector<2x32xf32>, vector<32x128xf32>, vector<2x128xf32> -> vector<2x128xf32>
    %243 = arith.addf %239, %241 : vector<2x128xf32>
    %244 = vector.broadcast %2 : vector<1x128xf32> to vector<2x128xf32>
    %245 = arith.addf %243, %244 : vector<2x128xf32>
    %246 = arith.addf %240, %242 : vector<2x128xf32>
    %247 = vector.broadcast %5 : vector<1x128xf32> to vector<2x128xf32>
    %248 = arith.addf %246, %247 : vector<2x128xf32>
    %249 = vector.extract_strided_slice %245 {offsets = [0, 0], sizes = [2, 32], strides = [1, 1]} : vector<2x128xf32> to vector<2x32xf32>
    %250 = arith.negf %249 : vector<2x32xf32>
    %251 = math.exp %250 : vector<2x32xf32>
    %cst_76 = arith.constant 1.000000e+00 : f32
    %252 = vector.broadcast %cst_76 : f32 to vector<2x32xf32>
    %253 = arith.addf %252, %251 : vector<2x32xf32>
    %254 = arith.divf %252, %253 : vector<2x32xf32>
    %255 = vector.extract_strided_slice %245 {offsets = [0, 32], sizes = [2, 32], strides = [1, 1]} : vector<2x128xf32> to vector<2x32xf32>
    %256 = arith.negf %255 : vector<2x32xf32>
    %257 = math.exp %256 : vector<2x32xf32>
    %cst_77 = arith.constant 1.000000e+00 : f32
    %258 = vector.broadcast %cst_77 : f32 to vector<2x32xf32>
    %259 = arith.addf %258, %257 : vector<2x32xf32>
    %260 = arith.divf %258, %259 : vector<2x32xf32>
    %261 = vector.extract_strided_slice %245 {offsets = [0, 64], sizes = [2, 32], strides = [1, 1]} : vector<2x128xf32> to vector<2x32xf32>
    %262 = math.tanh %261 : vector<2x32xf32>
    %263 = vector.extract_strided_slice %245 {offsets = [0, 96], sizes = [2, 32], strides = [1, 1]} : vector<2x128xf32> to vector<2x32xf32>
    %264 = arith.negf %263 : vector<2x32xf32>
    %265 = math.exp %264 : vector<2x32xf32>
    %cst_78 = arith.constant 1.000000e+00 : f32
    %266 = vector.broadcast %cst_78 : f32 to vector<2x32xf32>
    %267 = arith.addf %266, %265 : vector<2x32xf32>
    %268 = arith.divf %266, %267 : vector<2x32xf32>
    %269 = arith.mulf %260, %196 : vector<2x32xf32>
    %270 = arith.mulf %254, %262 : vector<2x32xf32>
    %271 = arith.addf %269, %270 : vector<2x32xf32>
    %272 = math.tanh %271 : vector<2x32xf32>
    %273 = arith.mulf %268, %272 : vector<2x32xf32>
    %274 = vector.extract_strided_slice %248 {offsets = [0, 0], sizes = [2, 32], strides = [1, 1]} : vector<2x128xf32> to vector<2x32xf32>
    %275 = arith.negf %274 : vector<2x32xf32>
    %276 = math.exp %275 : vector<2x32xf32>
    %cst_79 = arith.constant 1.000000e+00 : f32
    %277 = vector.broadcast %cst_79 : f32 to vector<2x32xf32>
    %278 = arith.addf %277, %276 : vector<2x32xf32>
    %279 = arith.divf %277, %278 : vector<2x32xf32>
    %280 = vector.extract_strided_slice %248 {offsets = [0, 32], sizes = [2, 32], strides = [1, 1]} : vector<2x128xf32> to vector<2x32xf32>
    %281 = arith.negf %280 : vector<2x32xf32>
    %282 = math.exp %281 : vector<2x32xf32>
    %cst_80 = arith.constant 1.000000e+00 : f32
    %283 = vector.broadcast %cst_80 : f32 to vector<2x32xf32>
    %284 = arith.addf %283, %282 : vector<2x32xf32>
    %285 = arith.divf %283, %284 : vector<2x32xf32>
    %286 = vector.extract_strided_slice %248 {offsets = [0, 64], sizes = [2, 32], strides = [1, 1]} : vector<2x128xf32> to vector<2x32xf32>
    %287 = math.tanh %286 : vector<2x32xf32>
    %288 = vector.extract_strided_slice %248 {offsets = [0, 96], sizes = [2, 32], strides = [1, 1]} : vector<2x128xf32> to vector<2x32xf32>
    %289 = arith.negf %288 : vector<2x32xf32>
    %290 = math.exp %289 : vector<2x32xf32>
    %cst_81 = arith.constant 1.000000e+00 : f32
    %291 = vector.broadcast %cst_81 : f32 to vector<2x32xf32>
    %292 = arith.addf %291, %290 : vector<2x32xf32>
    %293 = arith.divf %291, %292 : vector<2x32xf32>
    %294 = arith.mulf %285, %221 : vector<2x32xf32>
    %295 = arith.mulf %279, %287 : vector<2x32xf32>
    %296 = arith.addf %294, %295 : vector<2x32xf32>
    %297 = math.tanh %296 : vector<2x32xf32>
    %298 = arith.mulf %293, %297 : vector<2x32xf32>
    %299 = arith.index_cast %c3_i32 : i32 to index
    %c0_82 = arith.constant 0 : index
    %c0_83 = arith.constant 0 : index
    %300 = vector.load %arg8[%299, %c0_82, %c0_83] : memref<8x2x32xf32, #tpu.memory_space<vmem>>, vector<1x2x32xf32>
    %301 = vector.shape_cast %300 : vector<1x2x32xf32> to vector<2x32xf32>
    %302 = vector.shape_cast %273 : vector<2x32xf32> to vector<1x2x32xf32>
    tpu.vector_store %arg8[%299, %c0_82, %c0_83], %302 {strides = array<i32>} : memref<8x2x32xf32, #tpu.memory_space<vmem>>, vector<1x2x32xf32>,
    %303 = arith.index_cast %232 : i32 to index
    %c0_84 = arith.constant 0 : index
    %c0_85 = arith.constant 0 : index
    %304 = vector.load %arg9[%303, %c0_84, %c0_85] : memref<8x2x32xf32, #tpu.memory_space<vmem>>, vector<1x2x32xf32>
    %305 = vector.shape_cast %304 : vector<1x2x32xf32> to vector<2x32xf32>
    %306 = vector.shape_cast %298 : vector<2x32xf32> to vector<1x2x32xf32>
    tpu.vector_store %arg9[%303, %c0_84, %c0_85], %306 {strides = array<i32>} : memref<8x2x32xf32, #tpu.memory_space<vmem>>, vector<1x2x32xf32>,
    %c4_i32 = arith.constant 4 : i32
    %c7_i32_86 = arith.constant 7 : i32
    %307 = arith.subi %c7_i32_86, %c4_i32 : i32
    %308 = arith.index_cast %c4_i32 : i32 to index
    %c0_87 = arith.constant 0 : index
    %c0_88 = arith.constant 0 : index
    %309 = vector.load %arg1[%308, %c0_87, %c0_88] : memref<8x2x64xf32, #tpu.memory_space<vmem>>, vector<1x2x64xf32>
    %310 = vector.shape_cast %309 : vector<1x2x64xf32> to vector<2x64xf32>
    %311 = arith.index_cast %307 : i32 to index
    %c0_89 = arith.constant 0 : index
    %c0_90 = arith.constant 0 : index
    %312 = vector.load %arg1[%311, %c0_89, %c0_90] : memref<8x2x64xf32, #tpu.memory_space<vmem>>, vector<1x2x64xf32>
    %313 = vector.shape_cast %312 : vector<1x2x64xf32> to vector<2x64xf32>
    %cst_91 = arith.constant dense<0.000000e+00> : vector<2x128xf32>
    %314 = tpu.matmul %310, %0, %cst_91 {dimension_numbers = #tpu.dot_dimension_numbers<[1], [0], [0], [1], [0, 0, 1, 1], [], []>} : vector<2x64xf32>, vector<64x128xf32>, vector<2x128xf32> -> vector<2x128xf32>
    %cst_92 = arith.constant dense<0.000000e+00> : vector<2x128xf32>
    %315 = tpu.matmul %313, %3, %cst_92 {dimension_numbers = #tpu.dot_dimension_numbers<[1], [0], [0], [1], [0, 0, 1, 1], [], []>} : vector<2x64xf32>, vector<64x128xf32>, vector<2x128xf32> -> vector<2x128xf32>
    %cst_93 = arith.constant dense<0.000000e+00> : vector<2x128xf32>
    %316 = tpu.matmul %273, %1, %cst_93 {dimension_numbers = #tpu.dot_dimension_numbers<[1], [0], [0], [1], [0, 0, 1, 1], [], []>} : vector<2x32xf32>, vector<32x128xf32>, vector<2x128xf32> -> vector<2x128xf32>
    %cst_94 = arith.constant dense<0.000000e+00> : vector<2x128xf32>
    %317 = tpu.matmul %298, %4, %cst_94 {dimension_numbers = #tpu.dot_dimension_numbers<[1], [0], [0], [1], [0, 0, 1, 1], [], []>} : vector<2x32xf32>, vector<32x128xf32>, vector<2x128xf32> -> vector<2x128xf32>
    %318 = arith.addf %314, %316 : vector<2x128xf32>
    %319 = vector.broadcast %2 : vector<1x128xf32> to vector<2x128xf32>
    %320 = arith.addf %318, %319 : vector<2x128xf32>
    %321 = arith.addf %315, %317 : vector<2x128xf32>
    %322 = vector.broadcast %5 : vector<1x128xf32> to vector<2x128xf32>
    %323 = arith.addf %321, %322 : vector<2x128xf32>
    %324 = vector.extract_strided_slice %320 {offsets = [0, 0], sizes = [2, 32], strides = [1, 1]} : vector<2x128xf32> to vector<2x32xf32>
    %325 = arith.negf %324 : vector<2x32xf32>
    %326 = math.exp %325 : vector<2x32xf32>
    %cst_95 = arith.constant 1.000000e+00 : f32
    %327 = vector.broadcast %cst_95 : f32 to vector<2x32xf32>
    %328 = arith.addf %327, %326 : vector<2x32xf32>
    %329 = arith.divf %327, %328 : vector<2x32xf32>
    %330 = vector.extract_strided_slice %320 {offsets = [0, 32], sizes = [2, 32], strides = [1, 1]} : vector<2x128xf32> to vector<2x32xf32>
    %331 = arith.negf %330 : vector<2x32xf32>
    %332 = math.exp %331 : vector<2x32xf32>
    %cst_96 = arith.constant 1.000000e+00 : f32
    %333 = vector.broadcast %cst_96 : f32 to vector<2x32xf32>
    %334 = arith.addf %333, %332 : vector<2x32xf32>
    %335 = arith.divf %333, %334 : vector<2x32xf32>
    %336 = vector.extract_strided_slice %320 {offsets = [0, 64], sizes = [2, 32], strides = [1, 1]} : vector<2x128xf32> to vector<2x32xf32>
    %337 = math.tanh %336 : vector<2x32xf32>
    %338 = vector.extract_strided_slice %320 {offsets = [0, 96], sizes = [2, 32], strides = [1, 1]} : vector<2x128xf32> to vector<2x32xf32>
    %339 = arith.negf %338 : vector<2x32xf32>
    %340 = math.exp %339 : vector<2x32xf32>
    %cst_97 = arith.constant 1.000000e+00 : f32
    %341 = vector.broadcast %cst_97 : f32 to vector<2x32xf32>
    %342 = arith.addf %341, %340 : vector<2x32xf32>
    %343 = arith.divf %341, %342 : vector<2x32xf32>
    %344 = arith.mulf %335, %271 : vector<2x32xf32>
    %345 = arith.mulf %329, %337 : vector<2x32xf32>
    %346 = arith.addf %344, %345 : vector<2x32xf32>
    %347 = math.tanh %346 : vector<2x32xf32>
    %348 = arith.mulf %343, %347 : vector<2x32xf32>
    %349 = vector.extract_strided_slice %323 {offsets = [0, 0], sizes = [2, 32], strides = [1, 1]} : vector<2x128xf32> to vector<2x32xf32>
    %350 = arith.negf %349 : vector<2x32xf32>
    %351 = math.exp %350 : vector<2x32xf32>
    %cst_98 = arith.constant 1.000000e+00 : f32
    %352 = vector.broadcast %cst_98 : f32 to vector<2x32xf32>
    %353 = arith.addf %352, %351 : vector<2x32xf32>
    %354 = arith.divf %352, %353 : vector<2x32xf32>
    %355 = vector.extract_strided_slice %323 {offsets = [0, 32], sizes = [2, 32], strides = [1, 1]} : vector<2x128xf32> to vector<2x32xf32>
    %356 = arith.negf %355 : vector<2x32xf32>
    %357 = math.exp %356 : vector<2x32xf32>
    %cst_99 = arith.constant 1.000000e+00 : f32
    %358 = vector.broadcast %cst_99 : f32 to vector<2x32xf32>
    %359 = arith.addf %358, %357 : vector<2x32xf32>
    %360 = arith.divf %358, %359 : vector<2x32xf32>
    %361 = vector.extract_strided_slice %323 {offsets = [0, 64], sizes = [2, 32], strides = [1, 1]} : vector<2x128xf32> to vector<2x32xf32>
    %362 = math.tanh %361 : vector<2x32xf32>
    %363 = vector.extract_strided_slice %323 {offsets = [0, 96], sizes = [2, 32], strides = [1, 1]} : vector<2x128xf32> to vector<2x32xf32>
    %364 = arith.negf %363 : vector<2x32xf32>
    %365 = math.exp %364 : vector<2x32xf32>
    %cst_100 = arith.constant 1.000000e+00 : f32
    %366 = vector.broadcast %cst_100 : f32 to vector<2x32xf32>
    %367 = arith.addf %366, %365 : vector<2x32xf32>
    %368 = arith.divf %366, %367 : vector<2x32xf32>
    %369 = arith.mulf %360, %296 : vector<2x32xf32>
    %370 = arith.mulf %354, %362 : vector<2x32xf32>
    %371 = arith.addf %369, %370 : vector<2x32xf32>
    %372 = math.tanh %371 : vector<2x32xf32>
    %373 = arith.mulf %368, %372 : vector<2x32xf32>
    %374 = arith.index_cast %c4_i32 : i32 to index
    %c0_101 = arith.constant 0 : index
    %c0_102 = arith.constant 0 : index
    %375 = vector.load %arg8[%374, %c0_101, %c0_102] : memref<8x2x32xf32, #tpu.memory_space<vmem>>, vector<1x2x32xf32>
    %376 = vector.shape_cast %375 : vector<1x2x32xf32> to vector<2x32xf32>
    %377 = vector.shape_cast %348 : vector<2x32xf32> to vector<1x2x32xf32>
    tpu.vector_store %arg8[%374, %c0_101, %c0_102], %377 {strides = array<i32>} : memref<8x2x32xf32, #tpu.memory_space<vmem>>, vector<1x2x32xf32>,
    %378 = arith.index_cast %307 : i32 to index
    %c0_103 = arith.constant 0 : index
    %c0_104 = arith.constant 0 : index
    %379 = vector.load %arg9[%378, %c0_103, %c0_104] : memref<8x2x32xf32, #tpu.memory_space<vmem>>, vector<1x2x32xf32>
    %380 = vector.shape_cast %379 : vector<1x2x32xf32> to vector<2x32xf32>
    %381 = vector.shape_cast %373 : vector<2x32xf32> to vector<1x2x32xf32>
    tpu.vector_store %arg9[%378, %c0_103, %c0_104], %381 {strides = array<i32>} : memref<8x2x32xf32, #tpu.memory_space<vmem>>, vector<1x2x32xf32>,
    %c5_i32 = arith.constant 5 : i32
    %c7_i32_105 = arith.constant 7 : i32
    %382 = arith.subi %c7_i32_105, %c5_i32 : i32
    %383 = arith.index_cast %c5_i32 : i32 to index
    %c0_106 = arith.constant 0 : index
    %c0_107 = arith.constant 0 : index
    %384 = vector.load %arg1[%383, %c0_106, %c0_107] : memref<8x2x64xf32, #tpu.memory_space<vmem>>, vector<1x2x64xf32>
    %385 = vector.shape_cast %384 : vector<1x2x64xf32> to vector<2x64xf32>
    %386 = arith.index_cast %382 : i32 to index
    %c0_108 = arith.constant 0 : index
    %c0_109 = arith.constant 0 : index
    %387 = vector.load %arg1[%386, %c0_108, %c0_109] : memref<8x2x64xf32, #tpu.memory_space<vmem>>, vector<1x2x64xf32>
    %388 = vector.shape_cast %387 : vector<1x2x64xf32> to vector<2x64xf32>
    %cst_110 = arith.constant dense<0.000000e+00> : vector<2x128xf32>
    %389 = tpu.matmul %385, %0, %cst_110 {dimension_numbers = #tpu.dot_dimension_numbers<[1], [0], [0], [1], [0, 0, 1, 1], [], []>} : vector<2x64xf32>, vector<64x128xf32>, vector<2x128xf32> -> vector<2x128xf32>
    %cst_111 = arith.constant dense<0.000000e+00> : vector<2x128xf32>
    %390 = tpu.matmul %388, %3, %cst_111 {dimension_numbers = #tpu.dot_dimension_numbers<[1], [0], [0], [1], [0, 0, 1, 1], [], []>} : vector<2x64xf32>, vector<64x128xf32>, vector<2x128xf32> -> vector<2x128xf32>
    %cst_112 = arith.constant dense<0.000000e+00> : vector<2x128xf32>
    %391 = tpu.matmul %348, %1, %cst_112 {dimension_numbers = #tpu.dot_dimension_numbers<[1], [0], [0], [1], [0, 0, 1, 1], [], []>} : vector<2x32xf32>, vector<32x128xf32>, vector<2x128xf32> -> vector<2x128xf32>
    %cst_113 = arith.constant dense<0.000000e+00> : vector<2x128xf32>
    %392 = tpu.matmul %373, %4, %cst_113 {dimension_numbers = #tpu.dot_dimension_numbers<[1], [0], [0], [1], [0, 0, 1, 1], [], []>} : vector<2x32xf32>, vector<32x128xf32>, vector<2x128xf32> -> vector<2x128xf32>
    %393 = arith.addf %389, %391 : vector<2x128xf32>
    %394 = vector.broadcast %2 : vector<1x128xf32> to vector<2x128xf32>
    %395 = arith.addf %393, %394 : vector<2x128xf32>
    %396 = arith.addf %390, %392 : vector<2x128xf32>
    %397 = vector.broadcast %5 : vector<1x128xf32> to vector<2x128xf32>
    %398 = arith.addf %396, %397 : vector<2x128xf32>
    %399 = vector.extract_strided_slice %395 {offsets = [0, 0], sizes = [2, 32], strides = [1, 1]} : vector<2x128xf32> to vector<2x32xf32>
    %400 = arith.negf %399 : vector<2x32xf32>
    %401 = math.exp %400 : vector<2x32xf32>
    %cst_114 = arith.constant 1.000000e+00 : f32
    %402 = vector.broadcast %cst_114 : f32 to vector<2x32xf32>
    %403 = arith.addf %402, %401 : vector<2x32xf32>
    %404 = arith.divf %402, %403 : vector<2x32xf32>
    %405 = vector.extract_strided_slice %395 {offsets = [0, 32], sizes = [2, 32], strides = [1, 1]} : vector<2x128xf32> to vector<2x32xf32>
    %406 = arith.negf %405 : vector<2x32xf32>
    %407 = math.exp %406 : vector<2x32xf32>
    %cst_115 = arith.constant 1.000000e+00 : f32
    %408 = vector.broadcast %cst_115 : f32 to vector<2x32xf32>
    %409 = arith.addf %408, %407 : vector<2x32xf32>
    %410 = arith.divf %408, %409 : vector<2x32xf32>
    %411 = vector.extract_strided_slice %395 {offsets = [0, 64], sizes = [2, 32], strides = [1, 1]} : vector<2x128xf32> to vector<2x32xf32>
    %412 = math.tanh %411 : vector<2x32xf32>
    %413 = vector.extract_strided_slice %395 {offsets = [0, 96], sizes = [2, 32], strides = [1, 1]} : vector<2x128xf32> to vector<2x32xf32>
    %414 = arith.negf %413 : vector<2x32xf32>
    %415 = math.exp %414 : vector<2x32xf32>
    %cst_116 = arith.constant 1.000000e+00 : f32
    %416 = vector.broadcast %cst_116 : f32 to vector<2x32xf32>
    %417 = arith.addf %416, %415 : vector<2x32xf32>
    %418 = arith.divf %416, %417 : vector<2x32xf32>
    %419 = arith.mulf %410, %346 : vector<2x32xf32>
    %420 = arith.mulf %404, %412 : vector<2x32xf32>
    %421 = arith.addf %419, %420 : vector<2x32xf32>
    %422 = math.tanh %421 : vector<2x32xf32>
    %423 = arith.mulf %418, %422 : vector<2x32xf32>
    %424 = vector.extract_strided_slice %398 {offsets = [0, 0], sizes = [2, 32], strides = [1, 1]} : vector<2x128xf32> to vector<2x32xf32>
    %425 = arith.negf %424 : vector<2x32xf32>
    %426 = math.exp %425 : vector<2x32xf32>
    %cst_117 = arith.constant 1.000000e+00 : f32
    %427 = vector.broadcast %cst_117 : f32 to vector<2x32xf32>
    %428 = arith.addf %427, %426 : vector<2x32xf32>
    %429 = arith.divf %427, %428 : vector<2x32xf32>
    %430 = vector.extract_strided_slice %398 {offsets = [0, 32], sizes = [2, 32], strides = [1, 1]} : vector<2x128xf32> to vector<2x32xf32>
    %431 = arith.negf %430 : vector<2x32xf32>
    %432 = math.exp %431 : vector<2x32xf32>
    %cst_118 = arith.constant 1.000000e+00 : f32
    %433 = vector.broadcast %cst_118 : f32 to vector<2x32xf32>
    %434 = arith.addf %433, %432 : vector<2x32xf32>
    %435 = arith.divf %433, %434 : vector<2x32xf32>
    %436 = vector.extract_strided_slice %398 {offsets = [0, 64], sizes = [2, 32], strides = [1, 1]} : vector<2x128xf32> to vector<2x32xf32>
    %437 = math.tanh %436 : vector<2x32xf32>
    %438 = vector.extract_strided_slice %398 {offsets = [0, 96], sizes = [2, 32], strides = [1, 1]} : vector<2x128xf32> to vector<2x32xf32>
    %439 = arith.negf %438 : vector<2x32xf32>
    %440 = math.exp %439 : vector<2x32xf32>
    %cst_119 = arith.constant 1.000000e+00 : f32
    %441 = vector.broadcast %cst_119 : f32 to vector<2x32xf32>
    %442 = arith.addf %441, %440 : vector<2x32xf32>
    %443 = arith.divf %441, %442 : vector<2x32xf32>
    %444 = arith.mulf %435, %371 : vector<2x32xf32>
    %445 = arith.mulf %429, %437 : vector<2x32xf32>
    %446 = arith.addf %444, %445 : vector<2x32xf32>
    %447 = math.tanh %446 : vector<2x32xf32>
    %448 = arith.mulf %443, %447 : vector<2x32xf32>
    %449 = arith.index_cast %c5_i32 : i32 to index
    %c0_120 = arith.constant 0 : index
    %c0_121 = arith.constant 0 : index
    %450 = vector.load %arg8[%449, %c0_120, %c0_121] : memref<8x2x32xf32, #tpu.memory_space<vmem>>, vector<1x2x32xf32>
    %451 = vector.shape_cast %450 : vector<1x2x32xf32> to vector<2x32xf32>
    %452 = vector.shape_cast %423 : vector<2x32xf32> to vector<1x2x32xf32>
    tpu.vector_store %arg8[%449, %c0_120, %c0_121], %452 {strides = array<i32>} : memref<8x2x32xf32, #tpu.memory_space<vmem>>, vector<1x2x32xf32>,
    %453 = arith.index_cast %382 : i32 to index
    %c0_122 = arith.constant 0 : index
    %c0_123 = arith.constant 0 : index
    %454 = vector.load %arg9[%453, %c0_122, %c0_123] : memref<8x2x32xf32, #tpu.memory_space<vmem>>, vector<1x2x32xf32>
    %455 = vector.shape_cast %454 : vector<1x2x32xf32> to vector<2x32xf32>
    %456 = vector.shape_cast %448 : vector<2x32xf32> to vector<1x2x32xf32>
    tpu.vector_store %arg9[%453, %c0_122, %c0_123], %456 {strides = array<i32>} : memref<8x2x32xf32, #tpu.memory_space<vmem>>, vector<1x2x32xf32>,
    %c6_i32 = arith.constant 6 : i32
    %c7_i32_124 = arith.constant 7 : i32
    %457 = arith.subi %c7_i32_124, %c6_i32 : i32
    %458 = arith.index_cast %c6_i32 : i32 to index
    %c0_125 = arith.constant 0 : index
    %c0_126 = arith.constant 0 : index
    %459 = vector.load %arg1[%458, %c0_125, %c0_126] : memref<8x2x64xf32, #tpu.memory_space<vmem>>, vector<1x2x64xf32>
    %460 = vector.shape_cast %459 : vector<1x2x64xf32> to vector<2x64xf32>
    %461 = arith.index_cast %457 : i32 to index
    %c0_127 = arith.constant 0 : index
    %c0_128 = arith.constant 0 : index
    %462 = vector.load %arg1[%461, %c0_127, %c0_128] : memref<8x2x64xf32, #tpu.memory_space<vmem>>, vector<1x2x64xf32>
    %463 = vector.shape_cast %462 : vector<1x2x64xf32> to vector<2x64xf32>
    %cst_129 = arith.constant dense<0.000000e+00> : vector<2x128xf32>
    %464 = tpu.matmul %460, %0, %cst_129 {dimension_numbers = #tpu.dot_dimension_numbers<[1], [0], [0], [1], [0, 0, 1, 1], [], []>} : vector<2x64xf32>, vector<64x128xf32>, vector<2x128xf32> -> vector<2x128xf32>
    %cst_130 = arith.constant dense<0.000000e+00> : vector<2x128xf32>
    %465 = tpu.matmul %463, %3, %cst_130 {dimension_numbers = #tpu.dot_dimension_numbers<[1], [0], [0], [1], [0, 0, 1, 1], [], []>} : vector<2x64xf32>, vector<64x128xf32>, vector<2x128xf32> -> vector<2x128xf32>
    %cst_131 = arith.constant dense<0.000000e+00> : vector<2x128xf32>
    %466 = tpu.matmul %423, %1, %cst_131 {dimension_numbers = #tpu.dot_dimension_numbers<[1], [0], [0], [1], [0, 0, 1, 1], [], []>} : vector<2x32xf32>, vector<32x128xf32>, vector<2x128xf32> -> vector<2x128xf32>
    %cst_132 = arith.constant dense<0.000000e+00> : vector<2x128xf32>
    %467 = tpu.matmul %448, %4, %cst_132 {dimension_numbers = #tpu.dot_dimension_numbers<[1], [0], [0], [1], [0, 0, 1, 1], [], []>} : vector<2x32xf32>, vector<32x128xf32>, vector<2x128xf32> -> vector<2x128xf32>
    %468 = arith.addf %464, %466 : vector<2x128xf32>
    %469 = vector.broadcast %2 : vector<1x128xf32> to vector<2x128xf32>
    %470 = arith.addf %468, %469 : vector<2x128xf32>
    %471 = arith.addf %465, %467 : vector<2x128xf32>
    %472 = vector.broadcast %5 : vector<1x128xf32> to vector<2x128xf32>
    %473 = arith.addf %471, %472 : vector<2x128xf32>
    %474 = vector.extract_strided_slice %470 {offsets = [0, 0], sizes = [2, 32], strides = [1, 1]} : vector<2x128xf32> to vector<2x32xf32>
    %475 = arith.negf %474 : vector<2x32xf32>
    %476 = math.exp %475 : vector<2x32xf32>
    %cst_133 = arith.constant 1.000000e+00 : f32
    %477 = vector.broadcast %cst_133 : f32 to vector<2x32xf32>
    %478 = arith.addf %477, %476 : vector<2x32xf32>
    %479 = arith.divf %477, %478 : vector<2x32xf32>
    %480 = vector.extract_strided_slice %470 {offsets = [0, 32], sizes = [2, 32], strides = [1, 1]} : vector<2x128xf32> to vector<2x32xf32>
    %481 = arith.negf %480 : vector<2x32xf32>
    %482 = math.exp %481 : vector<2x32xf32>
    %cst_134 = arith.constant 1.000000e+00 : f32
    %483 = vector.broadcast %cst_134 : f32 to vector<2x32xf32>
    %484 = arith.addf %483, %482 : vector<2x32xf32>
    %485 = arith.divf %483, %484 : vector<2x32xf32>
    %486 = vector.extract_strided_slice %470 {offsets = [0, 64], sizes = [2, 32], strides = [1, 1]} : vector<2x128xf32> to vector<2x32xf32>
    %487 = math.tanh %486 : vector<2x32xf32>
    %488 = vector.extract_strided_slice %470 {offsets = [0, 96], sizes = [2, 32], strides = [1, 1]} : vector<2x128xf32> to vector<2x32xf32>
    %489 = arith.negf %488 : vector<2x32xf32>
    %490 = math.exp %489 : vector<2x32xf32>
    %cst_135 = arith.constant 1.000000e+00 : f32
    %491 = vector.broadcast %cst_135 : f32 to vector<2x32xf32>
    %492 = arith.addf %491, %490 : vector<2x32xf32>
    %493 = arith.divf %491, %492 : vector<2x32xf32>
    %494 = arith.mulf %485, %421 : vector<2x32xf32>
    %495 = arith.mulf %479, %487 : vector<2x32xf32>
    %496 = arith.addf %494, %495 : vector<2x32xf32>
    %497 = math.tanh %496 : vector<2x32xf32>
    %498 = arith.mulf %493, %497 : vector<2x32xf32>
    %499 = vector.extract_strided_slice %473 {offsets = [0, 0], sizes = [2, 32], strides = [1, 1]} : vector<2x128xf32> to vector<2x32xf32>
    %500 = arith.negf %499 : vector<2x32xf32>
    %501 = math.exp %500 : vector<2x32xf32>
    %cst_136 = arith.constant 1.000000e+00 : f32
    %502 = vector.broadcast %cst_136 : f32 to vector<2x32xf32>
    %503 = arith.addf %502, %501 : vector<2x32xf32>
    %504 = arith.divf %502, %503 : vector<2x32xf32>
    %505 = vector.extract_strided_slice %473 {offsets = [0, 32], sizes = [2, 32], strides = [1, 1]} : vector<2x128xf32> to vector<2x32xf32>
    %506 = arith.negf %505 : vector<2x32xf32>
    %507 = math.exp %506 : vector<2x32xf32>
    %cst_137 = arith.constant 1.000000e+00 : f32
    %508 = vector.broadcast %cst_137 : f32 to vector<2x32xf32>
    %509 = arith.addf %508, %507 : vector<2x32xf32>
    %510 = arith.divf %508, %509 : vector<2x32xf32>
    %511 = vector.extract_strided_slice %473 {offsets = [0, 64], sizes = [2, 32], strides = [1, 1]} : vector<2x128xf32> to vector<2x32xf32>
    %512 = math.tanh %511 : vector<2x32xf32>
    %513 = vector.extract_strided_slice %473 {offsets = [0, 96], sizes = [2, 32], strides = [1, 1]} : vector<2x128xf32> to vector<2x32xf32>
    %514 = arith.negf %513 : vector<2x32xf32>
    %515 = math.exp %514 : vector<2x32xf32>
    %cst_138 = arith.constant 1.000000e+00 : f32
    %516 = vector.broadcast %cst_138 : f32 to vector<2x32xf32>
    %517 = arith.addf %516, %515 : vector<2x32xf32>
    %518 = arith.divf %516, %517 : vector<2x32xf32>
    %519 = arith.mulf %510, %446 : vector<2x32xf32>
    %520 = arith.mulf %504, %512 : vector<2x32xf32>
    %521 = arith.addf %519, %520 : vector<2x32xf32>
    %522 = math.tanh %521 : vector<2x32xf32>
    %523 = arith.mulf %518, %522 : vector<2x32xf32>
    %524 = arith.index_cast %c6_i32 : i32 to index
    %c0_139 = arith.constant 0 : index
    %c0_140 = arith.constant 0 : index
    %525 = vector.load %arg8[%524, %c0_139, %c0_140] : memref<8x2x32xf32, #tpu.memory_space<vmem>>, vector<1x2x32xf32>
    %526 = vector.shape_cast %525 : vector<1x2x32xf32> to vector<2x32xf32>
    %527 = vector.shape_cast %498 : vector<2x32xf32> to vector<1x2x32xf32>
    tpu.vector_store %arg8[%524, %c0_139, %c0_140], %527 {strides = array<i32>} : memref<8x2x32xf32, #tpu.memory_space<vmem>>, vector<1x2x32xf32>,
    %528 = arith.index_cast %457 : i32 to index
    %c0_141 = arith.constant 0 : index
    %c0_142 = arith.constant 0 : index
    %529 = vector.load %arg9[%528, %c0_141, %c0_142] : memref<8x2x32xf32, #tpu.memory_space<vmem>>, vector<1x2x32xf32>
    %530 = vector.shape_cast %529 : vector<1x2x32xf32> to vector<2x32xf32>
    %531 = vector.shape_cast %523 : vector<2x32xf32> to vector<1x2x32xf32>
    tpu.vector_store %arg9[%528, %c0_141, %c0_142], %531 {strides = array<i32>} : memref<8x2x32xf32, #tpu.memory_space<vmem>>, vector<1x2x32xf32>,
    %c7_i32_143 = arith.constant 7 : i32
    %c7_i32_144 = arith.constant 7 : i32
    %532 = arith.subi %c7_i32_144, %c7_i32_143 : i32
    %533 = arith.index_cast %c7_i32_143 : i32 to index
    %c0_145 = arith.constant 0 : index
    %c0_146 = arith.constant 0 : index
    %534 = vector.load %arg1[%533, %c0_145, %c0_146] : memref<8x2x64xf32, #tpu.memory_space<vmem>>, vector<1x2x64xf32>
    %535 = vector.shape_cast %534 : vector<1x2x64xf32> to vector<2x64xf32>
    %536 = arith.index_cast %532 : i32 to index
    %c0_147 = arith.constant 0 : index
    %c0_148 = arith.constant 0 : index
    %537 = vector.load %arg1[%536, %c0_147, %c0_148] : memref<8x2x64xf32, #tpu.memory_space<vmem>>, vector<1x2x64xf32>
    %538 = vector.shape_cast %537 : vector<1x2x64xf32> to vector<2x64xf32>
    %cst_149 = arith.constant dense<0.000000e+00> : vector<2x128xf32>
    %539 = tpu.matmul %535, %0, %cst_149 {dimension_numbers = #tpu.dot_dimension_numbers<[1], [0], [0], [1], [0, 0, 1, 1], [], []>} : vector<2x64xf32>, vector<64x128xf32>, vector<2x128xf32> -> vector<2x128xf32>
    %cst_150 = arith.constant dense<0.000000e+00> : vector<2x128xf32>
    %540 = tpu.matmul %538, %3, %cst_150 {dimension_numbers = #tpu.dot_dimension_numbers<[1], [0], [0], [1], [0, 0, 1, 1], [], []>} : vector<2x64xf32>, vector<64x128xf32>, vector<2x128xf32> -> vector<2x128xf32>
    %cst_151 = arith.constant dense<0.000000e+00> : vector<2x128xf32>
    %541 = tpu.matmul %498, %1, %cst_151 {dimension_numbers = #tpu.dot_dimension_numbers<[1], [0], [0], [1], [0, 0, 1, 1], [], []>} : vector<2x32xf32>, vector<32x128xf32>, vector<2x128xf32> -> vector<2x128xf32>
    %cst_152 = arith.constant dense<0.000000e+00> : vector<2x128xf32>
    %542 = tpu.matmul %523, %4, %cst_152 {dimension_numbers = #tpu.dot_dimension_numbers<[1], [0], [0], [1], [0, 0, 1, 1], [], []>} : vector<2x32xf32>, vector<32x128xf32>, vector<2x128xf32> -> vector<2x128xf32>
    %543 = arith.addf %539, %541 : vector<2x128xf32>
    %544 = vector.broadcast %2 : vector<1x128xf32> to vector<2x128xf32>
    %545 = arith.addf %543, %544 : vector<2x128xf32>
    %546 = arith.addf %540, %542 : vector<2x128xf32>
    %547 = vector.broadcast %5 : vector<1x128xf32> to vector<2x128xf32>
    %548 = arith.addf %546, %547 : vector<2x128xf32>
    %549 = vector.extract_strided_slice %545 {offsets = [0, 0], sizes = [2, 32], strides = [1, 1]} : vector<2x128xf32> to vector<2x32xf32>
    %550 = arith.negf %549 : vector<2x32xf32>
    %551 = math.exp %550 : vector<2x32xf32>
    %cst_153 = arith.constant 1.000000e+00 : f32
    %552 = vector.broadcast %cst_153 : f32 to vector<2x32xf32>
    %553 = arith.addf %552, %551 : vector<2x32xf32>
    %554 = arith.divf %552, %553 : vector<2x32xf32>
    %555 = vector.extract_strided_slice %545 {offsets = [0, 32], sizes = [2, 32], strides = [1, 1]} : vector<2x128xf32> to vector<2x32xf32>
    %556 = arith.negf %555 : vector<2x32xf32>
    %557 = math.exp %556 : vector<2x32xf32>
    %cst_154 = arith.constant 1.000000e+00 : f32
    %558 = vector.broadcast %cst_154 : f32 to vector<2x32xf32>
    %559 = arith.addf %558, %557 : vector<2x32xf32>
    %560 = arith.divf %558, %559 : vector<2x32xf32>
    %561 = vector.extract_strided_slice %545 {offsets = [0, 64], sizes = [2, 32], strides = [1, 1]} : vector<2x128xf32> to vector<2x32xf32>
    %562 = math.tanh %561 : vector<2x32xf32>
    %563 = vector.extract_strided_slice %545 {offsets = [0, 96], sizes = [2, 32], strides = [1, 1]} : vector<2x128xf32> to vector<2x32xf32>
    %564 = arith.negf %563 : vector<2x32xf32>
    %565 = math.exp %564 : vector<2x32xf32>
    %cst_155 = arith.constant 1.000000e+00 : f32
    %566 = vector.broadcast %cst_155 : f32 to vector<2x32xf32>
    %567 = arith.addf %566, %565 : vector<2x32xf32>
    %568 = arith.divf %566, %567 : vector<2x32xf32>
    %569 = arith.mulf %560, %496 : vector<2x32xf32>
    %570 = arith.mulf %554, %562 : vector<2x32xf32>
    %571 = arith.addf %569, %570 : vector<2x32xf32>
    %572 = math.tanh %571 : vector<2x32xf32>
    %573 = arith.mulf %568, %572 : vector<2x32xf32>
    %574 = vector.extract_strided_slice %548 {offsets = [0, 0], sizes = [2, 32], strides = [1, 1]} : vector<2x128xf32> to vector<2x32xf32>
    %575 = arith.negf %574 : vector<2x32xf32>
    %576 = math.exp %575 : vector<2x32xf32>
    %cst_156 = arith.constant 1.000000e+00 : f32
    %577 = vector.broadcast %cst_156 : f32 to vector<2x32xf32>
    %578 = arith.addf %577, %576 : vector<2x32xf32>
    %579 = arith.divf %577, %578 : vector<2x32xf32>
    %580 = vector.extract_strided_slice %548 {offsets = [0, 32], sizes = [2, 32], strides = [1, 1]} : vector<2x128xf32> to vector<2x32xf32>
    %581 = arith.negf %580 : vector<2x32xf32>
    %582 = math.exp %581 : vector<2x32xf32>
    %cst_157 = arith.constant 1.000000e+00 : f32
    %583 = vector.broadcast %cst_157 : f32 to vector<2x32xf32>
    %584 = arith.addf %583, %582 : vector<2x32xf32>
    %585 = arith.divf %583, %584 : vector<2x32xf32>
    %586 = vector.extract_strided_slice %548 {offsets = [0, 64], sizes = [2, 32], strides = [1, 1]} : vector<2x128xf32> to vector<2x32xf32>
    %587 = math.tanh %586 : vector<2x32xf32>
    %588 = vector.extract_strided_slice %548 {offsets = [0, 96], sizes = [2, 32], strides = [1, 1]} : vector<2x128xf32> to vector<2x32xf32>
    %589 = arith.negf %588 : vector<2x32xf32>
    %590 = math.exp %589 : vector<2x32xf32>
    %cst_158 = arith.constant 1.000000e+00 : f32
    %591 = vector.broadcast %cst_158 : f32 to vector<2x32xf32>
    %592 = arith.addf %591, %590 : vector<2x32xf32>
    %593 = arith.divf %591, %592 : vector<2x32xf32>
    %594 = arith.mulf %585, %521 : vector<2x32xf32>
    %595 = arith.mulf %579, %587 : vector<2x32xf32>
    %596 = arith.addf %594, %595 : vector<2x32xf32>
    %597 = math.tanh %596 : vector<2x32xf32>
    %598 = arith.mulf %593, %597 : vector<2x32xf32>
    %599 = arith.index_cast %c7_i32_143 : i32 to index
    %c0_159 = arith.constant 0 : index
    %c0_160 = arith.constant 0 : index
    %600 = vector.load %arg8[%599, %c0_159, %c0_160] : memref<8x2x32xf32, #tpu.memory_space<vmem>>, vector<1x2x32xf32>
    %601 = vector.shape_cast %600 : vector<1x2x32xf32> to vector<2x32xf32>
    %602 = vector.shape_cast %573 : vector<2x32xf32> to vector<1x2x32xf32>
    tpu.vector_store %arg8[%599, %c0_159, %c0_160], %602 {strides = array<i32>} : memref<8x2x32xf32, #tpu.memory_space<vmem>>, vector<1x2x32xf32>,
    %603 = arith.index_cast %532 : i32 to index
    %c0_161 = arith.constant 0 : index
    %c0_162 = arith.constant 0 : index
    %604 = vector.load %arg9[%603, %c0_161, %c0_162] : memref<8x2x32xf32, #tpu.memory_space<vmem>>, vector<1x2x32xf32>
    %605 = vector.shape_cast %604 : vector<1x2x32xf32> to vector<2x32xf32>
    %606 = vector.shape_cast %598 : vector<2x32xf32> to vector<1x2x32xf32>
    tpu.vector_store %arg9[%603, %c0_161, %c0_162], %606 {strides = array<i32>} : memref<8x2x32xf32, #tpu.memory_space<vmem>>, vector<1x2x32xf32>,
    %c8_i32 = arith.constant 8 : i32
    return
  }
  func.func @transform_0(%arg0: i32) -> (i32, i32, i32) {
    %c0_i32 = arith.constant 0 : i32
    %c0_i32_0 = arith.constant 0 : i32
    %c0_i32_1 = arith.constant 0 : i32
    %c0_i32_2 = arith.constant 0 : i32
    return %c0_i32, %c0_i32_0, %c0_i32_1 : i32, i32, i32
  }
  func.func @transform_1(%arg0: i32) -> (i32, i32) {
    %c0_i32 = arith.constant 0 : i32
    %c0_i32_0 = arith.constant 0 : i32
    %c0_i32_1 = arith.constant 0 : i32
    return %c0_i32, %c0_i32_0 : i32, i32
  }
  func.func @transform_2(%arg0: i32) -> (i32, i32) {
    %c0_i32 = arith.constant 0 : i32
    %c0_i32_0 = arith.constant 0 : i32
    %c0_i32_1 = arith.constant 0 : i32
    return %c0_i32, %c0_i32_0 : i32, i32
  }
  func.func @transform_3(%arg0: i32) -> (i32, i32) {
    %c0_i32 = arith.constant 0 : i32
    %c0_i32_0 = arith.constant 0 : i32
    %c0_i32_1 = arith.constant 0 : i32
    return %c0_i32, %c0_i32_0 : i32, i32
  }
  func.func @transform_4(%arg0: i32) -> (i32, i32) {
    %c0_i32 = arith.constant 0 : i32
    %c0_i32_0 = arith.constant 0 : i32
    %c0_i32_1 = arith.constant 0 : i32
    return %c0_i32, %c0_i32_0 : i32, i32
  }
  func.func @transform_5(%arg0: i32) -> (i32, i32) {
    %c0_i32 = arith.constant 0 : i32
    %c0_i32_0 = arith.constant 0 : i32
    %c0_i32_1 = arith.constant 0 : i32
    return %c0_i32, %c0_i32_0 : i32, i32
  }
  func.func @transform_6(%arg0: i32) -> (i32, i32) {
    %c0_i32 = arith.constant 0 : i32
    %c0_i32_0 = arith.constant 0 : i32
    %c0_i32_1 = arith.constant 0 : i32
    return %c0_i32, %c0_i32_0 : i32, i32
  }
  func.func @transform_7(%arg0: i32) -> (i32, i32, i32) {
    %c0_i32 = arith.constant 0 : i32
    %c0_i32_0 = arith.constant 0 : i32
    %c0_i32_1 = arith.constant 0 : i32
    %c0_i32_2 = arith.constant 0 : i32
    return %c0_i32, %c0_i32_0, %c0_i32_1 : i32, i32, i32
  }
  func.func @transform_8(%arg0: i32) -> (i32, i32, i32) {
    %c0_i32 = arith.constant 0 : i32
    %c0_i32_0 = arith.constant 0 : i32
    %c0_i32_1 = arith.constant 0 : i32
    %c0_i32_2 = arith.constant 0 : i32
    return %c0_i32, %c0_i32_0, %c0_i32_1 : i32, i32, i32
  }
}

</mosaic_0001>

<bundles_post_ra>
// kernel: bilstm_forward.3
= control target key start
LH: loop header
LB: loop body
LE: loop exit
PB: predicated region body
PF: predicated region fallthrough
CT: control target
= control target key end

     0   :  { %v4116_v0 = vmov 0.0|0.0   ;;  %vm4117_vm0 = vmmov 0   ;;  %v4118_v8 = vmov 0.0   ;;  %vm201_vm1 = vcmask 523264   ;;  %s4119_s11 = smov 64   ;;  %s4120_s12 = smov 32   ;;  %s4818_s2 = inlined_call_operand.vmem [shape: f32[32,128], index: 2, kind: input, shape index: {}]   ;;  %s4819_s5 = inlined_call_operand.vmem [shape: f32[32,128], index: 5, kind: input, shape index: {}]   ;;  %s4820_s1 = inlined_call_operand.vmem [shape: f32[64,128], index: 1, kind: input, shape index: {}]   ;;  %s4821_s4 = inlined_call_operand.vmem [shape: f32[64,128], index: 4, kind: input, shape index: {}]   ;;  %s4822_s0 = inlined_call_operand.vmem [shape: f32[8,2,64], index: 0, kind: input, shape index: {}]   ;;  %s4823_s3 = inlined_call_operand.vmem [shape: f32[1,128], index: 3, kind: input, shape index: {}]   ;;  %s4824_s6 = inlined_call_operand.vmem [shape: f32[1,128], index: 6, kind: input, shape index: {}]   ;;  %s4825_s7 = inlined_call_operand.vmem [shape: f32[8,2,32], index: 7, kind: output, shape index: {0}]   ;;  %s4826_s8 = inlined_call_operand.vmem [shape: f32[8,2,32], index: 8, kind: output, shape index: {1}]  }
   0x1   :  { %3693 = vmatprep.subr.bf16.mxu0 %v4116_v0  ;;  %3699 = vmatprep.subr.bf16.mxu1 %v4116_v0  ;;  %v36_v1 = vld [vmem:[%s4818_s2] sm:$0xff]  ;;  %v37_v2 = vld [vmem:[%s4818_s2 + $0x8] sm:$0xff]  ;;  %v38_v6 = vld [vmem:[%s4818_s2 + $0x10] sm:$0xff]  ;;  %vm414_vm2 = vcmask 254976   ;;  %vm57_vm3 = vcmask 261120  }
   0x2   :  { %v49_v3 = vld [vmem:[%s4819_s5] sm:$0xff]  ;;  %v4177_v4 = vpack.c.bf16 %v37_v2, %v36_v1  ;;  %v50_v5 = vld [vmem:[%s4819_s5 + $0x8] sm:$0xff]  ;;  %v39_v7 = vld [vmem:[%s4818_s2 + $0x18] sm:$0xff]  ;;  %3221 = vmatprep.mubr.msk.f32.mxu0 %vm4117_vm0, %v4118_v8  ;;  %3232 = vmatprep.mubr.msk.f32.mxu1 %vm4117_vm0, %v4118_v8 }
   0x3   :  { %v4192_v9 = vpack.c.bf16 %v50_v5, %v49_v3  ;;  %v51_v10 = vld [vmem:[%s4819_s5 + $0x10] sm:$0xff]  ;;  %v52_v11 = vld [vmem:[%s4819_s5 + $0x18] sm:$0xff]  ;;  %v4201_v12 = vpack.c.bf16 %v39_v7, %v38_v6  ;;  %v28_v14 = vld [vmem:[%s4820_s1] sm:$0xff] }
   0x4   :  { %3695 = vmatpush3.bf16.msra.mxu0 %v4177_v4  ;;  %v4205_v13 = vpack.c.bf16 %v52_v11, %v51_v10  ;;  %v29_v15 = vld [vmem:[%s4820_s1 + $0x8] sm:$0xff]  ;;  %v41_v16 = vld [vmem:[%s4821_s4] sm:$0xff]  ;;  %v30_v20 = vld [vmem:[%s4820_s1 + $0x10] sm:$0xff] }
   0x5   :  { %3701 = vmatpush3.bf16.msra.mxu1 %v4192_v9  ;;  %3696 = vmatprep.subr.bf16.mxu0 %v4116_v0  ;;  %v42_v17 = vld [vmem:[%s4821_s4 + $0x8] sm:$0xff]  ;;  %v4221_v18 = vpack.c.bf16 %v29_v15, %v28_v14  ;;  %v31_v21 = vld [vmem:[%s4820_s1 + $0x18] sm:$0xff]  ;;  %v43_v22 = vld [vmem:[%s4821_s4 + $0x10] sm:$0xff] }
   0x6   :  { %3702 = vmatprep.subr.bf16.mxu1 %v4116_v0  ;;  %v4225_v19 = vpack.c.bf16 %v42_v17, %v41_v16  ;;  %v44_v23 = vld [vmem:[%s4821_s4 + $0x18] sm:$0xff]  ;;  %v4243_v24 = vpack.c.bf16 %v31_v21, %v30_v20  ;;  %v32_v26 = vld [vmem:[%s4820_s1 + $0x20] sm:$0xff]  ;;  %v33_v27 = vld [vmem:[%s4820_s1 + $0x28] sm:$0xff] }
   0x7   :  { %v4247_v25 = vpack.c.bf16 %v44_v23, %v43_v22  ;;  %v45_v28 = vld [vmem:[%s4821_s4 + $0x20] sm:$0xff]  ;;  %v46_v29 = vld [vmem:[%s4821_s4 + $0x28] sm:$0xff]  ;;  %v4267_v30 = vpack.c.bf16 %v33_v27, %v32_v26  ;;  %v34_v32 = vld [vmem:[%s4820_s1 + $0x30] sm:$0xff] }
   0x8   :  { %3698 = vmatpush3.bf16.msra.mxu0 %v4201_v12  ;;  %v4271_v31 = vpack.c.bf16 %v46_v29, %v45_v28  ;;  %v35_v33 = vld [vmem:[%s4820_s1 + $0x38] sm:$0xff]  ;;  %v47_v34 = vld [vmem:[%s4821_s4 + $0x30] sm:$0xff]  ;;  %v54_v38 = vld [vmem:[%s4822_s0] sm:$0x3] }
   0x9   :  { %3704 = vmatpush3.bf16.msra.mxu1 %v4205_v13  ;;  %3705 = vmatprep.subr.bf16.mxu0 %v4116_v0  ;;  %v48_v35 = vld [vmem:[%s4821_s4 + $0x38] sm:$0xff]  ;;  %v4287_v36 = vpack.c.bf16 %v35_v33, %v34_v32  ;;  %v2913_v39 = vld [vmem:[%s4822_s0 + $0xe] sm:$0x3]  ;;  %v4321_v44 = vld [vmem:[%s4823_s3] ss:$0 sm:$0xff] }
   0xa   :  { %3717 = vmatprep.subr.bf16.mxu1 %v4116_v0  ;;  %v4291_v37 = vpack.c.bf16 %v48_v35, %v47_v34  ;;  %v4326_v49 = vld [vmem:[%s4824_s6] ss:$0 sm:$0xff]  ;;  %v2921_v28 = vld [vmem:[%s4822_s0 + $0x2] sm:$0x3]  ;;  %v2922_v29 = vld [vmem:[%s4822_s0 + $0xc] sm:$0x3] }
   0xb   :  { %3222 = vmatmul.mubr.f32.vlgmr.msra.gmra.mrb[0].mxu0 %v4118_v8 }
   0xc   :  { %3233 = vmatmul.mubr.f32.vlgmr.msra.gmra.mrb[0].mxu1 %v4118_v8  ;;  %3707 = vmatpush3.bf16.msra.mxu0 %v4221_v18 }
   0xd   :  { %3719 = vmatpush3.bf16.msra.mxu1 %v4225_v19  ;;  %3708 = vmatprep.subr.bf16.mxu0 %v4116_v0 }
   0xe   :  { %3720 = vmatprep.subr.bf16.mxu1 %v4116_v0  ;;  %3251 = vmatprep.mubr.msk.f32.mxu0 %vm4117_vm0, %v4118_v8 }
   0xf   :  { %3270 = vmatprep.mubr.msk.f32.mxu1 %vm4117_vm0, %v4118_v8 }
  0x10   :  { %3710 = vmatpush3.bf16.msra.mxu0 %v4243_v24 }
  0x11   :  { %3722 = vmatpush3.bf16.msra.mxu1 %v4247_v25  ;;  %3711 = vmatprep.subr.bf16.mxu0 %v4116_v0 }
  0x12   :  { %3723 = vmatprep.subr.bf16.mxu1 %v4116_v0 }
  0x14   :  { %3713 = vmatpush3.bf16.msra.mxu0 %v4267_v30 }
  0x15   :  { %3725 = vmatpush3.bf16.msra.mxu1 %v4271_v31  ;;  %3714 = vmatprep.subr.bf16.mxu0 %v4116_v0 }
  0x16   :  { %3726 = vmatprep.subr.bf16.mxu1 %v4116_v0 }
  0x18   :  { %3716 = vmatpush3.bf16.msra.mxu0 %v4287_v36 }
  0x19   :  { %3728 = vmatpush3.bf16.msra.mxu1 %v4291_v37  ;;  %3729 = vmatprep.subr.bf16.mxu0 %v4116_v0 }
  0x1a   :  { %3735 = vmatprep.subr.bf16.mxu1 %v4116_v0 }
  0x1b   :  { %3252 = vmatmul.mubr.msk.f32.vlgmr.msra.gmra.mrb[2].mxu0 %vm201_vm1, %v54_v38 }
  0x1c   :  { %3271 = vmatmul.mubr.msk.f32.vlgmr.msra.gmra.mrb[2].mxu1 %vm201_vm1, %v2913_v39  ;;  %3731 = vmatpush3.bf16.msra.mxu0 %v4177_v4 }
  0x1d   :  { %3732 = vmatprep.subr.bf16.mxu0 %v4116_v0  ;;  %3737 = vmatpush3.bf16.msra.mxu1 %v4192_v9 }
  0x1e   :  { %3281 = vmatprep.mubr.msk.f32.mxu0 %vm4117_vm0, %v4118_v8  ;;  %3738 = vmatprep.subr.bf16.mxu1 %v4116_v0 }
  0x1f   :  { %3292 = vmatprep.mubr.msk.f32.mxu1 %vm4117_vm0, %v4118_v8 }
  0x20   :  { %3734 = vmatpush3.bf16.msra.mxu0 %v4201_v12 }
  0x21   :  { %3741 = vmatprep.subr.bf16.mxu0 %v4116_v0  ;;  %3740 = vmatpush3.bf16.msra.mxu1 %v4205_v13 }
  0x22   :  { %3753 = vmatprep.subr.bf16.mxu1 %v4116_v0 }
  0xde   :  { %v127_v40 = vpop.f32.mrb[0].mxu0 }
  0xdf   :  { %v3223_v41 = vpop.f32.mrb[1].mxu0  ;;  %v197_v42 = vpop.f32.mrb[0].mxu1 }
  0xe0   :  { %v3234_v43 = vpop.f32.mrb[1].mxu1 }
  0xee   :  { %v271_v45 = vpop.f32.mrb[2].mxu0 }
  0xef   :  { %v272_v46 = vadd.f32 %v271_v45, %v127_v40  ;;  %v351_v47 = vpop.f32.mrb[2].mxu1  ;;  %v3253_v48 = vpop.f32.mrb[3].mxu0 }
  0xf0   :  { %v352_v50 = vadd.f32 %v351_v47, %v197_v42  ;;  %v3272_v51 = vpop.f32.mrb[3].mxu1 }
  0xf1   :  { %v281_v52 = vadd.f32 %v4321_v44, %v272_v46 }
  0xf2   :  { %v361_v53 = vadd.f32 %v4326_v49, %v352_v50 }
  0xf3   :  { %3986 = vtanh.f32 %v281_v52  ;;  %v2918_v56 = vmul.f32 -1.442695, %v281_v52 }
  0xf4   :  { %3988 = vtanh.f32 %v361_v53  ;;  %v2919_v57 = vmul.f32 -1.442695, %v361_v53 }
  0xf5   :  { %3990 = vpow2.f32 %v2918_v56 }
  0xf6   :  { %3992 = vpow2.f32 %v2919_v57 }
  0xfd   :  { %v3987_v54 = vpop.eup %3986 }
  0xfe   :  { %371 = vrot.lane.b32.xlu0 %v3987_v54, %s4119_s11  ;;  %v3989_v55 = vpop.eup %3988 }
  0xff   :  { %v3991_v58 = vpop.eup %3990 }
 0x100   :  { %v365_v59 = vadd.f32 1.0, %v3991_v58  ;;  %v3993_v60 = vpop.eup %3992 }
 0x101   :  { %v389_v61 = vadd.f32 1.0, %v3993_v60 }
 0x102   :  { %395 = vrot.lane.b32.xlu0 %v3989_v55, %s4119_s11  ;;  %3994 = vrcp.f32 %v365_v59 }
 0x103   :  { %3996 = vrcp.f32 %v389_v61 }
 0x10c   :  { %v3995_v62 = vpop.eup %3994 }
 0x10d   :  { %v3997_v2 = vpop.eup %3996  ;;  %v369_v6 = vmul.f32 0.0, %v3995_v62 }
 0x10e   :  { %v393_v11 = vmul.f32 0.0, %v3997_v2 }
 0x170   :  { %v372_v63 = vpop.permute.xlu0 %371 }
 0x171   :  { %v374_v1 = vmul.f32 %v3995_v62, %v372_v63 }
 0x173   :  { %376 = vrot.lane.b32.xlu1 %v374_v1, %s4120_s12 }
 0x174   :  { %v396_v3 = vpop.permute.xlu0 %395 }
 0x175   :  { %v398_v5 = vmul.f32 %v3997_v2, %v396_v3 }
 0x177   :  { %400 = vrot.lane.b32.xlu1 %v398_v5, %s4120_s12 }
 0x1e5   :  { %v377_v7 = vpop.permute.xlu1 %376 }
 0x1e6   :  { %v4334_v10 = vadd.f32 %v377_v7, %v369_v6 }
 0x1e8   :  { %3998 = vtanh.f32 %v4334_v10 }
 0x1e9   :  { %v401_v14 = vpop.permute.xlu1 %400 }
 0x1ea   :  { %v4337_v15 = vadd.f32 %v401_v14, %v393_v11 }
 0x1ec   :  { %4000 = vtanh.f32 %v4337_v15 }
 0x1f2   :  { %v3999_v16 = vpop.eup %3998 }
 0x1f3   :  { %382 = vrot.lane.b32.xlu0 %v3999_v16, %s4119_s11 }
 0x1f6   :  { %v4001_v17 = vpop.eup %4000 }
 0x1f7   :  { %406 = vrot.lane.b32.xlu1 %v4001_v17, %s4119_s11 }
 0x265   :  { %v383_v20 = vpop.permute.xlu0 %382 }
 0x266   :  { %v385_v21 = vmul.f32 %v3995_v62, %v383_v20  ;;  %v2931_v20 = vld [vmem:[%s4822_s0 + $0x4] sm:$0x3] }
 0x268   :  { %411 = vrot.lane.b32.xlu0 %v385_v21, %s4120_s12  ;;  %v2932_v21 = vld [vmem:[%s4822_s0 + $0xa] sm:$0x3] }
 0x269   :  { %v407_v22 = vpop.permute.xlu1 %406 }
 0x26a   :  { %v409_v23 = vmul.f32 %v3997_v2, %v407_v22 }
 0x26c   :  { %417 = vrot.lane.b32.xlu1 %v409_v23, %s4120_s12 }
 0x2da   :  { %v412_v26 = vpop.permute.xlu0 %411 }
 0x2db   :  { %415 = vst.msk [vmem:[%s4825_s7] sm:$0x3] %vm414_vm2, %v412_v26  ;;  %3282 = vmatmul.mubr.msk.f32.vlgmr.msra.gmra.mrb[4].mxu0 %vm57_vm3, %v412_v26 }
 0x2dc   :  { %3743 = vmatpush3.bf16.msra.mxu0 %v4221_v18  ;;  %3311 = vmatprep.mubr.msk.f32.mxu0 %vm4117_vm0, %v4118_v8 }
 0x2dd   :  { %3744 = vmatprep.subr.bf16.mxu0 %v4116_v0 }
 0x2de   :  { %v418_v27 = vpop.permute.xlu1 %417 }
 0x2df   :  { %2920 = vst.msk [vmem:[%s4826_s8 + $0xe] sm:$0x3] %vm414_vm2, %v418_v27  ;;  %3293 = vmatmul.mubr.msk.f32.vlgmr.msra.gmra.mrb[4].mxu1 %vm57_vm3, %v418_v27 }
 0x2e0   :  { %3746 = vmatpush3.bf16.msra.mxu0 %v4243_v24  ;;  %3755 = vmatpush3.bf16.msra.mxu1 %v4225_v19 }
 0x2e1   :  { %3747 = vmatprep.subr.bf16.mxu0 %v4116_v0  ;;  %3756 = vmatprep.subr.bf16.mxu1 %v4116_v0 }
 0x2e2   :  { %3330 = vmatprep.mubr.msk.f32.mxu1 %vm4117_vm0, %v4118_v8 }
 0x2e4   :  { %3749 = vmatpush3.bf16.msra.mxu0 %v4267_v30  ;;  %3758 = vmatpush3.bf16.msra.mxu1 %v4247_v25 }
 0x2e5   :  { %3750 = vmatprep.subr.bf16.mxu0 %v4116_v0  ;;  %3759 = vmatprep.subr.bf16.mxu1 %v4116_v0 }
 0x2e8   :  { %3752 = vmatpush3.bf16.msra.mxu0 %v4287_v36  ;;  %3761 = vmatpush3.bf16.msra.mxu1 %v4271_v31 }
 0x2e9   :  { %3762 = vmatprep.subr.bf16.mxu1 %v4116_v0  ;;  %3765 = vmatprep.subr.bf16.mxu0 %v4116_v0 }
 0x2eb   :  { %3312 = vmatmul.mubr.msk.f32.vlgmr.msra.gmra.mrb[6].mxu0 %vm201_vm1, %v2921_v28 }
 0x2ec   :  { %3764 = vmatpush3.bf16.msra.mxu1 %v4291_v37  ;;  %3767 = vmatpush3.bf16.msra.mxu0 %v4177_v4 }
 0x2ed   :  { %3768 = vmatprep.subr.bf16.mxu0 %v4116_v0  ;;  %3771 = vmatprep.subr.bf16.mxu1 %v4116_v0 }
 0x2ee   :  { %3341 = vmatprep.mubr.msk.f32.mxu0 %vm4117_vm0, %v4118_v8 }
 0x2ef   :  { %3331 = vmatmul.mubr.msk.f32.vlgmr.msra.gmra.mrb[6].mxu1 %vm201_vm1, %v2922_v29 }
 0x2f0   :  { %3770 = vmatpush3.bf16.msra.mxu0 %v4201_v12  ;;  %3773 = vmatpush3.bf16.msra.mxu1 %v4192_v9 }
 0x2f1   :  { %3774 = vmatprep.subr.bf16.mxu1 %v4116_v0  ;;  %3777 = vmatprep.subr.bf16.mxu0 %v4116_v0 }
 0x2f2   :  { %3352 = vmatprep.mubr.msk.f32.mxu1 %vm4117_vm0, %v4118_v8 }
 0x2f4   :  { %3776 = vmatpush3.bf16.msra.mxu1 %v4205_v13 }
 0x2f5   :  { %3789 = vmatprep.subr.bf16.mxu1 %v4116_v0 }
 0x3ae   :  { %v494_v32 = vpop.f32.mrb[4].mxu0 }
 0x3af   :  { %v3283_v33 = vpop.f32.mrb[5].mxu0 }
 0x3b2   :  { %v566_v34 = vpop.f32.mrb[4].mxu1 }
 0x3b3   :  { %v3294_v35 = vpop.f32.mrb[5].mxu1 }
 0x3be   :  { %v639_v38 = vpop.f32.mrb[6].mxu0 }
 0x3bf   :  { %v640_v39 = vadd.f32 %v639_v38, %v494_v32  ;;  %v3313_v40 = vpop.f32.mrb[7].mxu0 }
 0x3c1   :  { %v643_v41 = vadd.f32 %v4321_v44, %v640_v39 }
 0x3c2   :  { %v713_v42 = vpop.f32.mrb[6].mxu1 }
 0x3c3   :  { %4002 = vtanh.f32 %v643_v41  ;;  %v714_v43 = vadd.f32 %v713_v42, %v566_v34  ;;  %v3332_v45 = vpop.f32.mrb[7].mxu1  ;;  %v2927_v50 = vmul.f32 -1.442695, %v643_v41 }
 0x3c5   :  { %v717_v46 = vadd.f32 %v4326_v49, %v714_v43 }
 0x3c7   :  { %4004 = vtanh.f32 %v717_v46  ;;  %v2928_v51 = vmul.f32 -1.442695, %v717_v46 }
 0x3c8   :  { %4006 = vpow2.f32 %v2927_v50 }
 0x3c9   :  { %4008 = vpow2.f32 %v2928_v51 }
 0x3cd   :  { %v4003_v47 = vpop.eup %4002 }
 0x3ce   :  { %727 = vrot.lane.b32.xlu0 %v4003_v47, %s4119_s11 }
 0x3d1   :  { %v4005_v48 = vpop.eup %4004 }
 0x3d2   :  { %751 = vrot.lane.b32.xlu1 %v4005_v48, %s4119_s11  ;;  %v4007_v52 = vpop.eup %4006 }
 0x3d3   :  { %v721_v53 = vadd.f32 1.0, %v4007_v52  ;;  %v4009_v54 = vpop.eup %4008 }
 0x3d4   :  { %v745_v55 = vadd.f32 1.0, %v4009_v54 }
 0x3d5   :  { %4010 = vrcp.f32 %v721_v53 }
 0x3d6   :  { %4012 = vrcp.f32 %v745_v55 }
 0x3df   :  { %v4011_v56 = vpop.eup %4010 }
 0x3e0   :  { %v4013_v59 = vpop.eup %4012  ;;  %v725_v62 = vmul.f32 %v4011_v56, %v4334_v10 }
 0x3e1   :  { %v749_v2 = vmul.f32 %v4013_v59, %v4337_v15 }
 0x440   :  { %v728_v57 = vpop.permute.xlu0 %727 }
 0x441   :  { %v730_v58 = vmul.f32 %v4011_v56, %v728_v57 }
 0x443   :  { %732 = vrot.lane.b32.xlu0 %v730_v58, %s4120_s12 }
 0x444   :  { %v752_v60 = vpop.permute.xlu1 %751 }
 0x445   :  { %v754_v61 = vmul.f32 %v4013_v59, %v752_v60 }
 0x447   :  { %756 = vrot.lane.b32.xlu1 %v754_v61, %s4120_s12 }
 0x4b5   :  { %v733_v63 = vpop.permute.xlu0 %732 }
 0x4b6   :  { %v4401_v1 = vadd.f32 %v733_v63, %v725_v62 }
 0x4b8   :  { %4014 = vtanh.f32 %v4401_v1 }
 0x4b9   :  { %v757_v3 = vpop.permute.xlu1 %756 }
 0x4ba   :  { %v4405_v5 = vadd.f32 %v757_v3, %v749_v2 }
 0x4bc   :  { %4016 = vtanh.f32 %v4405_v5 }
 0x4c2   :  { %v4015_v6 = vpop.eup %4014 }
 0x4c3   :  { %738 = vrot.lane.b32.xlu0 %v4015_v6, %s4119_s11 }
 0x4c6   :  { %v4017_v7 = vpop.eup %4016 }
 0x4c7   :  { %762 = vrot.lane.b32.xlu1 %v4017_v7, %s4119_s11 }
 0x535   :  { %v739_v11 = vpop.permute.xlu0 %738 }
 0x536   :  { %v741_v10 = vmul.f32 %v4011_v56, %v739_v11  ;;  %v2941_v11 = vld [vmem:[%s4822_s0 + $0x6] sm:$0x3] }
 0x538   :  { %767 = vrot.lane.b32.xlu0 %v741_v10, %s4120_s12  ;;  %v2942_v10 = vld [vmem:[%s4822_s0 + $0x8] sm:$0x3] }
 0x539   :  { %v763_v14 = vpop.permute.xlu1 %762 }
 0x53a   :  { %v765_v16 = vmul.f32 %v4013_v59, %v763_v14 }
 0x53c   :  { %773 = vrot.lane.b32.xlu1 %v765_v16, %s4120_s12 }
 0x5aa   :  { %v768_v15 = vpop.permute.xlu0 %767 }
 0x5ab   :  { %2929 = vst.msk [vmem:[%s4825_s7 + $0x2] sm:$0x3] %vm414_vm2, %v768_v15  ;;  %3342 = vmatmul.mubr.msk.f32.vlgmr.msra.gmra.mrb[8].mxu0 %vm57_vm3, %v768_v15 }
 0x5ac   :  { %3779 = vmatpush3.bf16.msra.mxu0 %v4221_v18  ;;  %3371 = vmatprep.mubr.msk.f32.mxu0 %vm4117_vm0, %v4118_v8 }
 0x5ad   :  { %3780 = vmatprep.subr.bf16.mxu0 %v4116_v0 }
 0x5ae   :  { %v774_v17 = vpop.permute.xlu1 %773 }
 0x5af   :  { %2930 = vst.msk [vmem:[%s4826_s8 + $0xc] sm:$0x3] %vm414_vm2, %v774_v17  ;;  %3353 = vmatmul.mubr.msk.f32.vlgmr.msra.gmra.mrb[8].mxu1 %vm57_vm3, %v774_v17 }
 0x5b0   :  { %3782 = vmatpush3.bf16.msra.mxu0 %v4243_v24  ;;  %3791 = vmatpush3.bf16.msra.mxu1 %v4225_v19 }
 0x5b1   :  { %3783 = vmatprep.subr.bf16.mxu0 %v4116_v0  ;;  %3792 = vmatprep.subr.bf16.mxu1 %v4116_v0 }
 0x5b2   :  { %3390 = vmatprep.mubr.msk.f32.mxu1 %vm4117_vm0, %v4118_v8 }
 0x5b4   :  { %3785 = vmatpush3.bf16.msra.mxu0 %v4267_v30  ;;  %3794 = vmatpush3.bf16.msra.mxu1 %v4247_v25 }
 0x5b5   :  { %3786 = vmatprep.subr.bf16.mxu0 %v4116_v0  ;;  %3795 = vmatprep.subr.bf16.mxu1 %v4116_v0 }
 0x5b8   :  { %3788 = vmatpush3.bf16.msra.mxu0 %v4287_v36  ;;  %3797 = vmatpush3.bf16.msra.mxu1 %v4271_v31 }
 0x5b9   :  { %3798 = vmatprep.subr.bf16.mxu1 %v4116_v0  ;;  %3801 = vmatprep.subr.bf16.mxu0 %v4116_v0 }
 0x5bb   :  { %3372 = vmatmul.mubr.msk.f32.vlgmr.msra.gmra.mrb[10].mxu0 %vm201_vm1, %v2931_v20 }
 0x5bc   :  { %3800 = vmatpush3.bf16.msra.mxu1 %v4291_v37  ;;  %3803 = vmatpush3.bf16.msra.mxu0 %v4177_v4 }
 0x5bd   :  { %3804 = vmatprep.subr.bf16.mxu0 %v4116_v0  ;;  %3807 = vmatprep.subr.bf16.mxu1 %v4116_v0 }
 0x5be   :  { %3401 = vmatprep.mubr.msk.f32.mxu0 %vm4117_vm0, %v4118_v8 }
 0x5bf   :  { %3391 = vmatmul.mubr.msk.f32.vlgmr.msra.gmra.mrb[10].mxu1 %vm201_vm1, %v2932_v21 }
 0x5c0   :  { %3806 = vmatpush3.bf16.msra.mxu0 %v4201_v12  ;;  %3809 = vmatpush3.bf16.msra.mxu1 %v4192_v9 }
 0x5c1   :  { %3810 = vmatprep.subr.bf16.mxu1 %v4116_v0  ;;  %3813 = vmatprep.subr.bf16.mxu0 %v4116_v0 }
 0x5c2   :  { %3412 = vmatprep.mubr.msk.f32.mxu1 %vm4117_vm0, %v4118_v8 }
 0x5c4   :  { %3812 = vmatpush3.bf16.msra.mxu1 %v4205_v13 }
 0x5c5   :  { %3825 = vmatprep.subr.bf16.mxu1 %v4116_v0 }
 0x67e   :  { %v850_v22 = vpop.f32.mrb[8].mxu0 }
 0x67f   :  { %v3343_v23 = vpop.f32.mrb[9].mxu0 }
 0x682   :  { %v922_v26 = vpop.f32.mrb[8].mxu1 }
 0x683   :  { %v3354_v27 = vpop.f32.mrb[9].mxu1 }
 0x68e   :  { %v995_v28 = vpop.f32.mrb[10].mxu0 }
 0x68f   :  { %v996_v29 = vadd.f32 %v995_v28, %v850_v22  ;;  %v3373_v32 = vpop.f32.mrb[11].mxu0 }
 0x691   :  { %v999_v33 = vadd.f32 %v4321_v44, %v996_v29 }
 0x692   :  { %v1069_v34 = vpop.f32.mrb[10].mxu1 }
 0x693   :  { %4018 = vtanh.f32 %v999_v33  ;;  %v1070_v35 = vadd.f32 %v1069_v34, %v922_v26  ;;  %v3392_v38 = vpop.f32.mrb[11].mxu1  ;;  %v2937_v42 = vmul.f32 -1.442695, %v999_v33 }
 0x695   :  { %v1073_v39 = vadd.f32 %v4326_v49, %v1070_v35 }
 0x697   :  { %4020 = vtanh.f32 %v1073_v39  ;;  %v2938_v43 = vmul.f32 -1.442695, %v1073_v39 }
 0x698   :  { %4022 = vpow2.f32 %v2937_v42 }
 0x699   :  { %4024 = vpow2.f32 %v2938_v43 }
 0x69d   :  { %v4019_v40 = vpop.eup %4018 }
 0x69e   :  { %1083 = vrot.lane.b32.xlu0 %v4019_v40, %s4119_s11 }
 0x6a1   :  { %v4021_v41 = vpop.eup %4020 }
 0x6a2   :  { %1107 = vrot.lane.b32.xlu1 %v4021_v41, %s4119_s11  ;;  %v4023_v45 = vpop.eup %4022 }
 0x6a3   :  { %v1077_v46 = vadd.f32 1.0, %v4023_v45  ;;  %v4025_v47 = vpop.eup %4024 }
 0x6a4   :  { %v1101_v48 = vadd.f32 1.0, %v4025_v47 }
 0x6a5   :  { %4026 = vrcp.f32 %v1077_v46 }
 0x6a6   :  { %4028 = vrcp.f32 %v1101_v48 }
 0x6af   :  { %v4027_v50 = vpop.eup %4026 }
 0x6b0   :  { %v4029_v53 = vpop.eup %4028  ;;  %v1081_v56 = vmul.f32 %v4027_v50, %v4401_v1 }
 0x6b1   :  { %v1105_v59 = vmul.f32 %v4029_v53, %v4405_v5 }
 0x710   :  { %v1084_v51 = vpop.permute.xlu0 %1083 }
 0x711   :  { %v1086_v52 = vmul.f32 %v4027_v50, %v1084_v51 }
 0x713   :  { %1088 = vrot.lane.b32.xlu0 %v1086_v52, %s4120_s12 }
 0x714   :  { %v1108_v54 = vpop.permute.xlu1 %1107 }
 0x715   :  { %v1110_v55 = vmul.f32 %v4029_v53, %v1108_v54 }
 0x717   :  { %1112 = vrot.lane.b32.xlu1 %v1110_v55, %s4120_s12 }
 0x785   :  { %v1089_v57 = vpop.permute.xlu0 %1088 }
 0x786   :  { %v4469_v58 = vadd.f32 %v1089_v57, %v1081_v56 }
 0x788   :  { %4030 = vtanh.f32 %v4469_v58 }
 0x789   :  { %v1113_v60 = vpop.permute.xlu1 %1112 }
 0x78a   :  { %v4473_v61 = vadd.f32 %v1113_v60, %v1105_v59 }
 0x78c   :  { %4032 = vtanh.f32 %v4473_v61 }
 0x792   :  { %v4031_v62 = vpop.eup %4030 }
 0x793   :  { %1094 = vrot.lane.b32.xlu0 %v4031_v62, %s4119_s11 }
 0x796   :  { %v4033_v63 = vpop.eup %4032 }
 0x797   :  { %1118 = vrot.lane.b32.xlu1 %v4033_v63, %s4119_s11 }
 0x805   :  { %v1095_v2 = vpop.permute.xlu0 %1094 }
 0x806   :  { %v1097_v1 = vmul.f32 %v4027_v50, %v1095_v2  ;;  %v2951_v2 = vld [vmem:[%s4822_s0 + $0x8] sm:$0x3] }
 0x808   :  { %1123 = vrot.lane.b32.xlu0 %v1097_v1, %s4120_s12  ;;  %v2952_v1 = vld [vmem:[%s4822_s0 + $0x6] sm:$0x3] }
 0x809   :  { %v1119_v3 = vpop.permute.xlu1 %1118 }
 0x80a   :  { %v1121_v6 = vmul.f32 %v4029_v53, %v1119_v3 }
 0x80c   :  { %1129 = vrot.lane.b32.xlu1 %v1121_v6, %s4120_s12 }
 0x87a   :  { %v1124_v5 = vpop.permute.xlu0 %1123 }
 0x87b   :  { %2939 = vst.msk [vmem:[%s4825_s7 + $0x4] sm:$0x3] %vm414_vm2, %v1124_v5  ;;  %3402 = vmatmul.mubr.msk.f32.vlgmr.msra.gmra.mrb[12].mxu0 %vm57_vm3, %v1124_v5 }
 0x87c   :  { %3815 = vmatpush3.bf16.msra.mxu0 %v4221_v18  ;;  %3431 = vmatprep.mubr.msk.f32.mxu0 %vm4117_vm0, %v4118_v8 }
 0x87d   :  { %3816 = vmatprep.subr.bf16.mxu0 %v4116_v0 }
 0x87e   :  { %v1130_v7 = vpop.permute.xlu1 %1129 }
 0x87f   :  { %2940 = vst.msk [vmem:[%s4826_s8 + $0xa] sm:$0x3] %vm414_vm2, %v1130_v7  ;;  %3413 = vmatmul.mubr.msk.f32.vlgmr.msra.gmra.mrb[12].mxu1 %vm57_vm3, %v1130_v7 }
 0x880   :  { %3818 = vmatpush3.bf16.msra.mxu0 %v4243_v24  ;;  %3827 = vmatpush3.bf16.msra.mxu1 %v4225_v19 }
 0x881   :  { %3819 = vmatprep.subr.bf16.mxu0 %v4116_v0  ;;  %3828 = vmatprep.subr.bf16.mxu1 %v4116_v0 }
 0x882   :  { %3450 = vmatprep.mubr.msk.f32.mxu1 %vm4117_vm0, %v4118_v8 }
 0x884   :  { %3821 = vmatpush3.bf16.msra.mxu0 %v4267_v30  ;;  %3830 = vmatpush3.bf16.msra.mxu1 %v4247_v25 }
 0x885   :  { %3822 = vmatprep.subr.bf16.mxu0 %v4116_v0  ;;  %3831 = vmatprep.subr.bf16.mxu1 %v4116_v0 }
 0x888   :  { %3824 = vmatpush3.bf16.msra.mxu0 %v4287_v36  ;;  %3833 = vmatpush3.bf16.msra.mxu1 %v4271_v31 }
 0x889   :  { %3834 = vmatprep.subr.bf16.mxu1 %v4116_v0  ;;  %3837 = vmatprep.subr.bf16.mxu0 %v4116_v0 }
 0x88b   :  { %3432 = vmatmul.mubr.msk.f32.vlgmr.msra.gmra.mrb[14].mxu0 %vm201_vm1, %v2941_v11 }
 0x88c   :  { %3836 = vmatpush3.bf16.msra.mxu1 %v4291_v37  ;;  %3839 = vmatpush3.bf16.msra.mxu0 %v4177_v4 }
 0x88d   :  { %3840 = vmatprep.subr.bf16.mxu0 %v4116_v0  ;;  %3843 = vmatprep.subr.bf16.mxu1 %v4116_v0 }
 0x88e   :  { %3461 = vmatprep.mubr.msk.f32.mxu0 %vm4117_vm0, %v4118_v8 }
 0x88f   :  { %3451 = vmatmul.mubr.msk.f32.vlgmr.msra.gmra.mrb[14].mxu1 %vm201_vm1, %v2942_v10 }
 0x890   :  { %3842 = vmatpush3.bf16.msra.mxu0 %v4201_v12  ;;  %3845 = vmatpush3.bf16.msra.mxu1 %v4192_v9 }
 0x891   :  { %3846 = vmatprep.subr.bf16.mxu1 %v4116_v0  ;;  %3849 = vmatprep.subr.bf16.mxu0 %v4116_v0 }
 0x892   :  { %3472 = vmatprep.mubr.msk.f32.mxu1 %vm4117_vm0, %v4118_v8 }
 0x894   :  { %3848 = vmatpush3.bf16.msra.mxu1 %v4205_v13 }
 0x895   :  { %3861 = vmatprep.subr.bf16.mxu1 %v4116_v0 }
 0x94e   :  { %v1206_v14 = vpop.f32.mrb[12].mxu0 }
 0x94f   :  { %v3403_v16 = vpop.f32.mrb[13].mxu0 }
 0x952   :  { %v1278_v15 = vpop.f32.mrb[12].mxu1 }
 0x953   :  { %v3414_v17 = vpop.f32.mrb[13].mxu1 }
 0x95e   :  { %v1351_v20 = vpop.f32.mrb[14].mxu0 }
 0x95f   :  { %v1352_v21 = vadd.f32 %v1351_v20, %v1206_v14  ;;  %v3433_v22 = vpop.f32.mrb[15].mxu0 }
 0x961   :  { %v1355_v23 = vadd.f32 %v4321_v44, %v1352_v21 }
 0x962   :  { %v1425_v26 = vpop.f32.mrb[14].mxu1 }
 0x963   :  { %4034 = vtanh.f32 %v1355_v23  ;;  %v1426_v27 = vadd.f32 %v1425_v26, %v1278_v15  ;;  %v3452_v28 = vpop.f32.mrb[15].mxu1  ;;  %v2947_v34 = vmul.f32 -1.442695, %v1355_v23 }
 0x965   :  { %v1429_v29 = vadd.f32 %v4326_v49, %v1426_v27 }
 0x967   :  { %4036 = vtanh.f32 %v1429_v29  ;;  %v2948_v35 = vmul.f32 -1.442695, %v1429_v29 }
 0x968   :  { %4038 = vpow2.f32 %v2947_v34 }
 0x969   :  { %4040 = vpow2.f32 %v2948_v35 }
 0x96d   :  { %v4035_v32 = vpop.eup %4034 }
 0x96e   :  { %1439 = vrot.lane.b32.xlu0 %v4035_v32, %s4119_s11 }
 0x971   :  { %v4037_v33 = vpop.eup %4036 }
 0x972   :  { %1463 = vrot.lane.b32.xlu1 %v4037_v33, %s4119_s11  ;;  %v4039_v38 = vpop.eup %4038 }
 0x973   :  { %v1433_v39 = vadd.f32 1.0, %v4039_v38  ;;  %v4041_v40 = vpop.eup %4040 }
 0x974   :  { %v1457_v41 = vadd.f32 1.0, %v4041_v40 }
 0x975   :  { %4042 = vrcp.f32 %v1433_v39 }
 0x976   :  { %4044 = vrcp.f32 %v1457_v41 }
 0x97f   :  { %v4043_v42 = vpop.eup %4042 }
 0x980   :  { %v4045_v46 = vpop.eup %4044  ;;  %v1437_v50 = vmul.f32 %v4043_v42, %v4469_v58 }
 0x981   :  { %v1461_v53 = vmul.f32 %v4045_v46, %v4473_v61 }
 0x9e0   :  { %v1440_v43 = vpop.permute.xlu0 %1439 }
 0x9e1   :  { %v1442_v45 = vmul.f32 %v4043_v42, %v1440_v43 }
 0x9e3   :  { %1444 = vrot.lane.b32.xlu0 %v1442_v45, %s4120_s12 }
 0x9e4   :  { %v1464_v47 = vpop.permute.xlu1 %1463 }
 0x9e5   :  { %v1466_v48 = vmul.f32 %v4045_v46, %v1464_v47 }
 0x9e7   :  { %1468 = vrot.lane.b32.xlu1 %v1466_v48, %s4120_s12 }
 0xa55   :  { %v1445_v51 = vpop.permute.xlu0 %1444 }
 0xa56   :  { %v4537_v52 = vadd.f32 %v1445_v51, %v1437_v50 }
 0xa58   :  { %4046 = vtanh.f32 %v4537_v52 }
 0xa59   :  { %v1469_v54 = vpop.permute.xlu1 %1468 }
 0xa5a   :  { %v4541_v55 = vadd.f32 %v1469_v54, %v1461_v53 }
 0xa5c   :  { %4048 = vtanh.f32 %v4541_v55 }
 0xa62   :  { %v4047_v56 = vpop.eup %4046 }
 0xa63   :  { %1450 = vrot.lane.b32.xlu0 %v4047_v56, %s4119_s11 }
 0xa66   :  { %v4049_v57 = vpop.eup %4048 }
 0xa67   :  { %1474 = vrot.lane.b32.xlu1 %v4049_v57, %s4119_s11 }
 0xad5   :  { %v1451_v59 = vpop.permute.xlu0 %1450 }
 0xad6   :  { %v1453_v58 = vmul.f32 %v4043_v42, %v1451_v59  ;;  %v2961_v59 = vld [vmem:[%s4822_s0 + $0xa] sm:$0x3] }
 0xad8   :  { %1479 = vrot.lane.b32.xlu0 %v1453_v58, %s4120_s12  ;;  %v2962_v58 = vld [vmem:[%s4822_s0 + $0x4] sm:$0x3] }
 0xad9   :  { %v1475_v60 = vpop.permute.xlu1 %1474 }
 0xada   :  { %v1477_v62 = vmul.f32 %v4045_v46, %v1475_v60 }
 0xadc   :  { %1485 = vrot.lane.b32.xlu1 %v1477_v62, %s4120_s12 }
 0xb4a   :  { %v1480_v61 = vpop.permute.xlu0 %1479 }
 0xb4b   :  { %2949 = vst.msk [vmem:[%s4825_s7 + $0x6] sm:$0x3] %vm414_vm2, %v1480_v61  ;;  %3462 = vmatmul.mubr.msk.f32.vlgmr.msra.gmra.mrb[16].mxu0 %vm57_vm3, %v1480_v61 }
 0xb4c   :  { %3851 = vmatpush3.bf16.msra.mxu0 %v4221_v18  ;;  %3491 = vmatprep.mubr.msk.f32.mxu0 %vm4117_vm0, %v4118_v8 }
 0xb4d   :  { %3852 = vmatprep.subr.bf16.mxu0 %v4116_v0 }
 0xb4e   :  { %v1486_v63 = vpop.permute.xlu1 %1485 }
 0xb4f   :  { %2950 = vst.msk [vmem:[%s4826_s8 + $0x8] sm:$0x3] %vm414_vm2, %v1486_v63  ;;  %3473 = vmatmul.mubr.msk.f32.vlgmr.msra.gmra.mrb[16].mxu1 %vm57_vm3, %v1486_v63 }
 0xb50   :  { %3854 = vmatpush3.bf16.msra.mxu0 %v4243_v24  ;;  %3863 = vmatpush3.bf16.msra.mxu1 %v4225_v19 }
 0xb51   :  { %3855 = vmatprep.subr.bf16.mxu0 %v4116_v0  ;;  %3864 = vmatprep.subr.bf16.mxu1 %v4116_v0 }
 0xb52   :  { %3510 = vmatprep.mubr.msk.f32.mxu1 %vm4117_vm0, %v4118_v8 }
 0xb54   :  { %3857 = vmatpush3.bf16.msra.mxu0 %v4267_v30  ;;  %3866 = vmatpush3.bf16.msra.mxu1 %v4247_v25 }
 0xb55   :  { %3858 = vmatprep.subr.bf16.mxu0 %v4116_v0  ;;  %3867 = vmatprep.subr.bf16.mxu1 %v4116_v0 }
 0xb58   :  { %3860 = vmatpush3.bf16.msra.mxu0 %v4287_v36  ;;  %3869 = vmatpush3.bf16.msra.mxu1 %v4271_v31 }
 0xb59   :  { %3870 = vmatprep.subr.bf16.mxu1 %v4116_v0  ;;  %3873 = vmatprep.subr.bf16.mxu0 %v4116_v0 }
 0xb5b   :  { %3492 = vmatmul.mubr.msk.f32.vlgmr.msra.gmra.mrb[18].mxu0 %vm201_vm1, %v2951_v2 }
 0xb5c   :  { %3872 = vmatpush3.bf16.msra.mxu1 %v4291_v37  ;;  %3875 = vmatpush3.bf16.msra.mxu0 %v4177_v4 }
 0xb5d   :  { %3876 = vmatprep.subr.bf16.mxu0 %v4116_v0  ;;  %3879 = vmatprep.subr.bf16.mxu1 %v4116_v0 }
 0xb5e   :  { %3521 = vmatprep.mubr.msk.f32.mxu0 %vm4117_vm0, %v4118_v8 }
 0xb5f   :  { %3511 = vmatmul.mubr.msk.f32.vlgmr.msra.gmra.mrb[18].mxu1 %vm201_vm1, %v2952_v1 }
 0xb60   :  { %3878 = vmatpush3.bf16.msra.mxu0 %v4201_v12  ;;  %3881 = vmatpush3.bf16.msra.mxu1 %v4192_v9 }
 0xb61   :  { %3882 = vmatprep.subr.bf16.mxu1 %v4116_v0  ;;  %3885 = vmatprep.subr.bf16.mxu0 %v4116_v0 }
 0xb62   :  { %3532 = vmatprep.mubr.msk.f32.mxu1 %vm4117_vm0, %v4118_v8 }
 0xb64   :  { %3884 = vmatpush3.bf16.msra.mxu1 %v4205_v13 }
 0xb65   :  { %3897 = vmatprep.subr.bf16.mxu1 %v4116_v0 }
 0xc1e   :  { %v1560_v3 = vpop.f32.mrb[16].mxu0 }
 0xc1f   :  { %v3463_v6 = vpop.f32.mrb[17].mxu0 }
 0xc22   :  { %v1632_v5 = vpop.f32.mrb[16].mxu1 }
 0xc23   :  { %v3474_v7 = vpop.f32.mrb[17].mxu1 }
 0xc2e   :  { %v1705_v11 = vpop.f32.mrb[18].mxu0 }
 0xc2f   :  { %v1706_v10 = vadd.f32 %v1705_v11, %v1560_v3  ;;  %v3493_v14 = vpop.f32.mrb[19].mxu0 }
 0xc31   :  { %v1709_v16 = vadd.f32 %v4321_v44, %v1706_v10 }
 0xc32   :  { %v1779_v15 = vpop.f32.mrb[18].mxu1 }
 0xc33   :  { %4050 = vtanh.f32 %v1709_v16  ;;  %v1780_v17 = vadd.f32 %v1779_v15, %v1632_v5  ;;  %v3512_v20 = vpop.f32.mrb[19].mxu1  ;;  %v2957_v26 = vmul.f32 -1.442695, %v1709_v16 }
 0xc35   :  { %v1783_v21 = vadd.f32 %v4326_v49, %v1780_v17 }
 0xc37   :  { %4052 = vtanh.f32 %v1783_v21  ;;  %v2958_v27 = vmul.f32 -1.442695, %v1783_v21 }
 0xc38   :  { %4054 = vpow2.f32 %v2957_v26 }
 0xc39   :  { %4056 = vpow2.f32 %v2958_v27 }
 0xc3d   :  { %v4051_v22 = vpop.eup %4050 }
 0xc3e   :  { %1793 = vrot.lane.b32.xlu0 %v4051_v22, %s4119_s11 }
 0xc41   :  { %v4053_v23 = vpop.eup %4052 }
 0xc42   :  { %1817 = vrot.lane.b32.xlu1 %v4053_v23, %s4119_s11  ;;  %v4055_v28 = vpop.eup %4054 }
 0xc43   :  { %v1787_v29 = vadd.f32 1.0, %v4055_v28  ;;  %v4057_v32 = vpop.eup %4056 }
 0xc44   :  { %v1811_v33 = vadd.f32 1.0, %v4057_v32 }
 0xc45   :  { %4058 = vrcp.f32 %v1787_v29 }
 0xc46   :  { %4060 = vrcp.f32 %v1811_v33 }
 0xc4f   :  { %v4059_v34 = vpop.eup %4058 }
 0xc50   :  { %v4061_v39 = vpop.eup %4060  ;;  %v1791_v42 = vmul.f32 %v4059_v34, %v4537_v52 }
 0xc51   :  { %v1815_v46 = vmul.f32 %v4061_v39, %v4541_v55 }
 0xcb0   :  { %v1794_v35 = vpop.permute.xlu0 %1793 }
 0xcb1   :  { %v1796_v38 = vmul.f32 %v4059_v34, %v1794_v35 }
 0xcb3   :  { %1798 = vrot.lane.b32.xlu0 %v1796_v38, %s4120_s12 }
 0xcb4   :  { %v1818_v40 = vpop.permute.xlu1 %1817 }
 0xcb5   :  { %v1820_v41 = vmul.f32 %v4061_v39, %v1818_v40 }
 0xcb7   :  { %1822 = vrot.lane.b32.xlu1 %v1820_v41, %s4120_s12 }
 0xd25   :  { %v1799_v43 = vpop.permute.xlu0 %1798 }
 0xd26   :  { %v4605_v45 = vadd.f32 %v1799_v43, %v1791_v42 }
 0xd28   :  { %4062 = vtanh.f32 %v4605_v45 }
 0xd29   :  { %v1823_v47 = vpop.permute.xlu1 %1822 }
 0xd2a   :  { %v4609_v48 = vadd.f32 %v1823_v47, %v1815_v46 }
 0xd2c   :  { %4064 = vtanh.f32 %v4609_v48 }
 0xd32   :  { %v4063_v50 = vpop.eup %4062 }
 0xd33   :  { %1804 = vrot.lane.b32.xlu0 %v4063_v50, %s4119_s11  ;;  %v2971_v50 = vld [vmem:[%s4822_s0 + $0xc] sm:$0x3] }
 0xd36   :  { %v4065_v51 = vpop.eup %4064 }
 0xd37   :  { %1828 = vrot.lane.b32.xlu1 %v4065_v51, %s4119_s11  ;;  %v2972_v51 = vld [vmem:[%s4822_s0 + $0x2] sm:$0x3] }
 0xda5   :  { %v1805_v53 = vpop.permute.xlu0 %1804 }
 0xda6   :  { %v1807_v52 = vmul.f32 %v4059_v34, %v1805_v53 }
 0xda8   :  { %1833 = vrot.lane.b32.xlu0 %v1807_v52, %s4120_s12 }
 0xda9   :  { %v1829_v54 = vpop.permute.xlu1 %1828 }
 0xdaa   :  { %v1831_v56 = vmul.f32 %v4061_v39, %v1829_v54 }
 0xdac   :  { %1839 = vrot.lane.b32.xlu1 %v1831_v56, %s4120_s12 }
 0xe1a   :  { %v1834_v55 = vpop.permute.xlu0 %1833 }
 0xe1b   :  { %2959 = vst.msk [vmem:[%s4825_s7 + $0x8] sm:$0x3] %vm414_vm2, %v1834_v55  ;;  %3522 = vmatmul.mubr.msk.f32.vlgmr.msra.gmra.mrb[20].mxu0 %vm57_vm3, %v1834_v55 }
 0xe1c   :  { %3887 = vmatpush3.bf16.msra.mxu0 %v4221_v18  ;;  %3551 = vmatprep.mubr.msk.f32.mxu0 %vm4117_vm0, %v4118_v8 }
 0xe1d   :  { %3888 = vmatprep.subr.bf16.mxu0 %v4116_v0 }
 0xe1e   :  { %v1840_v57 = vpop.permute.xlu1 %1839 }
 0xe1f   :  { %2960 = vst.msk [vmem:[%s4826_s8 + $0x6] sm:$0x3] %vm414_vm2, %v1840_v57  ;;  %3533 = vmatmul.mubr.msk.f32.vlgmr.msra.gmra.mrb[20].mxu1 %vm57_vm3, %v1840_v57 }
 0xe20   :  { %3890 = vmatpush3.bf16.msra.mxu0 %v4243_v24  ;;  %3899 = vmatpush3.bf16.msra.mxu1 %v4225_v19 }
 0xe21   :  { %3891 = vmatprep.subr.bf16.mxu0 %v4116_v0  ;;  %3900 = vmatprep.subr.bf16.mxu1 %v4116_v0 }
 0xe22   :  { %3570 = vmatprep.mubr.msk.f32.mxu1 %vm4117_vm0, %v4118_v8 }
 0xe24   :  { %3893 = vmatpush3.bf16.msra.mxu0 %v4267_v30  ;;  %3902 = vmatpush3.bf16.msra.mxu1 %v4247_v25 }
 0xe25   :  { %3894 = vmatprep.subr.bf16.mxu0 %v4116_v0  ;;  %3903 = vmatprep.subr.bf16.mxu1 %v4116_v0 }
 0xe28   :  { %3896 = vmatpush3.bf16.msra.mxu0 %v4287_v36  ;;  %3905 = vmatpush3.bf16.msra.mxu1 %v4271_v31 }
 0xe29   :  { %3906 = vmatprep.subr.bf16.mxu1 %v4116_v0  ;;  %3909 = vmatprep.subr.bf16.mxu0 %v4116_v0 }
 0xe2b   :  { %3552 = vmatmul.mubr.msk.f32.vlgmr.msra.gmra.mrb[22].mxu0 %vm201_vm1, %v2961_v59 }
 0xe2c   :  { %3908 = vmatpush3.bf16.msra.mxu1 %v4291_v37  ;;  %3911 = vmatpush3.bf16.msra.mxu0 %v4177_v4 }
 0xe2d   :  { %3912 = vmatprep.subr.bf16.mxu0 %v4116_v0  ;;  %3915 = vmatprep.subr.bf16.mxu1 %v4116_v0 }
 0xe2e   :  { %3581 = vmatprep.mubr.msk.f32.mxu0 %vm4117_vm0, %v4118_v8 }
 0xe2f   :  { %3571 = vmatmul.mubr.msk.f32.vlgmr.msra.gmra.mrb[22].mxu1 %vm201_vm1, %v2962_v58 }
 0xe30   :  { %3914 = vmatpush3.bf16.msra.mxu0 %v4201_v12  ;;  %3917 = vmatpush3.bf16.msra.mxu1 %v4192_v9 }
 0xe31   :  { %3918 = vmatprep.subr.bf16.mxu1 %v4116_v0  ;;  %3921 = vmatprep.subr.bf16.mxu0 %v4116_v0 }
 0xe32   :  { %3592 = vmatprep.mubr.msk.f32.mxu1 %vm4117_vm0, %v4118_v8 }
 0xe34   :  { %3920 = vmatpush3.bf16.msra.mxu1 %v4205_v13 }
 0xe35   :  { %3933 = vmatprep.subr.bf16.mxu1 %v4116_v0 }
 0xeee   :  { %v1914_v60 = vpop.f32.mrb[20].mxu0 }
 0xeef   :  { %v3523_v62 = vpop.f32.mrb[21].mxu0 }
 0xef2   :  { %v1986_v61 = vpop.f32.mrb[20].mxu1 }
 0xef3   :  { %v3534_v63 = vpop.f32.mrb[21].mxu1 }
 0xefe   :  { %v2059_v2 = vpop.f32.mrb[22].mxu0 }
 0xeff   :  { %v2060_v1 = vadd.f32 %v2059_v2, %v1914_v60  ;;  %v3553_v3 = vpop.f32.mrb[23].mxu0  ;;  %v4743_v60 = vld [vmem:[%s4824_s6] ss:$0 sm:$0xff] }
 0xf01   :  { %v2063_v6 = vadd.f32 %v4321_v44, %v2060_v1 }
 0xf02   :  { %v2133_v5 = vpop.f32.mrb[22].mxu1 }
 0xf03   :  { %4066 = vtanh.f32 %v2063_v6  ;;  %v2134_v7 = vadd.f32 %v2133_v5, %v1986_v61  ;;  %v3572_v11 = vpop.f32.mrb[23].mxu1  ;;  %v2967_v15 = vmul.f32 -1.442695, %v2063_v6 }
 0xf05   :  { %v2137_v10 = vadd.f32 %v4326_v49, %v2134_v7 }
 0xf07   :  { %4068 = vtanh.f32 %v2137_v10  ;;  %v2968_v17 = vmul.f32 -1.442695, %v2137_v10 }
 0xf08   :  { %4070 = vpow2.f32 %v2967_v15 }
 0xf09   :  { %4072 = vpow2.f32 %v2968_v17 }
 0xf0d   :  { %v4067_v14 = vpop.eup %4066 }
 0xf0e   :  { %2147 = vrot.lane.b32.xlu0 %v4067_v14, %s4119_s11 }
 0xf11   :  { %v4069_v16 = vpop.eup %4068 }
 0xf12   :  { %2171 = vrot.lane.b32.xlu1 %v4069_v16, %s4119_s11  ;;  %v4071_v20 = vpop.eup %4070 }
 0xf13   :  { %v2141_v21 = vadd.f32 1.0, %v4071_v20  ;;  %v4073_v44 = vpop.eup %4072 }
 0xf14   :  { %v2165_v22 = vadd.f32 1.0, %v4073_v44 }
 0xf15   :  { %4074 = vrcp.f32 %v2141_v21 }
 0xf16   :  { %4076 = vrcp.f32 %v2165_v22 }
 0xf1f   :  { %v4075_v23 = vpop.eup %4074 }
 0xf20   :  { %v4077_v27 = vpop.eup %4076  ;;  %v2145_v32 = vmul.f32 %v4075_v23, %v4605_v45 }
 0xf21   :  { %v2169_v35 = vmul.f32 %v4077_v27, %v4609_v48 }
 0xf80   :  { %v2148_v26 = vpop.permute.xlu0 %2147 }
 0xf81   :  { %v2150_v49 = vmul.f32 %v4075_v23, %v2148_v26 }
 0xf83   :  { %2152 = vrot.lane.b32.xlu0 %v2150_v49, %s4120_s12 }
 0xf84   :  { %v2172_v28 = vpop.permute.xlu1 %2171 }
 0xf85   :  { %v2174_v29 = vmul.f32 %v4077_v27, %v2172_v28 }
 0xf87   :  { %2176 = vrot.lane.b32.xlu1 %v2174_v29, %s4120_s12 }
 0xff5   :  { %v2153_v33 = vpop.permute.xlu0 %2152 }
 0xff6   :  { %v4673_v34 = vadd.f32 %v2153_v33, %v2145_v32 }
 0xff8   :  { %4078 = vtanh.f32 %v4673_v34 }
 0xff9   :  { %v2177_v38 = vpop.permute.xlu1 %2176 }
 0xffa   :  { %v4677_v39 = vadd.f32 %v2177_v38, %v2169_v35 }
 0xffc   :  { %4080 = vtanh.f32 %v4677_v39 }
0x1002   :  { %v4079_v40 = vpop.eup %4078 }
0x1003   :  { %2158 = vrot.lane.b32.xlu0 %v4079_v40, %s4119_s11 }
0x1006   :  { %v4081_v41 = vpop.eup %4080 }
0x1007   :  { %2182 = vrot.lane.b32.xlu1 %v4081_v41, %s4119_s11 }
0x1075   :  { %v2159_v42 = vpop.permute.xlu0 %2158 }
0x1076   :  { %v2161_v43 = vmul.f32 %v4075_v23, %v2159_v42 }
0x1078   :  { %2187 = vrot.lane.b32.xlu0 %v2161_v43, %s4120_s12 }
0x1079   :  { %v2183_v45 = vpop.permute.xlu1 %2182 }
0x107a   :  { %v2185_v46 = vmul.f32 %v4077_v27, %v2183_v45 }
0x107c   :  { %2193 = vrot.lane.b32.xlu1 %v2185_v46, %s4120_s12 }
0x10ea   :  { %v2188_v47 = vpop.permute.xlu0 %2187 }
0x10eb   :  { %2969 = vst.msk [vmem:[%s4825_s7 + $0xa] sm:$0x3] %vm414_vm2, %v2188_v47  ;;  %3582 = vmatmul.mubr.msk.f32.vlgmr.msra.gmra.mrb[24].mxu0 %vm57_vm3, %v2188_v47 }
0x10ec   :  { %3923 = vmatpush3.bf16.msra.mxu0 %v4221_v18  ;;  %3611 = vmatprep.mubr.msk.f32.mxu0 %vm4117_vm0, %v4118_v8 }
0x10ed   :  { %3924 = vmatprep.subr.bf16.mxu0 %v4116_v0 }
0x10ee   :  { %v2194_v48 = vpop.permute.xlu1 %2193 }
0x10ef   :  { %2970 = vst.msk [vmem:[%s4826_s8 + $0x4] sm:$0x3] %vm414_vm2, %v2194_v48  ;;  %3593 = vmatmul.mubr.msk.f32.vlgmr.msra.gmra.mrb[24].mxu1 %vm57_vm3, %v2194_v48 }
0x10f0   :  { %3926 = vmatpush3.bf16.msra.mxu0 %v4243_v24  ;;  %3935 = vmatpush3.bf16.msra.mxu1 %v4225_v19 }
0x10f1   :  { %3927 = vmatprep.subr.bf16.mxu0 %v4116_v0  ;;  %3936 = vmatprep.subr.bf16.mxu1 %v4116_v0 }
0x10f2   :  { %3630 = vmatprep.mubr.msk.f32.mxu1 %vm4117_vm0, %v4118_v8 }
0x10f4   :  { %3929 = vmatpush3.bf16.msra.mxu0 %v4267_v30  ;;  %3938 = vmatpush3.bf16.msra.mxu1 %v4247_v25 }
0x10f5   :  { %3930 = vmatprep.subr.bf16.mxu0 %v4116_v0  ;;  %3939 = vmatprep.subr.bf16.mxu1 %v4116_v0 }
0x10f8   :  { %3932 = vmatpush3.bf16.msra.mxu0 %v4287_v36  ;;  %3941 = vmatpush3.bf16.msra.mxu1 %v4271_v31 }
0x10f9   :  { %3942 = vmatprep.subr.bf16.mxu1 %v4116_v0  ;;  %3945 = vmatprep.subr.bf16.mxu0 %v4116_v0 }
0x10fb   :  { %3612 = vmatmul.mubr.msk.f32.vlgmr.msra.gmra.mrb[26].mxu0 %vm201_vm1, %v2971_v50 }
0x10fc   :  { %3944 = vmatpush3.bf16.msra.mxu1 %v4291_v37  ;;  %3947 = vmatpush3.bf16.msra.mxu0 %v4177_v4 }
0x10fd   :  { %3948 = vmatprep.subr.bf16.mxu0 %v4116_v0  ;;  %3951 = vmatprep.subr.bf16.mxu1 %v4116_v0 }
0x10fe   :  { %3641 = vmatprep.mubr.msk.f32.mxu0 %vm4117_vm0, %v4118_v8 }
0x10ff   :  { %3631 = vmatmul.mubr.msk.f32.vlgmr.msra.gmra.mrb[26].mxu1 %vm201_vm1, %v2972_v51 }
0x1100   :  { %3950 = vmatpush3.bf16.msra.mxu0 %v4201_v12  ;;  %3953 = vmatpush3.bf16.msra.mxu1 %v4192_v9  ;;  %v4737_v9 = vld [vmem:[%s4823_s3] ss:$0 sm:$0xff] }
0x1101   :  { %3954 = vmatprep.subr.bf16.mxu1 %v4116_v0  ;;  %3957 = vmatprep.subr.bf16.mxu0 %v4116_v0 }
0x1102   :  { %3652 = vmatprep.mubr.msk.f32.mxu1 %vm4117_vm0, %v4118_v8 }
0x1104   :  { %3956 = vmatpush3.bf16.msra.mxu1 %v4205_v13 }
0x1105   :  { %3969 = vmatprep.subr.bf16.mxu1 %v4116_v0 }
0x11be   :  { %v2268_v4 = vpop.f32.mrb[24].mxu0 }
0x11bf   :  { %v3583_v53 = vpop.f32.mrb[25].mxu0 }
0x11c2   :  { %v2340_v52 = vpop.f32.mrb[24].mxu1 }
0x11c3   :  { %v3594_v54 = vpop.f32.mrb[25].mxu1 }
0x11ce   :  { %v2413_v56 = vpop.f32.mrb[26].mxu0 }
0x11cf   :  { %v2414_v55 = vadd.f32 %v2413_v56, %v2268_v4  ;;  %v3613_v12 = vpop.f32.mrb[27].mxu0 }
0x11d1   :  { %v2417_v57 = vadd.f32 %v4737_v9, %v2414_v55 }
0x11d2   :  { %v2487_v59 = vpop.f32.mrb[26].mxu1 }
0x11d3   :  { %4082 = vtanh.f32 %v2417_v57  ;;  %v2488_v58 = vadd.f32 %v2487_v59, %v2340_v52  ;;  %v3632_v13 = vpop.f32.mrb[27].mxu1  ;;  %v2977_v2 = vmul.f32 -1.442695, %v2417_v57 }
0x11d5   :  { %v2491_v62 = vadd.f32 %v4743_v60, %v2488_v58 }
0x11d7   :  { %4084 = vtanh.f32 %v2491_v62  ;;  %v2978_v1 = vmul.f32 -1.442695, %v2491_v62 }
0x11d8   :  { %4086 = vpow2.f32 %v2977_v2 }
0x11d9   :  { %4088 = vpow2.f32 %v2978_v1 }
0x11dd   :  { %v4083_v61 = vpop.eup %4082 }
0x11de   :  { %2501 = vrot.lane.b32.xlu0 %v4083_v61, %s4119_s11 }
0x11e1   :  { %v4085_v63 = vpop.eup %4084 }
0x11e2   :  { %2525 = vrot.lane.b32.xlu1 %v4085_v63, %s4119_s11  ;;  %v4087_v3 = vpop.eup %4086 }
0x11e3   :  { %v2495_v6 = vadd.f32 1.0, %v4087_v3  ;;  %v4089_v5 = vpop.eup %4088 }
0x11e4   :  { %v2519_v7 = vadd.f32 1.0, %v4089_v5 }
0x11e5   :  { %4090 = vrcp.f32 %v2495_v6 }
0x11e6   :  { %4092 = vrcp.f32 %v2519_v7 }
0x11ef   :  { %v4091_v11 = vpop.eup %4090 }
0x11f0   :  { %v4093_v16 = vpop.eup %4092  ;;  %v2499_v20 = vmul.f32 %v4091_v11, %v4673_v34 }
0x11f1   :  { %v2523_v22 = vmul.f32 %v4093_v16, %v4677_v39 }
0x1250   :  { %v2502_v10 = vpop.permute.xlu0 %2501 }
0x1251   :  { %v2504_v14 = vmul.f32 %v4091_v11, %v2502_v10 }
0x1253   :  { %2506 = vrot.lane.b32.xlu0 %v2504_v14, %s4120_s12 }
0x1254   :  { %v2526_v15 = vpop.permute.xlu1 %2525 }
0x1255   :  { %v2528_v17 = vmul.f32 %v4093_v16, %v2526_v15 }
0x1257   :  { %2530 = vrot.lane.b32.xlu1 %v2528_v17, %s4120_s12 }
0x12c5   :  { %v2507_v21 = vpop.permute.xlu0 %2506 }
0x12c6   :  { %v4751_v44 = vadd.f32 %v2507_v21, %v2499_v20 }
0x12c8   :  { %4094 = vtanh.f32 %v4751_v44 }
0x12c9   :  { %v2531_v23 = vpop.permute.xlu1 %2530 }
0x12ca   :  { %v4755_v26 = vadd.f32 %v2531_v23, %v2523_v22 }
0x12cc   :  { %4096 = vtanh.f32 %v4755_v26 }
0x12d2   :  { %v4095_v49 = vpop.eup %4094 }
0x12d3   :  { %2512 = vrot.lane.b32.xlu0 %v4095_v49, %s4119_s11 }
0x12d6   :  { %v4097_v27 = vpop.eup %4096 }
0x12d7   :  { %2536 = vrot.lane.b32.xlu1 %v4097_v27, %s4119_s11 }
0x1345   :  { %v2513_v28 = vpop.permute.xlu0 %2512 }
0x1346   :  { %v2515_v29 = vmul.f32 %v4091_v11, %v2513_v28 }
0x1348   :  { %2541 = vrot.lane.b32.xlu0 %v2515_v29, %s4120_s12 }
0x1349   :  { %v2537_v32 = vpop.permute.xlu1 %2536 }
0x134a   :  { %v2539_v33 = vmul.f32 %v4093_v16, %v2537_v32 }
0x134c   :  { %2547 = vrot.lane.b32.xlu1 %v2539_v33, %s4120_s12 }
0x13ba   :  { %v2542_v34 = vpop.permute.xlu0 %2541 }
0x13bb   :  { %2979 = vst.msk [vmem:[%s4825_s7 + $0xc] sm:$0x3] %vm414_vm2, %v2542_v34  ;;  %3642 = vmatmul.mubr.msk.f32.vlgmr.msra.gmra.mrb[28].mxu0 %vm57_vm3, %v2542_v34 }
0x13bc   :  { %3959 = vmatpush3.bf16.msra.mxu0 %v4221_v18  ;;  %3671 = vmatprep.mubr.msk.f32.mxu0 %vm4117_vm0, %v4118_v8  ;;  %v2981_v18 = vld [vmem:[%s4822_s0 + $0xe] sm:$0x3] }
0x13bd   :  { %3960 = vmatprep.subr.bf16.mxu0 %v4116_v0 }
0x13be   :  { %v2548_v35 = vpop.permute.xlu1 %2547 }
0x13bf   :  { %2980 = vst.msk [vmem:[%s4826_s8 + $0x2] sm:$0x3] %vm414_vm2, %v2548_v35  ;;  %3653 = vmatmul.mubr.msk.f32.vlgmr.msra.gmra.mrb[28].mxu1 %vm57_vm3, %v2548_v35 }
0x13c0   :  { %3962 = vmatpush3.bf16.msra.mxu0 %v4243_v24  ;;  %3971 = vmatpush3.bf16.msra.mxu1 %v4225_v19 }
0x13c1   :  { %3963 = vmatprep.subr.bf16.mxu0 %v4116_v0  ;;  %3972 = vmatprep.subr.bf16.mxu1 %v4116_v0 }
0x13c2   :  { %3690 = vmatprep.mubr.msk.f32.mxu1 %vm4117_vm0, %v4118_v8  ;;  %v2553_v8 = vld [vmem:[%s4822_s0] sm:$0x3] }
0x13c4   :  { %3965 = vmatpush3.bf16.msra.mxu0 %v4267_v30  ;;  %3974 = vmatpush3.bf16.msra.mxu1 %v4247_v25 }
0x13c5   :  { %3966 = vmatprep.subr.bf16.mxu0 %v4116_v0  ;;  %3975 = vmatprep.subr.bf16.mxu1 %v4116_v0 }
0x13c8   :  { %3968 = vmatpush3.bf16.msra.mxu0 %v4287_v36  ;;  %3977 = vmatpush3.bf16.msra.mxu1 %v4271_v31 }
0x13c9   :  { %3978 = vmatprep.subr.bf16.mxu1 %v4116_v0 }
0x13cb   :  { %3672 = vmatmul.mubr.msk.f32.vlgmr.msra.gmra.mrb[30].mxu0 %vm201_vm1, %v2981_v18 }
0x13cc   :  { %3980 = vmatpush3.bf16.msra.mxu1 %v4291_v37 }
0x13cf   :  { %3691 = vmatmul.mubr.msk.f32.vlgmr.msra.gmra.mrb[30].mxu1 %vm201_vm1, %v2553_v8 }
0x148e   :  { %v2622_v19 = vpop.f32.mrb[28].mxu0 }
0x148f   :  { %v3643_v24 = vpop.f32.mrb[29].mxu0 }
0x1492   :  { %v2694_v25 = vpop.f32.mrb[28].mxu1 }
0x1493   :  { %v3654_v30 = vpop.f32.mrb[29].mxu1 }
0x149e   :  { %v2767_v31 = vpop.f32.mrb[30].mxu0 }
0x149f   :  { %v2768_v36 = vadd.f32 %v2767_v31, %v2622_v19  ;;  %v3673_v38 = vpop.f32.mrb[31].mxu0 }
0x14a1   :  { %v2771_v39 = vadd.f32 %v4737_v9, %v2768_v36 }
0x14a2   :  { %v2841_v0 = vpop.f32.mrb[30].mxu1 }
0x14a3   :  { %4098 = vtanh.f32 %v2771_v39  ;;  %v2842_v40 = vadd.f32 %v2841_v0, %v2694_v25  ;;  %v3692_v41 = vpop.f32.mrb[31].mxu1  ;;  %v2986_v45 = vmul.f32 -1.442695, %v2771_v39 }
0x14a5   :  { %v2845_v37 = vadd.f32 %v4743_v60, %v2842_v40 }
0x14a7   :  { %4100 = vtanh.f32 %v2845_v37  ;;  %v2987_v46 = vmul.f32 -1.442695, %v2845_v37 }
0x14a8   :  { %4102 = vpow2.f32 %v2986_v45 }
0x14a9   :  { %4104 = vpow2.f32 %v2987_v46 }
0x14ad   :  { %v4099_v42 = vpop.eup %4098 }
0x14ae   :  { %2855 = vrot.lane.b32.xlu0 %v4099_v42, %s4119_s11 }
0x14b1   :  { %v4101_v43 = vpop.eup %4100 }
0x14b2   :  { %2879 = vrot.lane.b32.xlu1 %v4101_v43, %s4119_s11  ;;  %v4103_v47 = vpop.eup %4102 }
0x14b3   :  { %v2849_v48 = vadd.f32 1.0, %v4103_v47  ;;  %v4105_v50 = vpop.eup %4104 }
0x14b4   :  { %v2873_v51 = vadd.f32 1.0, %v4105_v50 }
0x14b5   :  { %4106 = vrcp.f32 %v2849_v48 }
0x14b6   :  { %4108 = vrcp.f32 %v2873_v51 }
0x14bf   :  { %v4107_v4 = vpop.eup %4106 }
0x14c0   :  { %v4109_v54 = vpop.eup %4108  ;;  %v2853_v12 = vmul.f32 %v4107_v4, %v4751_v44 }
0x14c1   :  { %v2877_v59 = vmul.f32 %v4109_v54, %v4755_v26 }
0x1520   :  { %v2856_v53 = vpop.permute.xlu0 %2855 }
0x1521   :  { %v2858_v52 = vmul.f32 %v4107_v4, %v2856_v53 }
0x1523   :  { %2860 = vrot.lane.b32.xlu0 %v2858_v52, %s4120_s12 }
0x1524   :  { %v2880_v56 = vpop.permute.xlu1 %2879 }
0x1525   :  { %v2882_v55 = vmul.f32 %v4109_v54, %v2880_v56 }
0x1527   :  { %2884 = vrot.lane.b32.xlu1 %v2882_v55, %s4120_s12 }
0x1595   :  { %v2861_v9 = vpop.permute.xlu0 %2860 }
0x1596   :  { %v2863_v57 = vadd.f32 %v2861_v9, %v2853_v12 }
0x1598   :  { %4110 = vtanh.f32 %v2863_v57 }
0x1599   :  { %v2885_v58 = vpop.permute.xlu1 %2884 }
0x159a   :  { %v2887_v13 = vadd.f32 %v2885_v58, %v2877_v59 }
0x159c   :  { %4112 = vtanh.f32 %v2887_v13 }
0x15a2   :  { %v4111_v60 = vpop.eup %4110 }
0x15a3   :  { %2866 = vrot.lane.b32.xlu0 %v4111_v60, %s4119_s11 }
0x15a6   :  { %v4113_v62 = vpop.eup %4112 }
0x15a7   :  { %2890 = vrot.lane.b32.xlu1 %v4113_v62, %s4119_s11 }
0x1615   :  { %v2867_v61 = vpop.permute.xlu0 %2866 }
0x1616   :  { %v2869_v63 = vmul.f32 %v4107_v4, %v2867_v61 }
0x1618   :  { %2895 = vrot.lane.b32.xlu0 %v2869_v63, %s4120_s12 }
0x1619   :  { %v2891_v2 = vpop.permute.xlu1 %2890 }
0x161a   :  { %v2893_v1 = vmul.f32 %v4109_v54, %v2891_v2 }
0x161c   :  { %2901 = vrot.lane.b32.xlu1 %v2893_v1, %s4120_s12 }
0x168a   :  { %v2896_v3 = vpop.permute.xlu0 %2895 }
0x168b   :  { %2988 = vst.msk [vmem:[%s4825_s7 + $0xe] sm:$0x3] %vm414_vm2, %v2896_v3 }
0x168e   :  { %v2902_v6 = vpop.permute.xlu1 %2901 }
0x168f   :  { %2904 = vst.msk [vmem:[%s4826_s8] sm:$0x3] %vm414_vm2, %v2902_v6 }

// kernel: bilstm_forward.2
= control target key start
LH: loop header
LB: loop body
LE: loop exit
PB: predicated region body
PF: predicated region fallthrough
CT: control target
= control target key end

     0   :  { %14 = vsyncpa [#allocation3], 0  ;;  %s3714_s27 = smov [#allocation2]   ;;  %s4275_s0 = inlined_call_operand.vmem [shape: f32[8,2,16], index: 0, kind: input, shape index: {}]   ;;  %s4276_s1 = inlined_call_operand.vmem [shape: f32[16,128], index: 1, kind: input, shape index: {}]   ;;  %s4277_s2 = inlined_call_operand.vmem [shape: f32[32,128], index: 2, kind: input, shape index: {}]   ;;  %s4278_s3 = inlined_call_operand.vmem [shape: f32[1,128], index: 3, kind: input, shape index: {}]   ;;  %s4279_s4 = inlined_call_operand.hbm [shape: f32[16,128], index: 4, kind: input, shape index: {}]   ;;  %s4280_s5 = inlined_call_operand.vmem [shape: f32[32,128], index: 5, kind: input, shape index: {}]   ;;  %s4281_s6 = inlined_call_operand.vmem [shape: f32[1,128], index: 6, kind: input, shape index: {}]   ;;  %s4282_s7 = inlined_call_operand.vmem [shape: f32[8,2,32], index: 7, kind: output, shape index: {0}]   ;;  %s4283_s8 = inlined_call_operand.vmem [shape: f32[8,2,32], index: 8, kind: output, shape index: {1}]  }
   0x1   :  { %s28_s28 = sshll.u32 %s3714_s27, 4  ;;  %s3690_s9 = scalar_lea.hbm %s4279_s4, 256  ;;  %s29_s28 = int_to_ptr.vmem [resolvable:$true] %s28_s28 }
   0x2   :  { %p3691_p0 = scmp.ne.s32.totalorder %s4279_s4, %s3690_s9  ;;  %p3694_p1 = scmp.lt.u32.totalorder %s3690_s9, %s4279_s4 }
   0x4   :  { %p3696_p2 = pnand %p3694_p1, %p3691_p0 }
   0x6   :  { %3699 = shalt.err (!%p3696_p2)
}
   0x7   :  { %s3700_s14 = scalar_lea.vmem %s29_s28, 256  ;;  %p3705_p4 = scmp.lt.s32.totalorder %s29_s28, %s29_s28 }
   0x8   :  { %p3701_p3 = scmp.ne.s32.totalorder %s29_s28, %s3700_s14  ;;  %p3706_p5 = scmp.lt.s32.totalorder %s3700_s14, %s3700_s14 }
   0xa   :  { %p3707_p6 = por %p3706_p5, %p3705_p4 }
   0xc   :  { %p3708_p7 = pnand %p3707_p6, %p3701_p3 }
   0xe   :  { %3711 = shalt.err (!%p3708_p7)
}
   0xf   :  { %s3715_s15 = smov 128   ;;  %s3716_s16 = smov 8  }
  0x10   :  { %34 = dma.hbm_to_vmem [thread:$0]  %s4279_s4, 256, %s29_s28, [#allocation3], %s3715_s15, %s3715_s15, %s3716_s16  }
  0x11   :  { %3712 = dma.done.wait [#allocation3], 256  }
  0x12   :  { %3713 = vsyncadd [#allocation3], 4294967040  ;;  %v3717_v0 = vmov 0.0|0.0   ;;  %vm3718_vm0 = vmmov 0   ;;  %v3719_v1 = vmov 0.0   ;;  %v44_v2 = vld [vmem:[%s4277_s2] sm:$0xff] }
  0x13   :  { %3408 = vmatprep.subr.bf16.mxu0 %v3717_v0  ;;  %3414 = vmatprep.subr.bf16.mxu1 %v3717_v0  ;;  %v45_v3 = vld [vmem:[%s4277_s2 + $0x8] sm:$0xff]  ;;  %v51_v4 = vld [vmem:[%s4280_s5] sm:$0xff]  ;;  %v46_v7 = vld [vmem:[%s4277_s2 + $0x10] sm:$0xff]  ;;  %vm203_vm1 = vcmask 130048   ;;  %s3720_s4 = smov 64   ;;  %s3721_s21 = smov 32  }
  0x14   :  { %3128 = vmatprep.mubr.msk.f32.mxu0 %vm3718_vm0, %v3719_v1  ;;  %3139 = vmatprep.mubr.msk.f32.mxu1 %vm3718_vm0, %v3719_v1  ;;  %v3794_v5 = vpack.c.bf16 %v45_v3, %v44_v2  ;;  %v52_v6 = vld [vmem:[%s4280_s5 + $0x8] sm:$0xff]  ;;  %v47_v8 = vld [vmem:[%s4277_s2 + $0x18] sm:$0xff]  ;;  %v53_v10 = vld [vmem:[%s4280_s5 + $0x10] sm:$0xff]  ;;  %vm416_vm2 = vcmask 254976   ;;  %vm59_vm3 = vcmask 261120  }
  0x15   :  { %v3805_v9 = vpack.c.bf16 %v52_v6, %v51_v4  ;;  %v54_v11 = vld [vmem:[%s4280_s5 + $0x18] sm:$0xff]  ;;  %v3814_v12 = vpack.c.bf16 %v47_v8, %v46_v7  ;;  %v42_v14 = vld [vmem:[%s4276_s1] sm:$0xff]  ;;  %v43_v15 = vld [vmem:[%s4276_s1 + $0x8] sm:$0xff] }
  0x16   :  { %3410 = vmatpush3.bf16.msra.mxu0 %v3794_v5  ;;  %v3818_v13 = vpack.c.bf16 %v54_v11, %v53_v10  ;;  %v49_v16 = vld [vmem:[#allocation2] sm:$0xff]  ;;  %v50_v17 = vld [vmem:[#allocation2 + $0x8] sm:$0xff]  ;;  %v3828_v18 = vpack.c.bf16 %v43_v15, %v42_v14 }
  0x17   :  { %3416 = vmatpush3.bf16.msra.mxu1 %v3805_v9  ;;  %3411 = vmatprep.subr.bf16.mxu0 %v3717_v0  ;;  %v3832_v19 = vpack.c.bf16 %v50_v17, %v49_v16  ;;  %v56_v20 = vld [vmem:[%s4275_s0] sm:$0x3]  ;;  %v2916_v21 = vld [vmem:[%s4275_s0 + $0xe] sm:$0x3]  ;;  %v2924_v63 = vld [vmem:[%s4275_s0 + $0x2] sm:$0x3] }
  0x18   :  { %3417 = vmatprep.subr.bf16.mxu1 %v3717_v0  ;;  %v3868_v26 = vld [vmem:[%s4278_s3] ss:$0 sm:$0xff]  ;;  %v2925_v3 = vld [vmem:[%s4275_s0 + $0xc] sm:$0x3] }
  0x19   :  { %v3873_v31 = vld [vmem:[%s4281_s6] ss:$0 sm:$0xff] }
  0x1a   :  { %3413 = vmatpush3.bf16.msra.mxu0 %v3814_v12 }
  0x1b   :  { %3419 = vmatpush3.bf16.msra.mxu1 %v3818_v13  ;;  %3420 = vmatprep.subr.bf16.mxu0 %v3717_v0 }
  0x1c   :  { %3423 = vmatprep.subr.bf16.mxu1 %v3717_v0 }
  0x1d   :  { %3129 = vmatmul.mubr.f32.vlgmr.msra.gmra.mrb[0].mxu0 %v3719_v1 }
  0x1e   :  { %3140 = vmatmul.mubr.f32.vlgmr.msra.gmra.mrb[0].mxu1 %v3719_v1  ;;  %3422 = vmatpush3.bf16.msra.mxu0 %v3828_v18 }
  0x1f   :  { %3425 = vmatpush3.bf16.msra.mxu1 %v3832_v19  ;;  %3146 = vmatprep.mubr.msk.f32.mxu0 %vm3718_vm0, %v3719_v1 }
  0x20   :  { %3153 = vmatprep.mubr.msk.f32.mxu1 %vm3718_vm0, %v3719_v1  ;;  %3426 = vmatprep.subr.bf16.mxu0 %v3717_v0 }
  0x21   :  { %3147 = vmatmul.mubr.msk.f32.vlgmr.msra.gmra.mrb[2].mxu0 %vm203_vm1, %v56_v20  ;;  %3432 = vmatprep.subr.bf16.mxu1 %v3717_v0 }
  0x22   :  { %3154 = vmatmul.mubr.msk.f32.vlgmr.msra.gmra.mrb[2].mxu1 %vm203_vm1, %v2916_v21  ;;  %3428 = vmatpush3.bf16.msra.mxu0 %v3794_v5 }
  0x23   :  { %3429 = vmatprep.subr.bf16.mxu0 %v3717_v0  ;;  %3434 = vmatpush3.bf16.msra.mxu1 %v3805_v9 }
  0x24   :  { %3164 = vmatprep.mubr.msk.f32.mxu0 %vm3718_vm0, %v3719_v1  ;;  %3435 = vmatprep.subr.bf16.mxu1 %v3717_v0 }
  0x25   :  { %3175 = vmatprep.mubr.msk.f32.mxu1 %vm3718_vm0, %v3719_v1 }
  0x26   :  { %3431 = vmatpush3.bf16.msra.mxu0 %v3814_v12 }
  0x27   :  { %3438 = vmatprep.subr.bf16.mxu0 %v3717_v0  ;;  %3437 = vmatpush3.bf16.msra.mxu1 %v3818_v13 }
  0x28   :  { %3441 = vmatprep.subr.bf16.mxu1 %v3717_v0 }
  0xf0   :  { %v129_v22 = vpop.f32.mrb[0].mxu0 }
  0xf1   :  { %v3130_v23 = vpop.f32.mrb[1].mxu0  ;;  %v199_v24 = vpop.f32.mrb[0].mxu1 }
  0xf2   :  { %v3141_v25 = vpop.f32.mrb[1].mxu1 }
  0xf4   :  { %v273_v27 = vpop.f32.mrb[2].mxu0 }
  0xf5   :  { %v274_v28 = vadd.f32 %v273_v27, %v129_v22  ;;  %v3148_v29 = vpop.f32.mrb[3].mxu0  ;;  %v353_v30 = vpop.f32.mrb[2].mxu1 }
  0xf6   :  { %v354_v32 = vadd.f32 %v353_v30, %v199_v24  ;;  %v3155_v33 = vpop.f32.mrb[3].mxu1 }
  0xf7   :  { %v283_v34 = vadd.f32 %v3868_v26, %v274_v28 }
  0xf8   :  { %v363_v35 = vadd.f32 %v3873_v31, %v354_v32 }
  0xf9   :  { %3560 = vtanh.f32 %v283_v34  ;;  %v2921_v38 = vmul.f32 -1.442695, %v283_v34 }
  0xfa   :  { %3562 = vtanh.f32 %v363_v35  ;;  %v2922_v39 = vmul.f32 -1.442695, %v363_v35 }
  0xfb   :  { %3564 = vpow2.f32 %v2921_v38 }
  0xfc   :  { %3566 = vpow2.f32 %v2922_v39 }
 0x103   :  { %v3561_v36 = vpop.eup %3560 }
 0x104   :  { %373 = vrot.lane.b32.xlu0 %v3561_v36, %s3720_s4  ;;  %v3563_v37 = vpop.eup %3562 }
 0x105   :  { %v3565_v40 = vpop.eup %3564 }
 0x106   :  { %v367_v41 = vadd.f32 1.0, %v3565_v40  ;;  %v3567_v42 = vpop.eup %3566 }
 0x107   :  { %v391_v43 = vadd.f32 1.0, %v3567_v42 }
 0x108   :  { %397 = vrot.lane.b32.xlu0 %v3563_v37, %s3720_s4  ;;  %3568 = vrcp.f32 %v367_v41 }
 0x109   :  { %3570 = vrcp.f32 %v391_v43 }
 0x112   :  { %v3569_v44 = vpop.eup %3568 }
 0x113   :  { %v3571_v47 = vpop.eup %3570  ;;  %v371_v50 = vmul.f32 0.0, %v3569_v44 }
 0x114   :  { %v395_v53 = vmul.f32 0.0, %v3571_v47 }
 0x176   :  { %v374_v45 = vpop.permute.xlu0 %373 }
 0x177   :  { %v376_v46 = vmul.f32 %v3569_v44, %v374_v45 }
 0x179   :  { %378 = vrot.lane.b32.xlu1 %v376_v46, %s3721_s21 }
 0x17a   :  { %v398_v48 = vpop.permute.xlu0 %397 }
 0x17b   :  { %v400_v49 = vmul.f32 %v3571_v47, %v398_v48 }
 0x17d   :  { %402 = vrot.lane.b32.xlu1 %v400_v49, %s3721_s21 }
 0x1eb   :  { %v379_v51 = vpop.permute.xlu1 %378 }
 0x1ec   :  { %v3881_v52 = vadd.f32 %v379_v51, %v371_v50  ;;  %v2934_v51 = vld [vmem:[%s4275_s0 + $0x4] sm:$0x3] }
 0x1ee   :  { %3572 = vtanh.f32 %v3881_v52 }
 0x1ef   :  { %v403_v54 = vpop.permute.xlu1 %402 }
 0x1f0   :  { %v3884_v55 = vadd.f32 %v403_v54, %v395_v53  ;;  %v2935_v53 = vld [vmem:[%s4275_s0 + $0xa] sm:$0x3] }
 0x1f2   :  { %3574 = vtanh.f32 %v3884_v55 }
 0x1f8   :  { %v3573_v56 = vpop.eup %3572 }
 0x1f9   :  { %384 = vrot.lane.b32.xlu0 %v3573_v56, %s3720_s4 }
 0x1fc   :  { %v3575_v57 = vpop.eup %3574 }
 0x1fd   :  { %408 = vrot.lane.b32.xlu1 %v3575_v57, %s3720_s4 }
 0x26b   :  { %v385_v58 = vpop.permute.xlu0 %384 }
 0x26c   :  { %v387_v59 = vmul.f32 %v3569_v44, %v385_v58 }
 0x26e   :  { %413 = vrot.lane.b32.xlu0 %v387_v59, %s3721_s21 }
 0x26f   :  { %v409_v60 = vpop.permute.xlu1 %408 }
 0x270   :  { %v411_v61 = vmul.f32 %v3571_v47, %v409_v60 }
 0x272   :  { %419 = vrot.lane.b32.xlu1 %v411_v61, %s3721_s21 }
 0x2e0   :  { %v414_v62 = vpop.permute.xlu0 %413 }
 0x2e1   :  { %417 = vst.msk [vmem:[%s4282_s7] sm:$0x3] %vm416_vm2, %v414_v62  ;;  %3165 = vmatmul.mubr.msk.f32.vlgmr.msra.gmra.mrb[4].mxu0 %vm59_vm3, %v414_v62 }
 0x2e2   :  { %3440 = vmatpush3.bf16.msra.mxu0 %v3828_v18  ;;  %3182 = vmatprep.mubr.msk.f32.mxu0 %vm3718_vm0, %v3719_v1 }
 0x2e3   :  { %3444 = vmatprep.subr.bf16.mxu0 %v3717_v0 }
 0x2e4   :  { %v420_v2 = vpop.permute.xlu1 %419 }
 0x2e5   :  { %2923 = vst.msk [vmem:[%s4283_s8 + $0xe] sm:$0x3] %vm416_vm2, %v420_v2  ;;  %3176 = vmatmul.mubr.msk.f32.vlgmr.msra.gmra.mrb[4].mxu1 %vm59_vm3, %v420_v2  ;;  %3183 = vmatmul.mubr.msk.f32.vlgmr.msra.gmra.mrb[6].mxu0 %vm203_vm1, %v2924_v63 }
 0x2e6   :  { %3443 = vmatpush3.bf16.msra.mxu1 %v3832_v19  ;;  %3189 = vmatprep.mubr.msk.f32.mxu1 %vm3718_vm0, %v3719_v1 }
 0x2e7   :  { %3446 = vmatpush3.bf16.msra.mxu0 %v3794_v5  ;;  %3450 = vmatprep.subr.bf16.mxu1 %v3717_v0 }
 0x2e8   :  { %3447 = vmatprep.subr.bf16.mxu0 %v3717_v0  ;;  %3200 = vmatprep.mubr.msk.f32.mxu0 %vm3718_vm0, %v3719_v1 }
 0x2e9   :  { %3190 = vmatmul.mubr.msk.f32.vlgmr.msra.gmra.mrb[6].mxu1 %vm203_vm1, %v2925_v3 }
 0x2ea   :  { %3452 = vmatpush3.bf16.msra.mxu1 %v3805_v9  ;;  %3211 = vmatprep.mubr.msk.f32.mxu1 %vm3718_vm0, %v3719_v1 }
 0x2eb   :  { %3449 = vmatpush3.bf16.msra.mxu0 %v3814_v12  ;;  %3453 = vmatprep.subr.bf16.mxu1 %v3717_v0 }
 0x2ec   :  { %3456 = vmatprep.subr.bf16.mxu0 %v3717_v0 }
 0x2ee   :  { %3455 = vmatpush3.bf16.msra.mxu1 %v3818_v13 }
 0x2ef   :  { %3459 = vmatprep.subr.bf16.mxu1 %v3717_v0 }
 0x3b4   :  { %v496_v4 = vpop.f32.mrb[4].mxu0 }
 0x3b5   :  { %v3166_v6 = vpop.f32.mrb[5].mxu0 }
 0x3b8   :  { %v568_v7 = vpop.f32.mrb[4].mxu1  ;;  %v641_v8 = vpop.f32.mrb[6].mxu0 }
 0x3b9   :  { %v642_v10 = vadd.f32 %v641_v8, %v496_v4  ;;  %v3177_v11 = vpop.f32.mrb[5].mxu1  ;;  %v3184_v14 = vpop.f32.mrb[7].mxu0 }
 0x3bb   :  { %v645_v15 = vadd.f32 %v3868_v26, %v642_v10 }
 0x3bc   :  { %v715_v16 = vpop.f32.mrb[6].mxu1 }
 0x3bd   :  { %3576 = vtanh.f32 %v645_v15  ;;  %v716_v17 = vadd.f32 %v715_v16, %v568_v7  ;;  %v3191_v20 = vpop.f32.mrb[7].mxu1  ;;  %v2930_v24 = vmul.f32 -1.442695, %v645_v15 }
 0x3bf   :  { %v719_v21 = vadd.f32 %v3873_v31, %v716_v17 }
 0x3c1   :  { %3578 = vtanh.f32 %v719_v21  ;;  %v2931_v25 = vmul.f32 -1.442695, %v719_v21 }
 0x3c2   :  { %3580 = vpow2.f32 %v2930_v24 }
 0x3c3   :  { %3582 = vpow2.f32 %v2931_v25 }
 0x3c7   :  { %v3577_v22 = vpop.eup %3576 }
 0x3c8   :  { %729 = vrot.lane.b32.xlu0 %v3577_v22, %s3720_s4 }
 0x3cb   :  { %v3579_v23 = vpop.eup %3578 }
 0x3cc   :  { %753 = vrot.lane.b32.xlu1 %v3579_v23, %s3720_s4  ;;  %v3581_v27 = vpop.eup %3580 }
 0x3cd   :  { %v723_v28 = vadd.f32 1.0, %v3581_v27  ;;  %v3583_v29 = vpop.eup %3582 }
 0x3ce   :  { %v747_v30 = vadd.f32 1.0, %v3583_v29 }
 0x3cf   :  { %3584 = vrcp.f32 %v723_v28 }
 0x3d0   :  { %3586 = vrcp.f32 %v747_v30 }
 0x3d9   :  { %v3585_v32 = vpop.eup %3584 }
 0x3da   :  { %v3587_v35 = vpop.eup %3586  ;;  %v727_v38 = vmul.f32 %v3585_v32, %v3881_v52 }
 0x3db   :  { %v751_v41 = vmul.f32 %v3587_v35, %v3884_v55 }
 0x43a   :  { %v730_v33 = vpop.permute.xlu0 %729 }
 0x43b   :  { %v732_v34 = vmul.f32 %v3585_v32, %v730_v33 }
 0x43d   :  { %734 = vrot.lane.b32.xlu0 %v732_v34, %s3721_s21 }
 0x43e   :  { %v754_v36 = vpop.permute.xlu1 %753 }
 0x43f   :  { %v756_v37 = vmul.f32 %v3587_v35, %v754_v36 }
 0x441   :  { %758 = vrot.lane.b32.xlu1 %v756_v37, %s3721_s21 }
 0x4af   :  { %v735_v39 = vpop.permute.xlu0 %734 }
 0x4b0   :  { %v3936_v40 = vadd.f32 %v735_v39, %v727_v38  ;;  %v2944_v39 = vld [vmem:[%s4275_s0 + $0x6] sm:$0x3] }
 0x4b2   :  { %3588 = vtanh.f32 %v3936_v40 }
 0x4b3   :  { %v759_v42 = vpop.permute.xlu1 %758 }
 0x4b4   :  { %v3940_v43 = vadd.f32 %v759_v42, %v751_v41  ;;  %v2945_v41 = vld [vmem:[%s4275_s0 + $0x8] sm:$0x3] }
 0x4b6   :  { %3590 = vtanh.f32 %v3940_v43 }
 0x4bc   :  { %v3589_v44 = vpop.eup %3588 }
 0x4bd   :  { %740 = vrot.lane.b32.xlu0 %v3589_v44, %s3720_s4 }
 0x4c0   :  { %v3591_v45 = vpop.eup %3590 }
 0x4c1   :  { %764 = vrot.lane.b32.xlu1 %v3591_v45, %s3720_s4 }
 0x52f   :  { %v741_v46 = vpop.permute.xlu0 %740 }
 0x530   :  { %v743_v47 = vmul.f32 %v3585_v32, %v741_v46 }
 0x532   :  { %769 = vrot.lane.b32.xlu0 %v743_v47, %s3721_s21 }
 0x533   :  { %v765_v48 = vpop.permute.xlu1 %764 }
 0x534   :  { %v767_v49 = vmul.f32 %v3587_v35, %v765_v48 }
 0x536   :  { %775 = vrot.lane.b32.xlu1 %v767_v49, %s3721_s21 }
 0x5a4   :  { %v770_v50 = vpop.permute.xlu0 %769 }
 0x5a5   :  { %2932 = vst.msk [vmem:[%s4282_s7 + $0x2] sm:$0x3] %vm416_vm2, %v770_v50  ;;  %3201 = vmatmul.mubr.msk.f32.vlgmr.msra.gmra.mrb[8].mxu0 %vm59_vm3, %v770_v50 }
 0x5a6   :  { %3458 = vmatpush3.bf16.msra.mxu0 %v3828_v18  ;;  %3218 = vmatprep.mubr.msk.f32.mxu0 %vm3718_vm0, %v3719_v1 }
 0x5a7   :  { %3462 = vmatprep.subr.bf16.mxu0 %v3717_v0 }
 0x5a8   :  { %v776_v52 = vpop.permute.xlu1 %775 }
 0x5a9   :  { %2933 = vst.msk [vmem:[%s4283_s8 + $0xc] sm:$0x3] %vm416_vm2, %v776_v52  ;;  %3212 = vmatmul.mubr.msk.f32.vlgmr.msra.gmra.mrb[8].mxu1 %vm59_vm3, %v776_v52  ;;  %3219 = vmatmul.mubr.msk.f32.vlgmr.msra.gmra.mrb[10].mxu0 %vm203_vm1, %v2934_v51 }
 0x5aa   :  { %3461 = vmatpush3.bf16.msra.mxu1 %v3832_v19  ;;  %3225 = vmatprep.mubr.msk.f32.mxu1 %vm3718_vm0, %v3719_v1 }
 0x5ab   :  { %3464 = vmatpush3.bf16.msra.mxu0 %v3794_v5  ;;  %3468 = vmatprep.subr.bf16.mxu1 %v3717_v0 }
 0x5ac   :  { %3465 = vmatprep.subr.bf16.mxu0 %v3717_v0  ;;  %3236 = vmatprep.mubr.msk.f32.mxu0 %vm3718_vm0, %v3719_v1 }
 0x5ad   :  { %3226 = vmatmul.mubr.msk.f32.vlgmr.msra.gmra.mrb[10].mxu1 %vm203_vm1, %v2935_v53 }
 0x5ae   :  { %3470 = vmatpush3.bf16.msra.mxu1 %v3805_v9  ;;  %3247 = vmatprep.mubr.msk.f32.mxu1 %vm3718_vm0, %v3719_v1 }
 0x5af   :  { %3467 = vmatpush3.bf16.msra.mxu0 %v3814_v12  ;;  %3471 = vmatprep.subr.bf16.mxu1 %v3717_v0 }
 0x5b0   :  { %3474 = vmatprep.subr.bf16.mxu0 %v3717_v0 }
 0x5b2   :  { %3473 = vmatpush3.bf16.msra.mxu1 %v3818_v13 }
 0x5b3   :  { %3477 = vmatprep.subr.bf16.mxu1 %v3717_v0 }
 0x678   :  { %v852_v54 = vpop.f32.mrb[8].mxu0 }
 0x679   :  { %v3202_v55 = vpop.f32.mrb[9].mxu0 }
 0x67c   :  { %v924_v56 = vpop.f32.mrb[8].mxu1  ;;  %v997_v57 = vpop.f32.mrb[10].mxu0 }
 0x67d   :  { %v998_v58 = vadd.f32 %v997_v57, %v852_v54  ;;  %v3213_v59 = vpop.f32.mrb[9].mxu1  ;;  %v3220_v60 = vpop.f32.mrb[11].mxu0 }
 0x67f   :  { %v1001_v61 = vadd.f32 %v3868_v26, %v998_v58 }
 0x680   :  { %v1071_v62 = vpop.f32.mrb[10].mxu1 }
 0x681   :  { %3592 = vtanh.f32 %v1001_v61  ;;  %v1072_v63 = vadd.f32 %v1071_v62, %v924_v56  ;;  %v3227_v2 = vpop.f32.mrb[11].mxu1  ;;  %v2940_v7 = vmul.f32 -1.442695, %v1001_v61 }
 0x683   :  { %v1075_v3 = vadd.f32 %v3873_v31, %v1072_v63 }
 0x685   :  { %3594 = vtanh.f32 %v1075_v3  ;;  %v2941_v8 = vmul.f32 -1.442695, %v1075_v3 }
 0x686   :  { %3596 = vpow2.f32 %v2940_v7 }
 0x687   :  { %3598 = vpow2.f32 %v2941_v8 }
 0x68b   :  { %v3593_v4 = vpop.eup %3592 }
 0x68c   :  { %1085 = vrot.lane.b32.xlu0 %v3593_v4, %s3720_s4 }
 0x68f   :  { %v3595_v6 = vpop.eup %3594 }
 0x690   :  { %1109 = vrot.lane.b32.xlu1 %v3595_v6, %s3720_s4  ;;  %v3597_v10 = vpop.eup %3596 }
 0x691   :  { %v1079_v11 = vadd.f32 1.0, %v3597_v10  ;;  %v3599_v14 = vpop.eup %3598 }
 0x692   :  { %v1103_v15 = vadd.f32 1.0, %v3599_v14 }
 0x693   :  { %3600 = vrcp.f32 %v1079_v11 }
 0x694   :  { %3602 = vrcp.f32 %v1103_v15 }
 0x69d   :  { %v3601_v16 = vpop.eup %3600 }
 0x69e   :  { %v3603_v21 = vpop.eup %3602  ;;  %v1083_v24 = vmul.f32 %v3601_v16, %v3936_v40 }
 0x69f   :  { %v1107_v28 = vmul.f32 %v3603_v21, %v3940_v43 }
 0x6fe   :  { %v1086_v17 = vpop.permute.xlu0 %1085 }
 0x6ff   :  { %v1088_v20 = vmul.f32 %v3601_v16, %v1086_v17 }
 0x701   :  { %1090 = vrot.lane.b32.xlu0 %v1088_v20, %s3721_s21 }
 0x702   :  { %v1110_v22 = vpop.permute.xlu1 %1109 }
 0x703   :  { %v1112_v23 = vmul.f32 %v3603_v21, %v1110_v22 }
 0x705   :  { %1114 = vrot.lane.b32.xlu1 %v1112_v23, %s3721_s21 }
 0x773   :  { %v1091_v25 = vpop.permute.xlu0 %1090 }
 0x774   :  { %v3992_v27 = vadd.f32 %v1091_v25, %v1083_v24  ;;  %v2954_v25 = vld [vmem:[%s4275_s0 + $0x8] sm:$0x3] }
 0x776   :  { %3604 = vtanh.f32 %v3992_v27 }
 0x777   :  { %v1115_v29 = vpop.permute.xlu1 %1114 }
 0x778   :  { %v3996_v30 = vadd.f32 %v1115_v29, %v1107_v28  ;;  %v2955_v28 = vld [vmem:[%s4275_s0 + $0x6] sm:$0x3] }
 0x77a   :  { %3606 = vtanh.f32 %v3996_v30 }
 0x780   :  { %v3605_v32 = vpop.eup %3604 }
 0x781   :  { %1096 = vrot.lane.b32.xlu0 %v3605_v32, %s3720_s4 }
 0x784   :  { %v3607_v33 = vpop.eup %3606 }
 0x785   :  { %1120 = vrot.lane.b32.xlu1 %v3607_v33, %s3720_s4 }
 0x7f3   :  { %v1097_v34 = vpop.permute.xlu0 %1096 }
 0x7f4   :  { %v1099_v35 = vmul.f32 %v3601_v16, %v1097_v34 }
 0x7f6   :  { %1125 = vrot.lane.b32.xlu0 %v1099_v35, %s3721_s21 }
 0x7f7   :  { %v1121_v36 = vpop.permute.xlu1 %1120 }
 0x7f8   :  { %v1123_v37 = vmul.f32 %v3603_v21, %v1121_v36 }
 0x7fa   :  { %1131 = vrot.lane.b32.xlu1 %v1123_v37, %s3721_s21 }
 0x868   :  { %v1126_v38 = vpop.permute.xlu0 %1125 }
 0x869   :  { %2942 = vst.msk [vmem:[%s4282_s7 + $0x4] sm:$0x3] %vm416_vm2, %v1126_v38  ;;  %3237 = vmatmul.mubr.msk.f32.vlgmr.msra.gmra.mrb[12].mxu0 %vm59_vm3, %v1126_v38 }
 0x86a   :  { %3476 = vmatpush3.bf16.msra.mxu0 %v3828_v18  ;;  %3254 = vmatprep.mubr.msk.f32.mxu0 %vm3718_vm0, %v3719_v1 }
 0x86b   :  { %3480 = vmatprep.subr.bf16.mxu0 %v3717_v0 }
 0x86c   :  { %v1132_v40 = vpop.permute.xlu1 %1131 }
 0x86d   :  { %2943 = vst.msk [vmem:[%s4283_s8 + $0xa] sm:$0x3] %vm416_vm2, %v1132_v40  ;;  %3248 = vmatmul.mubr.msk.f32.vlgmr.msra.gmra.mrb[12].mxu1 %vm59_vm3, %v1132_v40  ;;  %3255 = vmatmul.mubr.msk.f32.vlgmr.msra.gmra.mrb[14].mxu0 %vm203_vm1, %v2944_v39 }
 0x86e   :  { %3479 = vmatpush3.bf16.msra.mxu1 %v3832_v19  ;;  %3261 = vmatprep.mubr.msk.f32.mxu1 %vm3718_vm0, %v3719_v1 }
 0x86f   :  { %3482 = vmatpush3.bf16.msra.mxu0 %v3794_v5  ;;  %3486 = vmatprep.subr.bf16.mxu1 %v3717_v0 }
 0x870   :  { %3483 = vmatprep.subr.bf16.mxu0 %v3717_v0  ;;  %3272 = vmatprep.mubr.msk.f32.mxu0 %vm3718_vm0, %v3719_v1 }
 0x871   :  { %3262 = vmatmul.mubr.msk.f32.vlgmr.msra.gmra.mrb[14].mxu1 %vm203_vm1, %v2945_v41 }
 0x872   :  { %3488 = vmatpush3.bf16.msra.mxu1 %v3805_v9  ;;  %3283 = vmatprep.mubr.msk.f32.mxu1 %vm3718_vm0, %v3719_v1 }
 0x873   :  { %3485 = vmatpush3.bf16.msra.mxu0 %v3814_v12  ;;  %3489 = vmatprep.subr.bf16.mxu1 %v3717_v0 }
 0x874   :  { %3492 = vmatprep.subr.bf16.mxu0 %v3717_v0 }
 0x876   :  { %3491 = vmatpush3.bf16.msra.mxu1 %v3818_v13 }
 0x877   :  { %3495 = vmatprep.subr.bf16.mxu1 %v3717_v0 }
 0x93c   :  { %v1208_v42 = vpop.f32.mrb[12].mxu0 }
 0x93d   :  { %v3238_v43 = vpop.f32.mrb[13].mxu0 }
 0x940   :  { %v1280_v44 = vpop.f32.mrb[12].mxu1  ;;  %v1353_v45 = vpop.f32.mrb[14].mxu0 }
 0x941   :  { %v1354_v46 = vadd.f32 %v1353_v45, %v1208_v42  ;;  %v3249_v47 = vpop.f32.mrb[13].mxu1  ;;  %v3256_v48 = vpop.f32.mrb[15].mxu0 }
 0x943   :  { %v1357_v49 = vadd.f32 %v3868_v26, %v1354_v46 }
 0x944   :  { %v1427_v50 = vpop.f32.mrb[14].mxu1 }
 0x945   :  { %3608 = vtanh.f32 %v1357_v49  ;;  %v1428_v51 = vadd.f32 %v1427_v50, %v1280_v44  ;;  %v3263_v52 = vpop.f32.mrb[15].mxu1  ;;  %v2950_v56 = vmul.f32 -1.442695, %v1357_v49 }
 0x947   :  { %v1431_v53 = vadd.f32 %v3873_v31, %v1428_v51 }
 0x949   :  { %3610 = vtanh.f32 %v1431_v53  ;;  %v2951_v57 = vmul.f32 -1.442695, %v1431_v53 }
 0x94a   :  { %3612 = vpow2.f32 %v2950_v56 }
 0x94b   :  { %3614 = vpow2.f32 %v2951_v57 }
 0x94f   :  { %v3609_v54 = vpop.eup %3608 }
 0x950   :  { %1441 = vrot.lane.b32.xlu0 %v3609_v54, %s3720_s4 }
 0x953   :  { %v3611_v55 = vpop.eup %3610 }
 0x954   :  { %1465 = vrot.lane.b32.xlu1 %v3611_v55, %s3720_s4  ;;  %v3613_v58 = vpop.eup %3612 }
 0x955   :  { %v1435_v59 = vadd.f32 1.0, %v3613_v58  ;;  %v3615_v60 = vpop.eup %3614 }
 0x956   :  { %v1459_v61 = vadd.f32 1.0, %v3615_v60 }
 0x957   :  { %3616 = vrcp.f32 %v1435_v59 }
 0x958   :  { %3618 = vrcp.f32 %v1459_v61 }
 0x961   :  { %v3617_v62 = vpop.eup %3616 }
 0x962   :  { %v3619_v3 = vpop.eup %3618  ;;  %v1439_v7 = vmul.f32 %v3617_v62, %v3992_v27 }
 0x963   :  { %v1463_v11 = vmul.f32 %v3619_v3, %v3996_v30 }
 0x9c2   :  { %v1442_v63 = vpop.permute.xlu0 %1441 }
 0x9c3   :  { %v1444_v2 = vmul.f32 %v3617_v62, %v1442_v63 }
 0x9c5   :  { %1446 = vrot.lane.b32.xlu0 %v1444_v2, %s3721_s21 }
 0x9c6   :  { %v1466_v4 = vpop.permute.xlu1 %1465 }
 0x9c7   :  { %v1468_v6 = vmul.f32 %v3619_v3, %v1466_v4 }
 0x9c9   :  { %1470 = vrot.lane.b32.xlu1 %v1468_v6, %s3721_s21 }
 0xa37   :  { %v1447_v8 = vpop.permute.xlu0 %1446 }
 0xa38   :  { %v4048_v10 = vadd.f32 %v1447_v8, %v1439_v7  ;;  %v2964_v8 = vld [vmem:[%s4275_s0 + $0xa] sm:$0x3] }
 0xa3a   :  { %3620 = vtanh.f32 %v4048_v10 }
 0xa3b   :  { %v1471_v14 = vpop.permute.xlu1 %1470 }
 0xa3c   :  { %v4052_v15 = vadd.f32 %v1471_v14, %v1463_v11  ;;  %v2965_v11 = vld [vmem:[%s4275_s0 + $0x4] sm:$0x3] }
 0xa3e   :  { %3622 = vtanh.f32 %v4052_v15 }
 0xa44   :  { %v3621_v16 = vpop.eup %3620 }
 0xa45   :  { %1452 = vrot.lane.b32.xlu0 %v3621_v16, %s3720_s4 }
 0xa48   :  { %v3623_v17 = vpop.eup %3622 }
 0xa49   :  { %1476 = vrot.lane.b32.xlu1 %v3623_v17, %s3720_s4 }
 0xab7   :  { %v1453_v20 = vpop.permute.xlu0 %1452 }
 0xab8   :  { %v1455_v21 = vmul.f32 %v3617_v62, %v1453_v20 }
 0xaba   :  { %1481 = vrot.lane.b32.xlu0 %v1455_v21, %s3721_s21 }
 0xabb   :  { %v1477_v22 = vpop.permute.xlu1 %1476 }
 0xabc   :  { %v1479_v23 = vmul.f32 %v3619_v3, %v1477_v22 }
 0xabe   :  { %1487 = vrot.lane.b32.xlu1 %v1479_v23, %s3721_s21 }
 0xb2c   :  { %v1482_v24 = vpop.permute.xlu0 %1481 }
 0xb2d   :  { %2952 = vst.msk [vmem:[%s4282_s7 + $0x6] sm:$0x3] %vm416_vm2, %v1482_v24  ;;  %3273 = vmatmul.mubr.msk.f32.vlgmr.msra.gmra.mrb[16].mxu0 %vm59_vm3, %v1482_v24 }
 0xb2e   :  { %3494 = vmatpush3.bf16.msra.mxu0 %v3828_v18  ;;  %3290 = vmatprep.mubr.msk.f32.mxu0 %vm3718_vm0, %v3719_v1 }
 0xb2f   :  { %3498 = vmatprep.subr.bf16.mxu0 %v3717_v0 }
 0xb30   :  { %v1488_v27 = vpop.permute.xlu1 %1487 }
 0xb31   :  { %2953 = vst.msk [vmem:[%s4283_s8 + $0x8] sm:$0x3] %vm416_vm2, %v1488_v27  ;;  %3284 = vmatmul.mubr.msk.f32.vlgmr.msra.gmra.mrb[16].mxu1 %vm59_vm3, %v1488_v27  ;;  %3291 = vmatmul.mubr.msk.f32.vlgmr.msra.gmra.mrb[18].mxu0 %vm203_vm1, %v2954_v25 }
 0xb32   :  { %3497 = vmatpush3.bf16.msra.mxu1 %v3832_v19  ;;  %3297 = vmatprep.mubr.msk.f32.mxu1 %vm3718_vm0, %v3719_v1 }
 0xb33   :  { %3500 = vmatpush3.bf16.msra.mxu0 %v3794_v5  ;;  %3504 = vmatprep.subr.bf16.mxu1 %v3717_v0 }
 0xb34   :  { %3501 = vmatprep.subr.bf16.mxu0 %v3717_v0  ;;  %3308 = vmatprep.mubr.msk.f32.mxu0 %vm3718_vm0, %v3719_v1 }
 0xb35   :  { %3298 = vmatmul.mubr.msk.f32.vlgmr.msra.gmra.mrb[18].mxu1 %vm203_vm1, %v2955_v28 }
 0xb36   :  { %3506 = vmatpush3.bf16.msra.mxu1 %v3805_v9  ;;  %3319 = vmatprep.mubr.msk.f32.mxu1 %vm3718_vm0, %v3719_v1 }
 0xb37   :  { %3503 = vmatpush3.bf16.msra.mxu0 %v3814_v12  ;;  %3507 = vmatprep.subr.bf16.mxu1 %v3717_v0 }
 0xb38   :  { %3510 = vmatprep.subr.bf16.mxu0 %v3717_v0 }
 0xb3a   :  { %3509 = vmatpush3.bf16.msra.mxu1 %v3818_v13 }
 0xb3b   :  { %3513 = vmatprep.subr.bf16.mxu1 %v3717_v0 }
 0xc00   :  { %v1562_v29 = vpop.f32.mrb[16].mxu0 }
 0xc01   :  { %v3274_v30 = vpop.f32.mrb[17].mxu0 }
 0xc04   :  { %v1634_v32 = vpop.f32.mrb[16].mxu1  ;;  %v1707_v33 = vpop.f32.mrb[18].mxu0 }
 0xc05   :  { %v1708_v34 = vadd.f32 %v1707_v33, %v1562_v29  ;;  %v3285_v35 = vpop.f32.mrb[17].mxu1  ;;  %v3292_v36 = vpop.f32.mrb[19].mxu0 }
 0xc07   :  { %v1711_v37 = vadd.f32 %v3868_v26, %v1708_v34 }
 0xc08   :  { %v1781_v38 = vpop.f32.mrb[18].mxu1 }
 0xc09   :  { %3624 = vtanh.f32 %v1711_v37  ;;  %v1782_v39 = vadd.f32 %v1781_v38, %v1634_v32  ;;  %v3299_v40 = vpop.f32.mrb[19].mxu1  ;;  %v2960_v44 = vmul.f32 -1.442695, %v1711_v37 }
 0xc0b   :  { %v1785_v41 = vadd.f32 %v3873_v31, %v1782_v39 }
 0xc0d   :  { %3626 = vtanh.f32 %v1785_v41  ;;  %v2961_v45 = vmul.f32 -1.442695, %v1785_v41 }
 0xc0e   :  { %3628 = vpow2.f32 %v2960_v44 }
 0xc0f   :  { %3630 = vpow2.f32 %v2961_v45 }
 0xc13   :  { %v3625_v42 = vpop.eup %3624 }
 0xc14   :  { %1795 = vrot.lane.b32.xlu0 %v3625_v42, %s3720_s4 }
 0xc17   :  { %v3627_v43 = vpop.eup %3626 }
 0xc18   :  { %1819 = vrot.lane.b32.xlu1 %v3627_v43, %s3720_s4  ;;  %v3629_v46 = vpop.eup %3628 }
 0xc19   :  { %v1789_v47 = vadd.f32 1.0, %v3629_v46  ;;  %v3631_v48 = vpop.eup %3630 }
 0xc1a   :  { %v1813_v49 = vadd.f32 1.0, %v3631_v48 }
 0xc1b   :  { %3632 = vrcp.f32 %v1789_v47 }
 0xc1c   :  { %3634 = vrcp.f32 %v1813_v49 }
 0xc25   :  { %v3633_v50 = vpop.eup %3632 }
 0xc26   :  { %v3635_v53 = vpop.eup %3634  ;;  %v1793_v56 = vmul.f32 %v3633_v50, %v4048_v10 }
 0xc27   :  { %v1817_v59 = vmul.f32 %v3635_v53, %v4052_v15 }
 0xc86   :  { %v1796_v51 = vpop.permute.xlu0 %1795 }
 0xc87   :  { %v1798_v52 = vmul.f32 %v3633_v50, %v1796_v51 }
 0xc89   :  { %1800 = vrot.lane.b32.xlu0 %v1798_v52, %s3721_s21 }
 0xc8a   :  { %v1820_v54 = vpop.permute.xlu1 %1819 }
 0xc8b   :  { %v1822_v55 = vmul.f32 %v3635_v53, %v1820_v54 }
 0xc8d   :  { %1824 = vrot.lane.b32.xlu1 %v1822_v55, %s3721_s21 }
 0xcfb   :  { %v1801_v57 = vpop.permute.xlu0 %1800 }
 0xcfc   :  { %v4104_v58 = vadd.f32 %v1801_v57, %v1793_v56  ;;  %v2974_v57 = vld [vmem:[%s4275_s0 + $0xc] sm:$0x3] }
 0xcfe   :  { %3636 = vtanh.f32 %v4104_v58 }
 0xcff   :  { %v1825_v60 = vpop.permute.xlu1 %1824 }
 0xd00   :  { %v4108_v61 = vadd.f32 %v1825_v60, %v1817_v59  ;;  %v2975_v59 = vld [vmem:[%s4275_s0 + $0x2] sm:$0x3] }
 0xd02   :  { %3638 = vtanh.f32 %v4108_v61 }
 0xd08   :  { %v3637_v62 = vpop.eup %3636 }
 0xd09   :  { %1806 = vrot.lane.b32.xlu0 %v3637_v62, %s3720_s4 }
 0xd0c   :  { %v3639_v63 = vpop.eup %3638 }
 0xd0d   :  { %1830 = vrot.lane.b32.xlu1 %v3639_v63, %s3720_s4 }
 0xd7b   :  { %v1807_v2 = vpop.permute.xlu0 %1806 }
 0xd7c   :  { %v1809_v3 = vmul.f32 %v3633_v50, %v1807_v2 }
 0xd7e   :  { %1835 = vrot.lane.b32.xlu0 %v1809_v3, %s3721_s21 }
 0xd7f   :  { %v1831_v4 = vpop.permute.xlu1 %1830 }
 0xd80   :  { %v1833_v6 = vmul.f32 %v3635_v53, %v1831_v4 }
 0xd82   :  { %1841 = vrot.lane.b32.xlu1 %v1833_v6, %s3721_s21 }
 0xdf0   :  { %v1836_v7 = vpop.permute.xlu0 %1835 }
 0xdf1   :  { %2962 = vst.msk [vmem:[%s4282_s7 + $0x8] sm:$0x3] %vm416_vm2, %v1836_v7  ;;  %3309 = vmatmul.mubr.msk.f32.vlgmr.msra.gmra.mrb[20].mxu0 %vm59_vm3, %v1836_v7 }
 0xdf2   :  { %3512 = vmatpush3.bf16.msra.mxu0 %v3828_v18  ;;  %3326 = vmatprep.mubr.msk.f32.mxu0 %vm3718_vm0, %v3719_v1 }
 0xdf3   :  { %3516 = vmatprep.subr.bf16.mxu0 %v3717_v0 }
 0xdf4   :  { %v1842_v10 = vpop.permute.xlu1 %1841 }
 0xdf5   :  { %2963 = vst.msk [vmem:[%s4283_s8 + $0x6] sm:$0x3] %vm416_vm2, %v1842_v10  ;;  %3320 = vmatmul.mubr.msk.f32.vlgmr.msra.gmra.mrb[20].mxu1 %vm59_vm3, %v1842_v10  ;;  %3327 = vmatmul.mubr.msk.f32.vlgmr.msra.gmra.mrb[22].mxu0 %vm203_vm1, %v2964_v8 }
 0xdf6   :  { %3515 = vmatpush3.bf16.msra.mxu1 %v3832_v19  ;;  %3333 = vmatprep.mubr.msk.f32.mxu1 %vm3718_vm0, %v3719_v1 }
 0xdf7   :  { %3518 = vmatpush3.bf16.msra.mxu0 %v3794_v5  ;;  %3522 = vmatprep.subr.bf16.mxu1 %v3717_v0 }
 0xdf8   :  { %3519 = vmatprep.subr.bf16.mxu0 %v3717_v0  ;;  %3344 = vmatprep.mubr.msk.f32.mxu0 %vm3718_vm0, %v3719_v1 }
 0xdf9   :  { %3334 = vmatmul.mubr.msk.f32.vlgmr.msra.gmra.mrb[22].mxu1 %vm203_vm1, %v2965_v11 }
 0xdfa   :  { %3524 = vmatpush3.bf16.msra.mxu1 %v3805_v9  ;;  %3355 = vmatprep.mubr.msk.f32.mxu1 %vm3718_vm0, %v3719_v1 }
 0xdfb   :  { %3521 = vmatpush3.bf16.msra.mxu0 %v3814_v12  ;;  %3525 = vmatprep.subr.bf16.mxu1 %v3717_v0 }
 0xdfc   :  { %3528 = vmatprep.subr.bf16.mxu0 %v3717_v0 }
 0xdfe   :  { %3527 = vmatpush3.bf16.msra.mxu1 %v3818_v13 }
 0xdff   :  { %3531 = vmatprep.subr.bf16.mxu1 %v3717_v0 }
 0xec4   :  { %v1916_v14 = vpop.f32.mrb[20].mxu0 }
 0xec5   :  { %v3310_v15 = vpop.f32.mrb[21].mxu0 }
 0xec8   :  { %v1988_v16 = vpop.f32.mrb[20].mxu1  ;;  %v2061_v17 = vpop.f32.mrb[22].mxu0 }
 0xec9   :  { %v2062_v20 = vadd.f32 %v2061_v17, %v1916_v14  ;;  %v3321_v21 = vpop.f32.mrb[21].mxu1  ;;  %v3328_v22 = vpop.f32.mrb[23].mxu0 }
 0xecb   :  { %v2065_v23 = vadd.f32 %v3868_v26, %v2062_v20 }
 0xecc   :  { %v2135_v24 = vpop.f32.mrb[22].mxu1 }
 0xecd   :  { %3640 = vtanh.f32 %v2065_v23  ;;  %v2136_v25 = vadd.f32 %v2135_v24, %v1988_v16  ;;  %v3335_v27 = vpop.f32.mrb[23].mxu1  ;;  %v2970_v32 = vmul.f32 -1.442695, %v2065_v23 }
 0xecf   :  { %v2139_v28 = vadd.f32 %v3873_v31, %v2136_v25 }
 0xed1   :  { %3642 = vtanh.f32 %v2139_v28  ;;  %v2971_v33 = vmul.f32 -1.442695, %v2139_v28 }
 0xed2   :  { %3644 = vpow2.f32 %v2970_v32 }
 0xed3   :  { %3646 = vpow2.f32 %v2971_v33 }
 0xed7   :  { %v3641_v29 = vpop.eup %3640 }
 0xed8   :  { %2149 = vrot.lane.b32.xlu0 %v3641_v29, %s3720_s4 }
 0xedb   :  { %v3643_v30 = vpop.eup %3642 }
 0xedc   :  { %2173 = vrot.lane.b32.xlu1 %v3643_v30, %s3720_s4  ;;  %v3645_v34 = vpop.eup %3644 }
 0xedd   :  { %v2143_v35 = vadd.f32 1.0, %v3645_v34  ;;  %v3647_v36 = vpop.eup %3646 }
 0xede   :  { %v2167_v37 = vadd.f32 1.0, %v3647_v36 }
 0xedf   :  { %3648 = vrcp.f32 %v2143_v35 }
 0xee0   :  { %3650 = vrcp.f32 %v2167_v37 }
 0xee9   :  { %v3649_v38 = vpop.eup %3648 }
 0xeea   :  { %v3651_v41 = vpop.eup %3650  ;;  %v2147_v44 = vmul.f32 %v3649_v38, %v4104_v58 }
 0xeeb   :  { %v2171_v47 = vmul.f32 %v3651_v41, %v4108_v61 }
 0xf4a   :  { %v2150_v39 = vpop.permute.xlu0 %2149 }
 0xf4b   :  { %v2152_v40 = vmul.f32 %v3649_v38, %v2150_v39 }
 0xf4d   :  { %2154 = vrot.lane.b32.xlu0 %v2152_v40, %s3721_s21 }
 0xf4e   :  { %v2174_v42 = vpop.permute.xlu1 %2173 }
 0xf4f   :  { %v2176_v43 = vmul.f32 %v3651_v41, %v2174_v42 }
 0xf51   :  { %2178 = vrot.lane.b32.xlu1 %v2176_v43, %s3721_s21 }
 0xfbf   :  { %v2155_v45 = vpop.permute.xlu0 %2154 }
 0xfc0   :  { %v4160_v46 = vadd.f32 %v2155_v45, %v2147_v44 }
 0xfc2   :  { %3652 = vtanh.f32 %v4160_v46 }
 0xfc3   :  { %v2179_v48 = vpop.permute.xlu1 %2178 }
 0xfc4   :  { %v4164_v49 = vadd.f32 %v2179_v48, %v2171_v47 }
 0xfc6   :  { %3654 = vtanh.f32 %v4164_v49 }
 0xfcc   :  { %v3653_v50 = vpop.eup %3652 }
 0xfcd   :  { %2160 = vrot.lane.b32.xlu0 %v3653_v50, %s3720_s4  ;;  %v3689_v50 = vld [vmem:[%s4281_s6] ss:$0 sm:$0xff] }
 0xfd0   :  { %v3655_v51 = vpop.eup %3654 }
 0xfd1   :  { %2184 = vrot.lane.b32.xlu1 %v3655_v51, %s3720_s4 }
0x103f   :  { %v2161_v52 = vpop.permute.xlu0 %2160 }
0x1040   :  { %v2163_v53 = vmul.f32 %v3649_v38, %v2161_v52  ;;  %v2984_v38 = vld [vmem:[%s4275_s0 + $0xe] sm:$0x3] }
0x1042   :  { %2189 = vrot.lane.b32.xlu0 %v2163_v53, %s3721_s21 }
0x1043   :  { %v2185_v54 = vpop.permute.xlu1 %2184 }
0x1044   :  { %v2187_v55 = vmul.f32 %v3651_v41, %v2185_v54 }
0x1046   :  { %2195 = vrot.lane.b32.xlu1 %v2187_v55, %s3721_s21 }
0x10b4   :  { %v2190_v56 = vpop.permute.xlu0 %2189 }
0x10b5   :  { %2972 = vst.msk [vmem:[%s4282_s7 + $0xa] sm:$0x3] %vm416_vm2, %v2190_v56  ;;  %3345 = vmatmul.mubr.msk.f32.vlgmr.msra.gmra.mrb[24].mxu0 %vm59_vm3, %v2190_v56 }
0x10b6   :  { %3530 = vmatpush3.bf16.msra.mxu0 %v3828_v18  ;;  %3362 = vmatprep.mubr.msk.f32.mxu0 %vm3718_vm0, %v3719_v1 }
0x10b7   :  { %3534 = vmatprep.subr.bf16.mxu0 %v3717_v0 }
0x10b8   :  { %v2196_v58 = vpop.permute.xlu1 %2195 }
0x10b9   :  { %2973 = vst.msk [vmem:[%s4283_s8 + $0x4] sm:$0x3] %vm416_vm2, %v2196_v58  ;;  %3356 = vmatmul.mubr.msk.f32.vlgmr.msra.gmra.mrb[24].mxu1 %vm59_vm3, %v2196_v58  ;;  %3363 = vmatmul.mubr.msk.f32.vlgmr.msra.gmra.mrb[26].mxu0 %vm203_vm1, %v2974_v57 }
0x10ba   :  { %3533 = vmatpush3.bf16.msra.mxu1 %v3832_v19  ;;  %3369 = vmatprep.mubr.msk.f32.mxu1 %vm3718_vm0, %v3719_v1 }
0x10bb   :  { %3536 = vmatpush3.bf16.msra.mxu0 %v3794_v5  ;;  %3540 = vmatprep.subr.bf16.mxu1 %v3717_v0 }
0x10bc   :  { %3537 = vmatprep.subr.bf16.mxu0 %v3717_v0  ;;  %3380 = vmatprep.mubr.msk.f32.mxu0 %vm3718_vm0, %v3719_v1 }
0x10bd   :  { %3370 = vmatmul.mubr.msk.f32.vlgmr.msra.gmra.mrb[26].mxu1 %vm203_vm1, %v2975_v59 }
0x10be   :  { %3542 = vmatpush3.bf16.msra.mxu1 %v3805_v9  ;;  %3391 = vmatprep.mubr.msk.f32.mxu1 %vm3718_vm0, %v3719_v1 }
0x10bf   :  { %3539 = vmatpush3.bf16.msra.mxu0 %v3814_v12  ;;  %3543 = vmatprep.subr.bf16.mxu1 %v3717_v0 }
0x10c0   :  { %3546 = vmatprep.subr.bf16.mxu0 %v3717_v0 }
0x10c2   :  { %3545 = vmatpush3.bf16.msra.mxu1 %v3818_v13 }
0x10c3   :  { %3549 = vmatprep.subr.bf16.mxu1 %v3717_v0 }
0x1188   :  { %v2270_v5 = vpop.f32.mrb[24].mxu0 }
0x1189   :  { %v3346_v60 = vpop.f32.mrb[25].mxu0 }
0x118c   :  { %v2342_v61 = vpop.f32.mrb[24].mxu1  ;;  %v2415_v62 = vpop.f32.mrb[26].mxu0 }
0x118d   :  { %v2416_v63 = vadd.f32 %v2415_v62, %v2270_v5  ;;  %v3357_v2 = vpop.f32.mrb[25].mxu1  ;;  %v3364_v9 = vpop.f32.mrb[27].mxu0 }
0x118f   :  { %v2419_v3 = vadd.f32 %v3868_v26, %v2416_v63 }
0x1190   :  { %v2489_v4 = vpop.f32.mrb[26].mxu1 }
0x1191   :  { %3656 = vtanh.f32 %v2419_v3  ;;  %v2490_v12 = vadd.f32 %v2489_v4, %v2342_v61  ;;  %v3371_v6 = vpop.f32.mrb[27].mxu1  ;;  %v2980_v13 = vmul.f32 -1.442695, %v2419_v3 }
0x1193   :  { %v2493_v7 = vadd.f32 %v3873_v31, %v2490_v12 }
0x1195   :  { %3658 = vtanh.f32 %v2493_v7  ;;  %v2981_v10 = vmul.f32 -1.442695, %v2493_v7 }
0x1196   :  { %3660 = vpow2.f32 %v2980_v13 }
0x1197   :  { %3662 = vpow2.f32 %v2981_v10 }
0x119b   :  { %v3657_v8 = vpop.eup %3656 }
0x119c   :  { %2503 = vrot.lane.b32.xlu0 %v3657_v8, %s3720_s4 }
0x119f   :  { %v3659_v0 = vpop.eup %3658 }
0x11a0   :  { %2527 = vrot.lane.b32.xlu1 %v3659_v0, %s3720_s4  ;;  %v3661_v11 = vpop.eup %3660 }
0x11a1   :  { %v2497_v14 = vadd.f32 1.0, %v3661_v11  ;;  %v3663_v26 = vpop.eup %3662 }
0x11a2   :  { %v2521_v15 = vadd.f32 1.0, %v3663_v26 }
0x11a3   :  { %3664 = vrcp.f32 %v2497_v14 }
0x11a4   :  { %3666 = vrcp.f32 %v2521_v15 }
0x11ad   :  { %v3665_v16 = vpop.eup %3664 }
0x11ae   :  { %v3667_v20 = vpop.eup %3666  ;;  %v2501_v23 = vmul.f32 %v3665_v16, %v4160_v46 }
0x11af   :  { %v2525_v27 = vmul.f32 %v3667_v20, %v4164_v49 }
0x120e   :  { %v2504_v17 = vpop.permute.xlu0 %2503 }
0x120f   :  { %v2506_v31 = vmul.f32 %v3665_v16, %v2504_v17 }
0x1211   :  { %2508 = vrot.lane.b32.xlu0 %v2506_v31, %s3721_s21 }
0x1212   :  { %v2528_v21 = vpop.permute.xlu1 %2527 }
0x1213   :  { %v2530_v22 = vmul.f32 %v3667_v20, %v2528_v21 }
0x1215   :  { %2532 = vrot.lane.b32.xlu1 %v2530_v22, %s3721_s21 }
0x1283   :  { %v2509_v24 = vpop.permute.xlu0 %2508 }
0x1284   :  { %v4216_v25 = vadd.f32 %v2509_v24, %v2501_v23 }
0x1286   :  { %3668 = vtanh.f32 %v4216_v25 }
0x1287   :  { %v2533_v28 = vpop.permute.xlu1 %2532 }
0x1288   :  { %v4220_v29 = vadd.f32 %v2533_v28, %v2525_v27 }
0x128a   :  { %3670 = vtanh.f32 %v4220_v29 }
0x1290   :  { %v3669_v30 = vpop.eup %3668 }
0x1291   :  { %2514 = vrot.lane.b32.xlu0 %v3669_v30, %s3720_s4 }
0x1294   :  { %v3671_v32 = vpop.eup %3670 }
0x1295   :  { %2538 = vrot.lane.b32.xlu1 %v3671_v32, %s3720_s4 }
0x1303   :  { %v2515_v33 = vpop.permute.xlu0 %2514 }
0x1304   :  { %v2517_v34 = vmul.f32 %v3665_v16, %v2515_v33 }
0x1306   :  { %2543 = vrot.lane.b32.xlu0 %v2517_v34, %s3721_s21 }
0x1307   :  { %v2539_v35 = vpop.permute.xlu1 %2538 }
0x1308   :  { %v2541_v36 = vmul.f32 %v3667_v20, %v2539_v35 }
0x130a   :  { %2549 = vrot.lane.b32.xlu1 %v2541_v36, %s3721_s21 }
0x1378   :  { %v2544_v37 = vpop.permute.xlu0 %2543 }
0x1379   :  { %2982 = vst.msk [vmem:[%s4282_s7 + $0xc] sm:$0x3] %vm416_vm2, %v2544_v37  ;;  %3381 = vmatmul.mubr.msk.f32.vlgmr.msra.gmra.mrb[28].mxu0 %vm59_vm3, %v2544_v37 }
0x137a   :  { %3548 = vmatpush3.bf16.msra.mxu0 %v3828_v18  ;;  %3398 = vmatprep.mubr.msk.f32.mxu0 %vm3718_vm0, %v3719_v1  ;;  %v2555_v18 = vld [vmem:[%s4275_s0] sm:$0x3] }
0x137c   :  { %v2550_v39 = vpop.permute.xlu1 %2549 }
0x137d   :  { %2983 = vst.msk [vmem:[%s4283_s8 + $0x2] sm:$0x3] %vm416_vm2, %v2550_v39  ;;  %3392 = vmatmul.mubr.msk.f32.vlgmr.msra.gmra.mrb[28].mxu1 %vm59_vm3, %v2550_v39  ;;  %3399 = vmatmul.mubr.msk.f32.vlgmr.msra.gmra.mrb[30].mxu0 %vm203_vm1, %v2984_v38 }
0x137e   :  { %3551 = vmatpush3.bf16.msra.mxu1 %v3832_v19  ;;  %3405 = vmatprep.mubr.msk.f32.mxu1 %vm3718_vm0, %v3719_v1  ;;  %v3688_v19 = vld [vmem:[%s4278_s3] ss:$0 sm:$0xff] }
0x1381   :  { %3406 = vmatmul.mubr.msk.f32.vlgmr.msra.gmra.mrb[30].mxu1 %vm203_vm1, %v2555_v18 }
0x144c   :  { %v2624_v40 = vpop.f32.mrb[28].mxu0 }
0x144d   :  { %v3382_v41 = vpop.f32.mrb[29].mxu0 }
0x1450   :  { %v2696_v42 = vpop.f32.mrb[28].mxu1  ;;  %v2769_v43 = vpop.f32.mrb[30].mxu0 }
0x1451   :  { %v2770_v44 = vadd.f32 %v2769_v43, %v2624_v40  ;;  %v3393_v45 = vpop.f32.mrb[29].mxu1  ;;  %v3400_v46 = vpop.f32.mrb[31].mxu0 }
0x1453   :  { %v2773_v47 = vadd.f32 %v3688_v19, %v2770_v44 }
0x1454   :  { %v2843_v48 = vpop.f32.mrb[30].mxu1 }
0x1455   :  { %3672 = vtanh.f32 %v2773_v47  ;;  %v2844_v1 = vadd.f32 %v2843_v48, %v2696_v42  ;;  %v3407_v49 = vpop.f32.mrb[31].mxu1  ;;  %v2989_v54 = vmul.f32 -1.442695, %v2773_v47 }
0x1457   :  { %v2847_v51 = vadd.f32 %v3689_v50, %v2844_v1 }
0x1459   :  { %3674 = vtanh.f32 %v2847_v51  ;;  %v2990_v55 = vmul.f32 -1.442695, %v2847_v51 }
0x145a   :  { %3676 = vpow2.f32 %v2989_v54 }
0x145b   :  { %3678 = vpow2.f32 %v2990_v55 }
0x145f   :  { %v3673_v52 = vpop.eup %3672 }
0x1460   :  { %2857 = vrot.lane.b32.xlu0 %v3673_v52, %s3720_s4 }
0x1463   :  { %v3675_v53 = vpop.eup %3674 }
0x1464   :  { %2881 = vrot.lane.b32.xlu1 %v3675_v53, %s3720_s4  ;;  %v3677_v56 = vpop.eup %3676 }
0x1465   :  { %v2851_v57 = vadd.f32 1.0, %v3677_v56  ;;  %v3679_v58 = vpop.eup %3678 }
0x1466   :  { %v2875_v59 = vadd.f32 1.0, %v3679_v58 }
0x1467   :  { %3680 = vrcp.f32 %v2851_v57 }
0x1468   :  { %3682 = vrcp.f32 %v2875_v59 }
0x1471   :  { %v3681_v5 = vpop.eup %3680 }
0x1472   :  { %v3683_v62 = vpop.eup %3682  ;;  %v2855_v9 = vmul.f32 %v3681_v5, %v4216_v25 }
0x1473   :  { %v2879_v12 = vmul.f32 %v3683_v62, %v4220_v29 }
0x14d2   :  { %v2858_v60 = vpop.permute.xlu0 %2857 }
0x14d3   :  { %v2860_v61 = vmul.f32 %v3681_v5, %v2858_v60 }
0x14d5   :  { %2862 = vrot.lane.b32.xlu0 %v2860_v61, %s3721_s21 }
0x14d6   :  { %v2882_v63 = vpop.permute.xlu1 %2881 }
0x14d7   :  { %v2884_v2 = vmul.f32 %v3683_v62, %v2882_v63 }
0x14d9   :  { %2886 = vrot.lane.b32.xlu1 %v2884_v2, %s3721_s21 }
0x1547   :  { %v2863_v3 = vpop.permute.xlu0 %2862 }
0x1548   :  { %v2865_v4 = vadd.f32 %v2863_v3, %v2855_v9 }
0x154a   :  { %3684 = vtanh.f32 %v2865_v4 }
0x154b   :  { %v2887_v6 = vpop.permute.xlu1 %2886 }
0x154c   :  { %v2889_v7 = vadd.f32 %v2887_v6, %v2879_v12 }
0x154e   :  { %3686 = vtanh.f32 %v2889_v7 }
0x1554   :  { %v3685_v8 = vpop.eup %3684 }
0x1555   :  { %2868 = vrot.lane.b32.xlu0 %v3685_v8, %s3720_s4 }
0x1558   :  { %v3687_v0 = vpop.eup %3686 }
0x1559   :  { %2892 = vrot.lane.b32.xlu1 %v3687_v0, %s3720_s4 }
0x15c7   :  { %v2869_v13 = vpop.permute.xlu0 %2868 }
0x15c8   :  { %v2871_v10 = vmul.f32 %v3681_v5, %v2869_v13 }
0x15ca   :  { %2897 = vrot.lane.b32.xlu0 %v2871_v10, %s3721_s21 }
0x15cb   :  { %v2893_v11 = vpop.permute.xlu1 %2892 }
0x15cc   :  { %v2895_v14 = vmul.f32 %v3683_v62, %v2893_v11 }
0x15ce   :  { %2903 = vrot.lane.b32.xlu1 %v2895_v14, %s3721_s21 }
0x163c   :  { %v2898_v26 = vpop.permute.xlu0 %2897 }
0x163d   :  { %2991 = vst.msk [vmem:[%s4282_s7 + $0xe] sm:$0x3] %vm416_vm2, %v2898_v26 }
0x1640   :  { %v2904_v15 = vpop.permute.xlu1 %2903 }
0x1641   :  { %2906 = vst.msk [vmem:[%s4283_s8] sm:$0x3] %vm416_vm2, %v2904_v15 }
0x1642   :  { %2915 = vsyncpa [#allocation3], 1 }

</bundles_post_ra>
